<compile_context>
chip_gen: v7x
topology: tpu7x:2x2x1
jax: 0.10.0
libtpu: 0.0.40
codegen_flags: <defaults>
</compile_context>

<pallas_src>
import functools

import jax
import jax.numpy as jnp
import numpy as np
from jax import lax
from jax.experimental import pallas as pl
from jax.experimental.pallas import tpu as pltpu

EPS = 1e-5


def _bn_relu(y, gamma, beta, count):
    # Training-mode BatchNorm2d over rows (N*H*W) of y, biased variance,
    # single-pass sum / sum-of-squares, then affine + ReLU.  y is f32.
    inv_n = 1.0 / count
    s = jnp.sum(y, axis=0, keepdims=True)
    ss = jnp.sum(y * y, axis=0, keepdims=True)
    mean = s * inv_n
    var = jnp.maximum(ss * inv_n - mean * mean, 0.0)
    scale = lax.rsqrt(var + EPS) * gamma
    return jnp.maximum((y - mean) * scale + beta, 0.0)


def _block_kernel(x_ref, w1_ref, g1_ref, b1_ref, w3_ref, g2_ref, b2_ref,
                  w2_ref, o_ref, pad_ref, *, n, h, w, c, chunk):
    j = pl.program_id(0)
    p = n * h * w

    # ---- conv2d34 (1x1) for this output-channel chunk: (P, C) @ (C, CHUNK) ----
    x = x_ref[...].reshape(p, c)                              # bf16
    y = jnp.dot(x, w1_ref[...], preferred_element_type=jnp.float32)

    # ---- batchnorm2d34 + relu31 (per-channel stats over all rows) ----
    y = _bn_relu(y, g1_ref[0], b1_ref[0], p)

    # ---- conv2d35: grouped 3x3, stride 1, pad 1, block-diag at CHUNK width ----
    # Zero the padded scratch only once; the halo is never written afterwards.
    @pl.when(j == 0)
    def _():
        pad_ref[...] = jnp.zeros_like(pad_ref)

    pad_ref[:, 1:h + 1, 1:w + 1, :] = y.astype(jnp.bfloat16).reshape(n, h, w, chunk)

    acc = jnp.zeros((p, chunk), jnp.float32)
    for kh in range(3):
        for kw in range(3):
            patch = pad_ref[:, kh:kh + h, kw:kw + w, :].reshape(p, chunk)
            acc = acc + jnp.dot(patch, w3_ref[0, kh, kw],
                                preferred_element_type=jnp.float32)

    # ---- batchnorm2d35 + relu31 ----
    y2 = _bn_relu(acc, g2_ref[0], b2_ref[0], p)

    # ---- conv2d36 (1x1): partial product of this chunk, accumulate over j ----
    part = jnp.dot(y2.astype(jnp.bfloat16), w2_ref[...],
                   preferred_element_type=jnp.float32).reshape(n, h, w, c)

    @pl.when(j == 0)
    def _():
        o_ref[...] = part

    @pl.when(j > 0)
    def _():
        o_ref[...] += part


def block_forward(x_nchw, w1, g1, b1, w3g, g2, b2, w2, groups, chunk=128):
    """x_nchw: (N, C, H, W) f32.  Weights in PyTorch conventions:
       w1, w2: (C, C, 1, 1); w3g: (C, C//groups, 3, 3); g*, b*: (C,)."""
    n, c, h, w = x_nchw.shape
    cg = c // groups
    chunk = min(chunk, c)
    assert c % chunk == 0, "C must be a multiple of the channel chunk"
    assert chunk % cg == 0, "group width must tile evenly into the chunk"
    num_chunks = c // chunk
    gpc = chunk // cg                                    # groups per chunk

    x = jnp.transpose(x_nchw, (0, 2, 3, 1)).astype(jnp.bfloat16)     # NHWC bf16

    # 1x1 conv weights (Cout, Cin, 1, 1) -> (Cin, Cout) matmul form, bf16.
    w1m = jnp.transpose(w1.reshape(c, c), (1, 0)).astype(jnp.bfloat16)
    w2m = jnp.transpose(w2.reshape(c, c), (1, 0)).astype(jnp.bfloat16)

    # Grouped 3x3 weight (Cout, cg, 3, 3) -> per-chunk block-diagonal taps
    # of shape (num_chunks, 3, 3, CHUNK_in, CHUNK_out).
    w3r = w3g.reshape(num_chunks, gpc, cg, cg, 3, 3)     # (c, g, o, i, kh, kw)
    eye_g = jnp.eye(gpc, dtype=w3g.dtype)
    w3c = jnp.einsum('cgoixy,gh->cxygiho', w3r, eye_g)
    w3c = w3c.reshape(num_chunks, 3, 3, chunk, chunk).astype(jnp.bfloat16)

    g1r = g1.reshape(num_chunks, 1, chunk).astype(jnp.float32)
    b1r = b1.reshape(num_chunks, 1, chunk).astype(jnp.float32)
    g2r = g2.reshape(num_chunks, 1, chunk).astype(jnp.float32)
    b2r = b2.reshape(num_chunks, 1, chunk).astype(jnp.float32)

    kernel = functools.partial(_block_kernel, n=n, h=h, w=w, c=c, chunk=chunk)

    out_nhwc = pl.pallas_call(
        kernel,
        out_shape=jax.ShapeDtypeStruct((n, h, w, c), jnp.float32),
        grid=(num_chunks,),
        in_specs=[
            pl.BlockSpec((n, h, w, c), lambda j: (0, 0, 0, 0)),            # x (resident)
            pl.BlockSpec((c, chunk), lambda j: (0, j)),                    # w1 columns
            pl.BlockSpec((1, 1, chunk), lambda j: (j, 0, 0)),              # gamma1
            pl.BlockSpec((1, 1, chunk), lambda j: (j, 0, 0)),              # beta1
            pl.BlockSpec((1, 3, 3, chunk, chunk), lambda j: (j, 0, 0, 0, 0)),  # 3x3 taps
            pl.BlockSpec((1, 1, chunk), lambda j: (j, 0, 0)),              # gamma2
            pl.BlockSpec((1, 1, chunk), lambda j: (j, 0, 0)),              # beta2
            pl.BlockSpec((chunk, c), lambda j: (j, 0)),                    # w2 rows
        ],
        out_specs=pl.BlockSpec((n, h, w, c), lambda j: (0, 0, 0, 0)),      # accumulator
        scratch_shapes=[pltpu.VMEM((n, h + 2, w + 2, chunk), jnp.bfloat16)],
        compiler_params=pltpu.CompilerParams(
            dimension_semantics=("arbitrary",),     # K-reduction into the output
            vmem_limit_bytes=32 * 1024 * 1024,
        ),
    )(x, w1m, g1r, b1r, w3c, g2r, b2r, w2m)

    return jnp.transpose(out_nhwc, (0, 3, 1, 2)).astype(jnp.float32)


def reference_forward(x, w1, g1, b1, w3g, g2, b2, w2, groups):
    """Pure-JAX NCHW reference mirroring the PyTorch module (training-mode BN)."""
    dn = ('NCHW', 'OIHW', 'NCHW')

    def conv(inp, wgt, pad, fgc=1):
        return lax.conv_general_dilated(
            inp, wgt, (1, 1), pad, dimension_numbers=dn,
            feature_group_count=fgc, precision=lax.Precision.HIGHEST)

    def bn_relu(y, g, b):
        mean = jnp.mean(y, axis=(0, 2, 3), keepdims=True)
        var = jnp.mean((y - mean) ** 2, axis=(0, 2, 3), keepdims=True)
        yn = (y - mean) / jnp.sqrt(var + EPS)
        return jnp.maximum(yn * g[None, :, None, None] + b[None, :, None, None], 0.0)

    y = conv(x, w1, 'VALID')
    y = bn_relu(y, g1, b1)
    y = conv(y, w3g, [(1, 1), (1, 1)], fgc=groups)
    y = bn_relu(y, g2, b2)
    return conv(y, w2, 'VALID')


if __name__ == "__main__":
    # Small shapes consistent with the module structure (original: N=1, C=1024,
    # H=W=14, groups=64 -> 16 channels/group).  Here: C=256, groups=16 (still
    # 16 channels per group), spatial 16x16 -> 2 channel chunks of 128, which
    # exercises the chunked grid and the cross-chunk output accumulation.
    N, C, H, W, GROUPS = 1, 256, 16, 16, 16

    key = jax.random.PRNGKey(0)
    ks = jax.random.split(key, 8)
    x = jax.random.normal(ks[0], (N, C, H, W), jnp.float32)
    w1 = jax.random.normal(ks[1], (C, C, 1, 1), jnp.float32) / jnp.sqrt(C)
    g1 = 1.0 + 0.1 * jax.random.normal(ks[2], (C,), jnp.float32)
    b1 = 0.1 * jax.random.normal(ks[3], (C,), jnp.float32)
    w3 = jax.random.normal(ks[4], (C, C // GROUPS, 3, 3),
                           jnp.float32) / jnp.sqrt(9.0 * C / GROUPS)
    g2 = 1.0 + 0.1 * jax.random.normal(ks[5], (C,), jnp.float32)
    b2 = 0.1 * jax.random.normal(ks[6], (C,), jnp.float32)
    w2 = jax.random.normal(ks[7], (C, C, 1, 1), jnp.float32) / jnp.sqrt(C)

    out = block_forward(x, w1, g1, b1, w3, g2, b2, w2, GROUPS)
    out = jax.block_until_ready(out)

    ref = reference_forward(x, w1, g1, b1, w3, g2, b2, w2, GROUPS)
    ref = jax.block_until_ready(ref)

    np.testing.assert_allclose(np.asarray(out), np.asarray(ref),
                               rtol=5e-2, atol=5e-2)
    print("KERNEL_OK")
</pallas_src>

<mosaic_0001>
module attributes {stable_mosaic.version = 11 : i64} {
  func.func @_block_kernel(%arg0: i32, %arg1: memref<1x16x16x256xbf16, #tpu.memory_space<vmem>>, %arg2: memref<256x128xbf16, #tpu.memory_space<vmem>>, %arg3: memref<1x1x128xf32, #tpu.memory_space<vmem>>, %arg4: memref<1x1x128xf32, #tpu.memory_space<vmem>>, %arg5: memref<1x3x3x128x128xbf16, #tpu.memory_space<vmem>>, %arg6: memref<1x1x128xf32, #tpu.memory_space<vmem>>, %arg7: memref<1x1x128xf32, #tpu.memory_space<vmem>>, %arg8: memref<128x256xbf16, #tpu.memory_space<vmem>>, %arg9: memref<1x16x16x256xf32, #tpu.memory_space<vmem>>, %arg10: memref<1x18x18x128xbf16, #tpu.memory_space<vmem>>) attributes {dimension_semantics = [#tpu.dimension_semantics<arbitrary>], iteration_bounds = array<i64: 2>, scalar_prefetch = 0 : i64, scratch_operands = 1 : i64, tpu.core_type = #tpu.core_type<tc>, window_params = [{pipeline_mode = #tpu.pipeline_mode<synchronous>, transform_indices = @transform_0, window_bounds = array<i64: 1, 16, 16, 256>}, {transform_indices = @transform_1, window_bounds = array<i64: 256, 128>}, {transform_indices = @transform_2, window_bounds = array<i64: 1, 1, 128>}, {transform_indices = @transform_3, window_bounds = array<i64: 1, 1, 128>}, {transform_indices = @transform_4, window_bounds = array<i64: 1, 3, 3, 128, 128>}, {transform_indices = @transform_5, window_bounds = array<i64: 1, 1, 128>}, {transform_indices = @transform_6, window_bounds = array<i64: 1, 1, 128>}, {transform_indices = @transform_7, window_bounds = array<i64: 128, 256>}, {pipeline_mode = #tpu.pipeline_mode<synchronous>, transform_indices = @transform_8, window_bounds = array<i64: 1, 16, 16, 256>}]} {
    %c0 = arith.constant 0 : index
    %c0_0 = arith.constant 0 : index
    %c0_1 = arith.constant 0 : index
    %c0_2 = arith.constant 0 : index
    %0 = vector.load %arg1[%c0, %c0_0, %c0_1, %c0_2] : memref<1x16x16x256xbf16, #tpu.memory_space<vmem>>, vector<1x16x16x256xbf16>
    %1 = vector.shape_cast %0 : vector<1x16x16x256xbf16> to vector<256x256xbf16>
    %c0_3 = arith.constant 0 : index
    %c0_4 = arith.constant 0 : index
    %2 = vector.load %arg2[%c0_3, %c0_4] : memref<256x128xbf16, #tpu.memory_space<vmem>>, vector<256x128xbf16>
    %cst = arith.constant dense<0.000000e+00> : vector<256x128xf32>
    %3 = tpu.matmul %1, %2, %cst {dimension_numbers = #tpu.dot_dimension_numbers<[1], [0], [0], [1], [0, 0, 1, 1], [], []>} : vector<256x256xbf16>, vector<256x128xbf16>, vector<256x128xf32> -> vector<256x128xf32>
    %c0_5 = arith.constant 0 : index
    %c0_6 = arith.constant 0 : index
    %c0_7 = arith.constant 0 : index
    %4 = vector.load %arg3[%c0_5, %c0_6, %c0_7] : memref<1x1x128xf32, #tpu.memory_space<vmem>>, vector<1x1x128xf32>
    %5 = vector.shape_cast %4 : vector<1x1x128xf32> to vector<1x128xf32>
    %c0_8 = arith.constant 0 : index
    %c0_9 = arith.constant 0 : index
    %c0_10 = arith.constant 0 : index
    %6 = vector.load %arg4[%c0_8, %c0_9, %c0_10] : memref<1x1x128xf32, #tpu.memory_space<vmem>>, vector<1x1x128xf32>
    %7 = vector.shape_cast %6 : vector<1x1x128xf32> to vector<1x128xf32>
    %cst_11 = arith.constant dense<0.000000e+00> : vector<128xf32>
    %8 = vector.multi_reduction <add>, %3, %cst_11 [0] : vector<256x128xf32> to vector<128xf32>
    %9 = vector.shape_cast %8 : vector<128xf32> to vector<1x128xf32>
    %10 = arith.mulf %3, %3 : vector<256x128xf32>
    %cst_12 = arith.constant dense<0.000000e+00> : vector<128xf32>
    %11 = vector.multi_reduction <add>, %10, %cst_12 [0] : vector<256x128xf32> to vector<128xf32>
    %12 = vector.shape_cast %11 : vector<128xf32> to vector<1x128xf32>
    %cst_13 = arith.constant 3.906250e-03 : f32
    %13 = vector.broadcast %cst_13 : f32 to vector<1x128xf32>
    %14 = arith.mulf %9, %13 : vector<1x128xf32>
    %cst_14 = arith.constant 3.906250e-03 : f32
    %15 = vector.broadcast %cst_14 : f32 to vector<1x128xf32>
    %16 = arith.mulf %12, %15 : vector<1x128xf32>
    %17 = arith.mulf %14, %14 : vector<1x128xf32>
    %18 = arith.subf %16, %17 : vector<1x128xf32>
    %cst_15 = arith.constant 0.000000e+00 : f32
    %19 = vector.broadcast %cst_15 : f32 to vector<1x128xf32>
    %20 = arith.maximumf %18, %19 : vector<1x128xf32>
    %cst_16 = arith.constant 9.99999974E-6 : f32
    %21 = vector.broadcast %cst_16 : f32 to vector<1x128xf32>
    %22 = arith.addf %20, %21 : vector<1x128xf32>
    %23 = math.rsqrt %22 : vector<1x128xf32>
    %24 = arith.mulf %23, %5 : vector<1x128xf32>
    %25 = vector.broadcast %14 : vector<1x128xf32> to vector<256x128xf32>
    %26 = arith.subf %3, %25 : vector<256x128xf32>
    %27 = vector.broadcast %24 : vector<1x128xf32> to vector<256x128xf32>
    %28 = arith.mulf %26, %27 : vector<256x128xf32>
    %29 = vector.broadcast %7 : vector<1x128xf32> to vector<256x128xf32>
    %30 = arith.addf %28, %29 : vector<256x128xf32>
    %cst_17 = arith.constant 0.000000e+00 : f32
    %31 = vector.broadcast %cst_17 : f32 to vector<256x128xf32>
    %32 = arith.maximumf %30, %31 : vector<256x128xf32>
    %c0_i32 = arith.constant 0 : i32
    %33 = arith.cmpi eq, %arg0, %c0_i32 : i32
    %34 = arith.extui %33 : i1 to i32
    %c0_i32_18 = arith.constant 0 : i32
    %35 = arith.cmpi ne, %34, %c0_i32_18 : i32
    scf.if %35 {
      %cst_132 = arith.constant 0.000000e+00 : bf16
      %133 = vector.broadcast %cst_132 : bf16 to vector<1x18x18x128xbf16>
      %c0_133 = arith.constant 0 : index
      %c0_134 = arith.constant 0 : index
      %c0_135 = arith.constant 0 : index
      %c0_136 = arith.constant 0 : index
      %134 = vector.load %arg10[%c0_133, %c0_134, %c0_135, %c0_136] : memref<1x18x18x128xbf16, #tpu.memory_space<vmem>>, vector<1x18x18x128xbf16>
      tpu.vector_store %arg10[%c0_133, %c0_134, %c0_135, %c0_136], %133 {strides = array<i32>} : memref<1x18x18x128xbf16, #tpu.memory_space<vmem>>, vector<1x18x18x128xbf16>,
    } else {
    }
    %36 = arith.truncf %32 : vector<256x128xf32> to vector<256x128xbf16>
    %37 = vector.shape_cast %36 : vector<256x128xbf16> to vector<1x16x16x128xbf16>
    %c0_19 = arith.constant 0 : index
    %c1 = arith.constant 1 : index
    %c1_20 = arith.constant 1 : index
    %c0_21 = arith.constant 0 : index
    %38 = vector.load %arg10[%c0_19, %c1, %c1_20, %c0_21] : memref<1x18x18x128xbf16, #tpu.memory_space<vmem>>, vector<1x16x16x128xbf16>
    tpu.vector_store %arg10[%c0_19, %c1, %c1_20, %c0_21], %37 {strides = array<i32>} : memref<1x18x18x128xbf16, #tpu.memory_space<vmem>>, vector<1x16x16x128xbf16>,
    %cst_22 = arith.constant 0.000000e+00 : f32
    %39 = vector.broadcast %cst_22 : f32 to vector<256x128xf32>
    %c0_23 = arith.constant 0 : index
    %c0_24 = arith.constant 0 : index
    %c0_25 = arith.constant 0 : index
    %c0_26 = arith.constant 0 : index
    %40 = vector.load %arg10[%c0_23, %c0_24, %c0_25, %c0_26] : memref<1x18x18x128xbf16, #tpu.memory_space<vmem>>, vector<1x16x16x128xbf16>
    %41 = vector.shape_cast %40 : vector<1x16x16x128xbf16> to vector<256x128xbf16>
    %c0_27 = arith.constant 0 : index
    %c0_28 = arith.constant 0 : index
    %c0_29 = arith.constant 0 : index
    %c0_30 = arith.constant 0 : index
    %c0_31 = arith.constant 0 : index
    %42 = vector.load %arg5[%c0_27, %c0_28, %c0_29, %c0_30, %c0_31] : memref<1x3x3x128x128xbf16, #tpu.memory_space<vmem>>, vector<1x1x1x128x128xbf16>
    %43 = vector.shape_cast %42 : vector<1x1x1x128x128xbf16> to vector<128x128xbf16>
    %cst_32 = arith.constant dense<0.000000e+00> : vector<256x128xf32>
    %44 = tpu.matmul %41, %43, %cst_32 {dimension_numbers = #tpu.dot_dimension_numbers<[1], [0], [0], [1], [0, 0, 1, 1], [], []>} : vector<256x128xbf16>, vector<128x128xbf16>, vector<256x128xf32> -> vector<256x128xf32>
    %45 = arith.addf %39, %44 : vector<256x128xf32>
    %c0_33 = arith.constant 0 : index
    %c0_34 = arith.constant 0 : index
    %c1_35 = arith.constant 1 : index
    %c0_36 = arith.constant 0 : index
    %46 = vector.load %arg10[%c0_33, %c0_34, %c1_35, %c0_36] : memref<1x18x18x128xbf16, #tpu.memory_space<vmem>>, vector<1x16x16x128xbf16>
    %47 = vector.shape_cast %46 : vector<1x16x16x128xbf16> to vector<256x128xbf16>
    %c0_37 = arith.constant 0 : index
    %c0_38 = arith.constant 0 : index
    %c1_39 = arith.constant 1 : index
    %c0_40 = arith.constant 0 : index
    %c0_41 = arith.constant 0 : index
    %48 = vector.load %arg5[%c0_37, %c0_38, %c1_39, %c0_40, %c0_41] : memref<1x3x3x128x128xbf16, #tpu.memory_space<vmem>>, vector<1x1x1x128x128xbf16>
    %49 = vector.shape_cast %48 : vector<1x1x1x128x128xbf16> to vector<128x128xbf16>
    %cst_42 = arith.constant dense<0.000000e+00> : vector<256x128xf32>
    %50 = tpu.matmul %47, %49, %cst_42 {dimension_numbers = #tpu.dot_dimension_numbers<[1], [0], [0], [1], [0, 0, 1, 1], [], []>} : vector<256x128xbf16>, vector<128x128xbf16>, vector<256x128xf32> -> vector<256x128xf32>
    %51 = arith.addf %45, %50 : vector<256x128xf32>
    %c0_43 = arith.constant 0 : index
    %c0_44 = arith.constant 0 : index
    %c2 = arith.constant 2 : index
    %c0_45 = arith.constant 0 : index
    %52 = vector.load %arg10[%c0_43, %c0_44, %c2, %c0_45] : memref<1x18x18x128xbf16, #tpu.memory_space<vmem>>, vector<1x16x16x128xbf16>
    %53 = vector.shape_cast %52 : vector<1x16x16x128xbf16> to vector<256x128xbf16>
    %c0_46 = arith.constant 0 : index
    %c0_47 = arith.constant 0 : index
    %c2_48 = arith.constant 2 : index
    %c0_49 = arith.constant 0 : index
    %c0_50 = arith.constant 0 : index
    %54 = vector.load %arg5[%c0_46, %c0_47, %c2_48, %c0_49, %c0_50] : memref<1x3x3x128x128xbf16, #tpu.memory_space<vmem>>, vector<1x1x1x128x128xbf16>
    %55 = vector.shape_cast %54 : vector<1x1x1x128x128xbf16> to vector<128x128xbf16>
    %cst_51 = arith.constant dense<0.000000e+00> : vector<256x128xf32>
    %56 = tpu.matmul %53, %55, %cst_51 {dimension_numbers = #tpu.dot_dimension_numbers<[1], [0], [0], [1], [0, 0, 1, 1], [], []>} : vector<256x128xbf16>, vector<128x128xbf16>, vector<256x128xf32> -> vector<256x128xf32>
    %57 = arith.addf %51, %56 : vector<256x128xf32>
    %c0_52 = arith.constant 0 : index
    %c1_53 = arith.constant 1 : index
    %c0_54 = arith.constant 0 : index
    %c0_55 = arith.constant 0 : index
    %58 = vector.load %arg10[%c0_52, %c1_53, %c0_54, %c0_55] : memref<1x18x18x128xbf16, #tpu.memory_space<vmem>>, vector<1x16x16x128xbf16>
    %59 = vector.shape_cast %58 : vector<1x16x16x128xbf16> to vector<256x128xbf16>
    %c0_56 = arith.constant 0 : index
    %c1_57 = arith.constant 1 : index
    %c0_58 = arith.constant 0 : index
    %c0_59 = arith.constant 0 : index
    %c0_60 = arith.constant 0 : index
    %60 = vector.load %arg5[%c0_56, %c1_57, %c0_58, %c0_59, %c0_60] : memref<1x3x3x128x128xbf16, #tpu.memory_space<vmem>>, vector<1x1x1x128x128xbf16>
    %61 = vector.shape_cast %60 : vector<1x1x1x128x128xbf16> to vector<128x128xbf16>
    %cst_61 = arith.constant dense<0.000000e+00> : vector<256x128xf32>
    %62 = tpu.matmul %59, %61, %cst_61 {dimension_numbers = #tpu.dot_dimension_numbers<[1], [0], [0], [1], [0, 0, 1, 1], [], []>} : vector<256x128xbf16>, vector<128x128xbf16>, vector<256x128xf32> -> vector<256x128xf32>
    %63 = arith.addf %57, %62 : vector<256x128xf32>
    %c0_62 = arith.constant 0 : index
    %c1_63 = arith.constant 1 : index
    %c1_64 = arith.constant 1 : index
    %c0_65 = arith.constant 0 : index
    %64 = vector.load %arg10[%c0_62, %c1_63, %c1_64, %c0_65] : memref<1x18x18x128xbf16, #tpu.memory_space<vmem>>, vector<1x16x16x128xbf16>
    %65 = vector.shape_cast %64 : vector<1x16x16x128xbf16> to vector<256x128xbf16>
    %c0_66 = arith.constant 0 : index
    %c1_67 = arith.constant 1 : index
    %c1_68 = arith.constant 1 : index
    %c0_69 = arith.constant 0 : index
    %c0_70 = arith.constant 0 : index
    %66 = vector.load %arg5[%c0_66, %c1_67, %c1_68, %c0_69, %c0_70] : memref<1x3x3x128x128xbf16, #tpu.memory_space<vmem>>, vector<1x1x1x128x128xbf16>
    %67 = vector.shape_cast %66 : vector<1x1x1x128x128xbf16> to vector<128x128xbf16>
    %cst_71 = arith.constant dense<0.000000e+00> : vector<256x128xf32>
    %68 = tpu.matmul %65, %67, %cst_71 {dimension_numbers = #tpu.dot_dimension_numbers<[1], [0], [0], [1], [0, 0, 1, 1], [], []>} : vector<256x128xbf16>, vector<128x128xbf16>, vector<256x128xf32> -> vector<256x128xf32>
    %69 = arith.addf %63, %68 : vector<256x128xf32>
    %c0_72 = arith.constant 0 : index
    %c1_73 = arith.constant 1 : index
    %c2_74 = arith.constant 2 : index
    %c0_75 = arith.constant 0 : index
    %70 = vector.load %arg10[%c0_72, %c1_73, %c2_74, %c0_75] : memref<1x18x18x128xbf16, #tpu.memory_space<vmem>>, vector<1x16x16x128xbf16>
    %71 = vector.shape_cast %70 : vector<1x16x16x128xbf16> to vector<256x128xbf16>
    %c0_76 = arith.constant 0 : index
    %c1_77 = arith.constant 1 : index
    %c2_78 = arith.constant 2 : index
    %c0_79 = arith.constant 0 : index
    %c0_80 = arith.constant 0 : index
    %72 = vector.load %arg5[%c0_76, %c1_77, %c2_78, %c0_79, %c0_80] : memref<1x3x3x128x128xbf16, #tpu.memory_space<vmem>>, vector<1x1x1x128x128xbf16>
    %73 = vector.shape_cast %72 : vector<1x1x1x128x128xbf16> to vector<128x128xbf16>
    %cst_81 = arith.constant dense<0.000000e+00> : vector<256x128xf32>
    %74 = tpu.matmul %71, %73, %cst_81 {dimension_numbers = #tpu.dot_dimension_numbers<[1], [0], [0], [1], [0, 0, 1, 1], [], []>} : vector<256x128xbf16>, vector<128x128xbf16>, vector<256x128xf32> -> vector<256x128xf32>
    %75 = arith.addf %69, %74 : vector<256x128xf32>
    %c0_82 = arith.constant 0 : index
    %c2_83 = arith.constant 2 : index
    %c0_84 = arith.constant 0 : index
    %c0_85 = arith.constant 0 : index
    %76 = vector.load %arg10[%c0_82, %c2_83, %c0_84, %c0_85] : memref<1x18x18x128xbf16, #tpu.memory_space<vmem>>, vector<1x16x16x128xbf16>
    %77 = vector.shape_cast %76 : vector<1x16x16x128xbf16> to vector<256x128xbf16>
    %c0_86 = arith.constant 0 : index
    %c2_87 = arith.constant 2 : index
    %c0_88 = arith.constant 0 : index
    %c0_89 = arith.constant 0 : index
    %c0_90 = arith.constant 0 : index
    %78 = vector.load %arg5[%c0_86, %c2_87, %c0_88, %c0_89, %c0_90] : memref<1x3x3x128x128xbf16, #tpu.memory_space<vmem>>, vector<1x1x1x128x128xbf16>
    %79 = vector.shape_cast %78 : vector<1x1x1x128x128xbf16> to vector<128x128xbf16>
    %cst_91 = arith.constant dense<0.000000e+00> : vector<256x128xf32>
    %80 = tpu.matmul %77, %79, %cst_91 {dimension_numbers = #tpu.dot_dimension_numbers<[1], [0], [0], [1], [0, 0, 1, 1], [], []>} : vector<256x128xbf16>, vector<128x128xbf16>, vector<256x128xf32> -> vector<256x128xf32>
    %81 = arith.addf %75, %80 : vector<256x128xf32>
    %c0_92 = arith.constant 0 : index
    %c2_93 = arith.constant 2 : index
    %c1_94 = arith.constant 1 : index
    %c0_95 = arith.constant 0 : index
    %82 = vector.load %arg10[%c0_92, %c2_93, %c1_94, %c0_95] : memref<1x18x18x128xbf16, #tpu.memory_space<vmem>>, vector<1x16x16x128xbf16>
    %83 = vector.shape_cast %82 : vector<1x16x16x128xbf16> to vector<256x128xbf16>
    %c0_96 = arith.constant 0 : index
    %c2_97 = arith.constant 2 : index
    %c1_98 = arith.constant 1 : index
    %c0_99 = arith.constant 0 : index
    %c0_100 = arith.constant 0 : index
    %84 = vector.load %arg5[%c0_96, %c2_97, %c1_98, %c0_99, %c0_100] : memref<1x3x3x128x128xbf16, #tpu.memory_space<vmem>>, vector<1x1x1x128x128xbf16>
    %85 = vector.shape_cast %84 : vector<1x1x1x128x128xbf16> to vector<128x128xbf16>
    %cst_101 = arith.constant dense<0.000000e+00> : vector<256x128xf32>
    %86 = tpu.matmul %83, %85, %cst_101 {dimension_numbers = #tpu.dot_dimension_numbers<[1], [0], [0], [1], [0, 0, 1, 1], [], []>} : vector<256x128xbf16>, vector<128x128xbf16>, vector<256x128xf32> -> vector<256x128xf32>
    %87 = arith.addf %81, %86 : vector<256x128xf32>
    %c0_102 = arith.constant 0 : index
    %c2_103 = arith.constant 2 : index
    %c2_104 = arith.constant 2 : index
    %c0_105 = arith.constant 0 : index
    %88 = vector.load %arg10[%c0_102, %c2_103, %c2_104, %c0_105] : memref<1x18x18x128xbf16, #tpu.memory_space<vmem>>, vector<1x16x16x128xbf16>
    %89 = vector.shape_cast %88 : vector<1x16x16x128xbf16> to vector<256x128xbf16>
    %c0_106 = arith.constant 0 : index
    %c2_107 = arith.constant 2 : index
    %c2_108 = arith.constant 2 : index
    %c0_109 = arith.constant 0 : index
    %c0_110 = arith.constant 0 : index
    %90 = vector.load %arg5[%c0_106, %c2_107, %c2_108, %c0_109, %c0_110] : memref<1x3x3x128x128xbf16, #tpu.memory_space<vmem>>, vector<1x1x1x128x128xbf16>
    %91 = vector.shape_cast %90 : vector<1x1x1x128x128xbf16> to vector<128x128xbf16>
    %cst_111 = arith.constant dense<0.000000e+00> : vector<256x128xf32>
    %92 = tpu.matmul %89, %91, %cst_111 {dimension_numbers = #tpu.dot_dimension_numbers<[1], [0], [0], [1], [0, 0, 1, 1], [], []>} : vector<256x128xbf16>, vector<128x128xbf16>, vector<256x128xf32> -> vector<256x128xf32>
    %93 = arith.addf %87, %92 : vector<256x128xf32>
    %c0_112 = arith.constant 0 : index
    %c0_113 = arith.constant 0 : index
    %c0_114 = arith.constant 0 : index
    %94 = vector.load %arg6[%c0_112, %c0_113, %c0_114] : memref<1x1x128xf32, #tpu.memory_space<vmem>>, vector<1x1x128xf32>
    %95 = vector.shape_cast %94 : vector<1x1x128xf32> to vector<1x128xf32>
    %c0_115 = arith.constant 0 : index
    %c0_116 = arith.constant 0 : index
    %c0_117 = arith.constant 0 : index
    %96 = vector.load %arg7[%c0_115, %c0_116, %c0_117] : memref<1x1x128xf32, #tpu.memory_space<vmem>>, vector<1x1x128xf32>
    %97 = vector.shape_cast %96 : vector<1x1x128xf32> to vector<1x128xf32>
    %cst_118 = arith.constant dense<0.000000e+00> : vector<128xf32>
    %98 = vector.multi_reduction <add>, %93, %cst_118 [0] : vector<256x128xf32> to vector<128xf32>
    %99 = vector.shape_cast %98 : vector<128xf32> to vector<1x128xf32>
    %100 = arith.mulf %93, %93 : vector<256x128xf32>
    %cst_119 = arith.constant dense<0.000000e+00> : vector<128xf32>
    %101 = vector.multi_reduction <add>, %100, %cst_119 [0] : vector<256x128xf32> to vector<128xf32>
    %102 = vector.shape_cast %101 : vector<128xf32> to vector<1x128xf32>
    %cst_120 = arith.constant 3.906250e-03 : f32
    %103 = vector.broadcast %cst_120 : f32 to vector<1x128xf32>
    %104 = arith.mulf %99, %103 : vector<1x128xf32>
    %cst_121 = arith.constant 3.906250e-03 : f32
    %105 = vector.broadcast %cst_121 : f32 to vector<1x128xf32>
    %106 = arith.mulf %102, %105 : vector<1x128xf32>
    %107 = arith.mulf %104, %104 : vector<1x128xf32>
    %108 = arith.subf %106, %107 : vector<1x128xf32>
    %cst_122 = arith.constant 0.000000e+00 : f32
    %109 = vector.broadcast %cst_122 : f32 to vector<1x128xf32>
    %110 = arith.maximumf %108, %109 : vector<1x128xf32>
    %cst_123 = arith.constant 9.99999974E-6 : f32
    %111 = vector.broadcast %cst_123 : f32 to vector<1x128xf32>
    %112 = arith.addf %110, %111 : vector<1x128xf32>
    %113 = math.rsqrt %112 : vector<1x128xf32>
    %114 = arith.mulf %113, %95 : vector<1x128xf32>
    %115 = vector.broadcast %104 : vector<1x128xf32> to vector<256x128xf32>
    %116 = arith.subf %93, %115 : vector<256x128xf32>
    %117 = vector.broadcast %114 : vector<1x128xf32> to vector<256x128xf32>
    %118 = arith.mulf %116, %117 : vector<256x128xf32>
    %119 = vector.broadcast %97 : vector<1x128xf32> to vector<256x128xf32>
    %120 = arith.addf %118, %119 : vector<256x128xf32>
    %cst_124 = arith.constant 0.000000e+00 : f32
    %121 = vector.broadcast %cst_124 : f32 to vector<256x128xf32>
    %122 = arith.maximumf %120, %121 : vector<256x128xf32>
    %123 = arith.truncf %122 : vector<256x128xf32> to vector<256x128xbf16>
    %c0_125 = arith.constant 0 : index
    %c0_126 = arith.constant 0 : index
    %124 = vector.load %arg8[%c0_125, %c0_126] : memref<128x256xbf16, #tpu.memory_space<vmem>>, vector<128x256xbf16>
    %cst_127 = arith.constant dense<0.000000e+00> : vector<256x256xf32>
    %125 = tpu.matmul %123, %124, %cst_127 {dimension_numbers = #tpu.dot_dimension_numbers<[1], [0], [0], [1], [0, 0, 1, 1], [], []>} : vector<256x128xbf16>, vector<128x256xbf16>, vector<256x256xf32> -> vector<256x256xf32>
    %126 = vector.shape_cast %125 : vector<256x256xf32> to vector<1x16x16x256xf32>
    %c0_i32_128 = arith.constant 0 : i32
    %127 = arith.cmpi eq, %arg0, %c0_i32_128 : i32
    %128 = arith.extui %127 : i1 to i32
    %c0_i32_129 = arith.constant 0 : i32
    %129 = arith.cmpi ne, %128, %c0_i32_129 : i32
    scf.if %129 {
      %c0_132 = arith.constant 0 : index
      %c0_133 = arith.constant 0 : index
      %c0_134 = arith.constant 0 : index
      %c0_135 = arith.constant 0 : index
      %133 = vector.load %arg9[%c0_132, %c0_133, %c0_134, %c0_135] : memref<1x16x16x256xf32, #tpu.memory_space<vmem>>, vector<1x16x16x256xf32>
      tpu.vector_store %arg9[%c0_132, %c0_133, %c0_134, %c0_135], %126 {strides = array<i32>} : memref<1x16x16x256xf32, #tpu.memory_space<vmem>>, vector<1x16x16x256xf32>,
    } else {
    }
    %c0_i32_130 = arith.constant 0 : i32
    %130 = arith.cmpi sgt, %arg0, %c0_i32_130 : i32
    %131 = arith.extui %130 : i1 to i32
    %c0_i32_131 = arith.constant 0 : i32
    %132 = arith.cmpi ne, %131, %c0_i32_131 : i32
    scf.if %132 {
      %c0_132 = arith.constant 0 : index
      %c0_133 = arith.constant 0 : index
      %c0_134 = arith.constant 0 : index
      %c0_135 = arith.constant 0 : index
      %133 = vector.load %arg9[%c0_132, %c0_133, %c0_134, %c0_135] : memref<1x16x16x256xf32, #tpu.memory_space<vmem>>, vector<1x16x16x256xf32>
      %134 = arith.addf %133, %126 : vector<1x16x16x256xf32>
      %c0_136 = arith.constant 0 : index
      %c0_137 = arith.constant 0 : index
      %c0_138 = arith.constant 0 : index
      %c0_139 = arith.constant 0 : index
      %135 = vector.load %arg9[%c0_136, %c0_137, %c0_138, %c0_139] : memref<1x16x16x256xf32, #tpu.memory_space<vmem>>, vector<1x16x16x256xf32>
      tpu.vector_store %arg9[%c0_136, %c0_137, %c0_138, %c0_139], %134 {strides = array<i32>} : memref<1x16x16x256xf32, #tpu.memory_space<vmem>>, vector<1x16x16x256xf32>,
    } else {
    }
    return
  }
  func.func @transform_0(%arg0: i32) -> (i32, i32, i32, i32) {
    %c0_i32 = arith.constant 0 : i32
    %c0_i32_0 = arith.constant 0 : i32
    %c0_i32_1 = arith.constant 0 : i32
    %c0_i32_2 = arith.constant 0 : i32
    %c0_i32_3 = arith.constant 0 : i32
    return %c0_i32, %c0_i32_0, %c0_i32_1, %c0_i32_2 : i32, i32, i32, i32
  }
  func.func @transform_1(%arg0: i32) -> (i32, i32) {
    %c0_i32 = arith.constant 0 : i32
    %c0_i32_0 = arith.constant 0 : i32
    return %c0_i32, %arg0 : i32, i32
  }
  func.func @transform_2(%arg0: i32) -> (i32, i32, i32) {
    %c0_i32 = arith.constant 0 : i32
    %c0_i32_0 = arith.constant 0 : i32
    %c0_i32_1 = arith.constant 0 : i32
    return %arg0, %c0_i32, %c0_i32_0 : i32, i32, i32
  }
  func.func @transform_3(%arg0: i32) -> (i32, i32, i32) {
    %c0_i32 = arith.constant 0 : i32
    %c0_i32_0 = arith.constant 0 : i32
    %c0_i32_1 = arith.constant 0 : i32
    return %arg0, %c0_i32, %c0_i32_0 : i32, i32, i32
  }
  func.func @transform_4(%arg0: i32) -> (i32, i32, i32, i32, i32) {
    %c0_i32 = arith.constant 0 : i32
    %c0_i32_0 = arith.constant 0 : i32
    %c0_i32_1 = arith.constant 0 : i32
    %c0_i32_2 = arith.constant 0 : i32
    %c0_i32_3 = arith.constant 0 : i32
    return %arg0, %c0_i32, %c0_i32_0, %c0_i32_1, %c0_i32_2 : i32, i32, i32, i32, i32
  }
  func.func @transform_5(%arg0: i32) -> (i32, i32, i32) {
    %c0_i32 = arith.constant 0 : i32
    %c0_i32_0 = arith.constant 0 : i32
    %c0_i32_1 = arith.constant 0 : i32
    return %arg0, %c0_i32, %c0_i32_0 : i32, i32, i32
  }
  func.func @transform_6(%arg0: i32) -> (i32, i32, i32) {
    %c0_i32 = arith.constant 0 : i32
    %c0_i32_0 = arith.constant 0 : i32
    %c0_i32_1 = arith.constant 0 : i32
    return %arg0, %c0_i32, %c0_i32_0 : i32, i32, i32
  }
  func.func @transform_7(%arg0: i32) -> (i32, i32) {
    %c0_i32 = arith.constant 0 : i32
    %c0_i32_0 = arith.constant 0 : i32
    return %arg0, %c0_i32 : i32, i32
  }
  func.func @transform_8(%arg0: i32) -> (i32, i32, i32, i32) {
    %c0_i32 = arith.constant 0 : i32
    %c0_i32_0 = arith.constant 0 : i32
    %c0_i32_1 = arith.constant 0 : i32
    %c0_i32_2 = arith.constant 0 : i32
    %c0_i32_3 = arith.constant 0 : i32
    return %c0_i32, %c0_i32_0, %c0_i32_1, %c0_i32_2 : i32, i32, i32, i32
  }
}

</mosaic_0001>

<bundles_post_ra>
// kernel: tpu_custom_call.1
= control target key start
LH: loop header
LB: loop body
LE: loop exit
PB: predicated region body
PF: predicated region fallthrough
CT: control target
= control target key end

     0   :  { %s12583_s0 = inlined_call_operand.hbm [shape: bf16[1,16,16,256], index: 0, kind: input, shape index: {}]   ;;  %s12584_s1 = inlined_call_operand.hbm [shape: bf16[256,256], index: 1, kind: input, shape index: {}]   ;;  %s12585_s2 = inlined_call_operand.vmem [shape: f32[2,1,128], index: 2, kind: input, shape index: {}]   ;;  %s12586_s3 = inlined_call_operand.vmem [shape: f32[2,1,128], index: 3, kind: input, shape index: {}]   ;;  %s12587_s4 = inlined_call_operand.hbm [shape: bf16[2,3,3,128,128], index: 4, kind: input, shape index: {}]   ;;  %s12588_s5 = inlined_call_operand.vmem [shape: f32[2,1,128], index: 5, kind: input, shape index: {}]   ;;  %s12589_s6 = inlined_call_operand.vmem [shape: f32[2,1,128], index: 6, kind: input, shape index: {}]   ;;  %s12590_s7 = inlined_call_operand.hbm [shape: bf16[256,256], index: 7, kind: input, shape index: {}]   ;;  %s12591_s8 = inlined_call_operand.hbm [shape: f32[1,16,16,256], index: 8, kind: output, shape index: {}]  }
   0x1   :  { %12648 = sst [smem:[#allocation42_spill]] %s12584_s1 }
   0x2   :  { %12649 = sst [smem:[#allocation43_spill]] %s12591_s8 }
   0x3   :  { %13 = vsyncpa [#allocation4], 0 }
   0x4   :  { %14 = vsyncpa [#allocation7], 0 }
   0x5   :  { %16 = vsyncpa [#allocation7 + $0x1], 0 }
   0x6   :  { %17 = vsyncpa [#allocation10], 0 }
   0x7   :  { %19 = vsyncpa [#allocation10 + $0x1], 0 }
   0x8   :  { %20 = vsyncpa [#allocation5], 0  ;;  %s9763_s27 = smov 0   ;;  %s9765_s28 = smov 0  }
   0x9   :  { %s9767_s29 = smov 0   ;;  %s9769_s30 = smov 0  }
   0xa LB: > { %12650 = sst [smem:[#allocation16_spill]] %s9699_s29  ;;  %s9784_s9 = sadd.s32 1, %s9703_s30   ;;  %s9703_s30 = sphi %s9769_s30, %s12790_s30   ;;  %s9699_s29 = sphi %s9767_s29, %s12792_s29   ;;  %s9695_s28 = sphi %s9765_s28, %s12794_s28   ;;  %s9691_s27 = sphi %s9763_s27, %s12793_s27  }
   0xb   : > { %12651 = sst [smem:[#allocation17_spill]] %s9784_s9  ;;  %s54_s10 = sadd.s32 1, %s9699_s29 }
   0xc   : > { %s51_s11 = ssub.s32 %s9703_s30, %s9784_s9  ;;  %p61_p0 = scmp.ne.s32.totalorder %s9699_s29, %s9695_s28 }
   0xd   : > { %p52_p1 = scmp.eq.s32.totalorder %s51_s11, 0  ;;  %p62_p2 = scmp.eq.s32.totalorder %s9703_s30, 0 }
   0xe   : > { %p9182_p4 = scmp.lt.s32.totalorder %s9703_s30, 2  ;;  %s281_s13 = sand.u32 1, %s9703_s30  }
   0xf   : > { %s9793_s12 = scalar_select %p52_p1, %s9699_s29, %s54_s10  }
  0x10   : > { %p63_p3 = por %p62_p2, %p61_p0  ;;  %s9798_s14 = sand.u32 1, %s9699_s29  }
  0x11   : > { %12652 = sst [smem:[#allocation18_spill]] %s9793_s12  ;;  %s12592_s15 = sshll.u32 %s9798_s14, 7 }
  0x12   : > { %s7577_s16 = sshll.u32 %s9703_s30, 6  ;;  %s12653_s1 = sld [smem:[#allocation42_spill]] }
  0x13   : > { %s285_s20 = scalar_lea.vmem [#allocation6], %s12592_s15  ;;  %p9811_p5 = pnand %p9182_p4, %p63_p3 }
  0x14   : > { %s291_s21 = sshll.u32 %s285_s20, 4  ;;  %s9815_s23 = scalar_lea.sflag [#allocation7], %s281_s13  ;;  %s9809_s21 = int_to_ptr.vmem [resolvable:$true] %s291_s21 }
  0x15   : > { %s12654_s22 = scalar_select %p9811_p5, 1, 0 }
  0x16   : > { %p9821_p7 = pneg %p9811_p5 }
  0x18   : > { %s9805_s19 = scalar_lea.hbm %s12653_s1, %s7577_s16  ;;  %s9518_s11 = scalar_lea.hbm %s12653_s1, 4096 }
  0x19   : > { %s9513_s24 = scalar_lea.hbm %s9805_s19, 2048  ;;  %p9519_p10 = scmp.lt.u32.totalorder %s9805_s19, %s12653_s1 }
  0x1a   : > { %p9514_p6 = scmp.ne.s32.totalorder %s9805_s19, %s9513_s24  ;;  %p9520_p11 = scmp.lt.u32.totalorder %s9518_s11, %s9513_s24 }
  0x1b   : > { %s12655_s25 = scalar_select %p9821_p7, 1, 0 }
  0x1c   : > { %p9516_p8 = pnand %p9821_p7, %p9514_p6  ;;  %p9521_p12 = por %p9520_p11, %p9519_p10 }
  0x1d   : > { %p9522_p13 = scmp.lt.u32.totalorder %s9513_s24, %s9805_s19 }
  0x1e   : > { %p9517_p9 = pneg %p9516_p8 }
  0x1f   : > { %p9523_p0 = por %p9522_p13, %p9521_p12 }
  0x21   : > { %p9524_p1 = pnand %p9523_p0, %p9517_p9 }
  0x23   : > { %9527 = shalt.err (!%p9524_p1)
}
  0x24   : > { %s9528_s13 = scalar_lea.vmem %s9809_s21, 2048  ;;  %s9705_s18 = smov [#allocation6]  }
  0x25   : > { %p9529_p2 = scmp.ne.s32.totalorder %s9809_s21, %s9528_s13  ;;  %s9533_s20 = sshll.u32 %s9705_s18, 4  ;;  %s9534_s20 = int_to_ptr.vmem [resolvable:$false] %s9533_s20 }
  0x26   : > { %s9535_s26 = scalar_lea.vmem %s9534_s20, 4096  ;;  %p9536_p6 = scmp.lt.s32.totalorder %s9809_s21, %s9534_s20 }
  0x27   : > { %p9531_p3 = pnand %p9529_p2, %p9821_p7  ;;  %p9537_p8 = scmp.lt.s32.totalorder %s9535_s26, %s9528_s13 }
  0x29   : > { %p9532_p4 = pneg %p9531_p3  ;;  %p9538_p10 = por %p9537_p8, %p9536_p6 }
  0x2b   : > { %p9539_p11 = pnand %p9538_p10, %p9532_p4 }
  0x2d   : > { %9542 = shalt.err (!%p9539_p11)
}
  0x2e   : > { %s12595_s24 = smov 128   ;;  %s12593_s10 = smov 64  }
  0x2f   : > { %s12594_s11 = smov 4   ;;  %s9849_s16 = sadd.s32 4294967295, %s9703_s30  }
  0x30   : > { %9174 = dma.hbm_to_vmem [thread:$0]  (!%p9811_p5), %s9805_s19, 2048, %s9809_s21, %s9815_s23, %s12595_s24, %s12593_s10, %s12594_s11  }
  0x31   : > { %p67_p9 = scmp.ne.s32.totalorder %s9695_s28, %s9691_s27  ;;  %p12600_p12 = scmp.eq.s32.totalorder %s9849_s16, 0 }
  0x32   : > { %p7573_p13 = scmp.ge.s32.totalorder %s9703_s30, 1  ;;  %p255_p0 = scmp.lt.s32.totalorder %s9703_s30, 3 }
  0x33   : > { %p9858_p1 = por %p12600_p12, %p67_p9  ;;  %s9709_s19 = smov [#allocation3]  }
  0x34   : > { %p9863_p3 = pnand %p7573_p13, %p255_p0  ;;  %s267_s21 = sshll.u32 %s9709_s19, 4  ;;  %s268_s21 = int_to_ptr.vmem [resolvable:$true] %s267_s21 }
  0x35   : > { %s12656_s17 = scalar_select %p9858_p1, 1, 0 }
  0x36   : > { %s12657_s13 = scalar_select %p9863_p3, 1, 0 }
  0x37   : > { %p9167_p4 = pneg %p9863_p3  ;;  %s9150_s27 = smul.u32 576, %s9798_s14 }
  0x38   : > { %s9151_s20 = smul.u32 9216, %s9703_s30  ;;  %s9543_s19 = scalar_lea.hbm %s12583_s0, 4096 }
  0x39   : > { %p9872_p6 = pnand %p9167_p4, %p12600_p12  ;;  %p9544_p8 = scmp.ne.s32.totalorder %s12583_s0, %s9543_s19 }
  0x3a   : > { %s9880_s10 = scalar_lea.hbm %s12587_s4, %s9151_s20  ;;  %p9550_p13 = scmp.lt.u32.totalorder %s9543_s19, %s12583_s0 }
  0x3b   : > { %p9545_p10 = pneg %p9872_p6 }
  0x3d   : > { %p9546_p11 = pnand %p9545_p10, %p9544_p8 }
  0x3f   : > { %p9547_p9 = pneg %p9546_p11 }
  0x41   : > { %p9552_p0 = pnand %p9550_p13, %p9547_p9 }
  0x43   : > { %9555 = shalt.err (!%p9552_p0)
}
  0x44   : > { %s9556_s15 = scalar_lea.vmem %s268_s21, 4096  ;;  %p9564_p1 = scmp.lt.s32.totalorder %s268_s21, %s268_s21 }
  0x45   : > { %p9557_p4 = scmp.ne.s32.totalorder %s268_s21, %s9556_s15  ;;  %p9565_p3 = scmp.lt.s32.totalorder %s9556_s15, %s9556_s15 }
  0x47   : > { %p9559_p2 = pnand %p9557_p4, %p9545_p10  ;;  %p9566_p5 = por %p9565_p3, %p9564_p1 }
  0x49   : > { %p9560_p12 = pneg %p9559_p2 }
  0x4b   : > { %p9567_p7 = pnand %p9566_p5, %p9560_p12 }
  0x4d   : > { %9570 = shalt.err (!%p9567_p7)
}
  0x4e   : > { %s12608_s1 = smov 8   ;;  %s12659_s12 = smov 128  }
  0x4f   : > { %9170 = dma.hbm_to_vmem [thread:$0]  (!%p9872_p6), %s12583_s0, 4096, %s268_s21, [#allocation4], %s12659_s12, %s12659_s12, %s12608_s1  }
  0x50   : > { %s317_s9 = scalar_lea.vmem [#allocation8], %s9150_s27  ;;  %s8085_s20 = sshll.u32 %s9703_s30, 11 }
  0x51   : > { %s324_s11 = sshll.u32 %s317_s9, 4  ;;  %s9907_s19 = scalar_lea.hbm %s12590_s7, %s8085_s20  ;;  %s9902_s11 = int_to_ptr.vmem [resolvable:$true] %s324_s11 }
  0x52   : > { %s9571_s15 = scalar_lea.hbm %s9880_s10, 9216  ;;  %p12660_p7 = scmp.ne.s32.totalorder %s12655_s25, 0 }
  0x53   : > { %p9572_p5 = scmp.ne.s32.totalorder %s9880_s10, %s9571_s15  ;;  %s9576_s8 = scalar_lea.hbm %s12587_s4, 18432 }
  0x54   : > { %p9577_p2 = scmp.lt.u32.totalorder %s9880_s10, %s12587_s4  ;;  %p9578_p3 = scmp.lt.u32.totalorder %s9576_s8, %s9571_s15 }
  0x55   : > { %p9574_p12 = pnand %p9572_p5, %p12660_p7  ;;  %p9580_p8 = scmp.lt.u32.totalorder %s9571_s15, %s9880_s10 }
  0x56   : > { %p9579_p6 = por %p9578_p3, %p9577_p2 }
  0x57   : > { %p9575_p1 = pneg %p9574_p12 }
  0x58   : > { %p9581_p10 = por %p9580_p8, %p9579_p6 }
  0x5a   : > { %p9582_p11 = pnand %p9581_p10, %p9575_p1 }
  0x5c   : > { %9585 = shalt.err (!%p9582_p11)
}
  0x5d   : > { %s9586_s30 = scalar_lea.vmem %s9902_s11, 9216  ;;  %s9711_s9 = smov [#allocation8]  }
  0x5e   : > { %p9587_p9 = scmp.ne.s32.totalorder %s9902_s11, %s9586_s30  ;;  %s9591_s20 = sshll.u32 %s9711_s9, 4  ;;  %s9592_s20 = int_to_ptr.vmem [resolvable:$false] %s9591_s20 }
  0x5f   : > { %s9593_s26 = scalar_lea.vmem %s9592_s20, 18432  ;;  %p9594_p4 = scmp.lt.s32.totalorder %s9902_s11, %s9592_s20 }
  0x60   : > { %p9589_p13 = pnand %p9587_p9, %p12660_p7  ;;  %p9595_p5 = scmp.lt.s32.totalorder %s9593_s26, %s9586_s30 }
  0x62   : > { %p9590_p0 = pneg %p9589_p13  ;;  %p9596_p12 = por %p9595_p5, %p9594_p4 }
  0x64   : > { %p9597_p2 = pnand %p9596_p12, %p9590_p0 }
  0x66   : > { %9600 = shalt.err (!%p9597_p2)
}
  0x67   : > { %p12661_p1 = scmp.ne.s32.totalorder %s12654_s22, 0  ;;  %s12662_s8 = smov 4  }
  0x68   : > { %s12663_s18 = smov 64   ;;  %s12664_s15 = sshll.u32 %s9798_s14, 7 }
  0x69   : > { %9177 = dma.hbm_to_vmem [thread:$0]  (!%p12661_p1), %s9880_s10, 9216, %s9902_s11, %s9815_s23, %s12663_s18, %s12663_s18, %s12662_s8  }
  0x6a   : > { %s350_s24 = scalar_lea.vmem [#allocation9], %s12664_s15  ;;  %s347_s21 = scalar_lea.sflag [#allocation10], %s9798_s14 }
  0x6b   : > { %s358_s29 = sshll.u32 %s350_s24, 4  ;;  %s9601_s27 = scalar_lea.hbm %s9907_s19, 2048  ;;  %s9936_s29 = int_to_ptr.vmem [resolvable:$true] %s358_s29 }
  0x6c   : > { %p9602_p3 = scmp.ne.s32.totalorder %s9907_s19, %s9601_s27  ;;  %s9606_s20 = scalar_lea.hbm %s12590_s7, 4096 }
  0x6d   : > { %p9607_p10 = scmp.lt.u32.totalorder %s9907_s19, %s12590_s7  ;;  %p9608_p11 = scmp.lt.u32.totalorder %s9606_s20, %s9601_s27 }
  0x6e   : > { %p9604_p6 = pnand %p9602_p3, %p12660_p7  ;;  %p9610_p13 = scmp.lt.u32.totalorder %s9601_s27, %s9907_s19 }
  0x6f   : > { %p9609_p9 = por %p9608_p11, %p9607_p10 }
  0x70   : > { %p9605_p8 = pneg %p9604_p6 }
  0x71   : > { %p9611_p0 = por %p9610_p13, %p9609_p9 }
  0x73   : > { %p9612_p4 = pnand %p9611_p0, %p9605_p8 }
  0x75   : > { %9615 = shalt.err (!%p9612_p4)
}
  0x76   : > { %s9616_s23 = scalar_lea.vmem %s9936_s29, 2048  ;;  %s9712_s10 = smov [#allocation9]  }
  0x77   : > { %p9617_p5 = scmp.ne.s32.totalorder %s9936_s29, %s9616_s23  ;;  %s9621_s11 = sshll.u32 %s9712_s10, 4  ;;  %s9622_s11 = int_to_ptr.vmem [resolvable:$false] %s9621_s11 }
  0x78   : > { %s9623_s1 = scalar_lea.vmem %s9622_s11, 4096  ;;  %p9624_p3 = scmp.lt.s32.totalorder %s9936_s29, %s9622_s11 }
  0x79   : > { %p9619_p12 = pnand %p9617_p5, %p12660_p7  ;;  %p9625_p6 = scmp.lt.s32.totalorder %s9623_s1, %s9616_s23 }
  0x7b   : > { %p9620_p2 = pneg %p9619_p12  ;;  %p9626_p10 = por %p9625_p6, %p9624_p3 }
  0x7d   : > { %p9627_p11 = pnand %p9626_p10, %p9620_p2 }
  0x7f   : > { %9630 = shalt.err (!%p9627_p11)
}
  0x80   : > { %s12665_s8 = smov 8   ;;  %p12666_p7 = scmp.ne.s32.totalorder %s12657_s13, 0 }
  0x81   : > { %9180 = dma.hbm_to_vmem [thread:$0]  (!%p12661_p1), %s9907_s19, 2048, %s9936_s29, %s347_s21, %s12659_s12, %s12659_s12, %s12665_s8  }
  0x82   : > { %370 = sbr.rel (%p12666_p7) target bundleno = 1773 (0x6ed), region = 52 }
  0x89   : > { %p12667_p8 = scmp.eq.s32.totalorder %s9849_s16, 0 }
  0x8b   : > { %9674 = dma.done.wait (%p12667_p8), [#allocation4], 4096   ;;  %p12668_p9 = pmov %p12667_p8 }
  0x8c   : > { %s376_s22 = sand.u32 1, %s9849_s16   ;;  %s378_s25 = sand.u32 1, %s9695_s28  }
  0x8d   : > { %9676 = vsyncadd (%p12668_p9), [#allocation4], 4294963200  ;;  %s7585_s18 = sshll.u32 %s378_s25, 7  ;;  %s377_s15 = scalar_lea.sflag [#allocation7], %s376_s22 }
  0x8e   : > { %s9973_s14 = scalar_lea.vmem [#allocation6], %s7585_s18  ;;  %p12669_p13 = scmp.ne.s32.totalorder %s12656_s17, 0 }
  0x90   : > { %9678 = dma.done.wait (%p12669_p13), %s377_s15, 11264  }
  0x91   : > { %9680 = vsyncadd (%p12669_p13), %s377_s15, 4294956032  ;;  %s9152_s13 = smul.u32 576, %s378_s25  ;;  %s395_s19 = scalar_lea.sflag [#allocation10], %s378_s25 }
  0x92   : > { %s9981_s24 = scalar_lea.vmem [#allocation9], %s7585_s18 }
  0x93   : > { %s9979_s12 = scalar_lea.vmem [#allocation8], %s9152_s13 }
  0x94   : > { %9682 = dma.done.wait (%p12669_p13), %s395_s19, 2048  }
  0x95   : > { %9684 = vsyncadd (%p12669_p13), %s395_s19, 4294965248  ;;  %v9228_v0 = vld [vmem:[%s9973_s14 + $0x40] sm:$0xff]   ;;  %v9230_v2 = vld [vmem:[%s9973_s14 + $0x48] sm:$0xff]   ;;  %p448_p1 = scmp.lt.s32.totalorder %s9849_s16, 1  ;;  %p12671_p0 = scmp.ne.s32.totalorder %s9849_s16, 0 }
  0x96   : > { %v9229_v1 = vld [vmem:[%s9973_s14] sm:$0xff]   ;;  %8118 = vmatprep.subr.bf16.mxu0 %v9228_v0  ;;  %v9231_v3 = vld [vmem:[%s9973_s14 + $0x8] sm:$0xff]   ;;  %v9232_v4 = vld [vmem:[%s9973_s14 + $0x50] sm:$0xff]  }
  0x97   : > { %8119 = vmatpush3.bf16.msra.mxu0 %v9229_v1  ;;  %v9233_v5 = vld [vmem:[%s9973_s14 + $0x10] sm:$0xff]   ;;  %v9234_v6 = vld [vmem:[%s9973_s14 + $0x58] sm:$0xff]   ;;  %v9236_v8 = vld [vmem:[%s9973_s14 + $0x60] sm:$0xff]   ;;  %s10005_s17 = scalar_select %p448_p1, %s9849_s16, 1 }
  0x98   : > { %8120 = vmatprep.subr.bf16.mxu0 %v9230_v2  ;;  %v9235_v7 = vld [vmem:[%s9973_s14 + $0x18] sm:$0xff]   ;;  %v9237_v9 = vld [vmem:[%s9973_s14 + $0x20] sm:$0xff]   ;;  %v9238_v10 = vld [vmem:[%s9973_s14 + $0x68] sm:$0xff]  }
  0x99   : > { %v9246_v11 = vld [vmem:[#allocation3 + $0x4] ss:$8 sps:$4 sm:$0xff]   ;;  %v9240_v13 = vld [vmem:[%s9973_s14 + $0x70] sm:$0xff]   ;;  %v9242_v15 = vld [vmem:[%s9973_s14 + $0x78] sm:$0xff]   ;;  %s456_s27 = scalar_lea.vmem %s12588_s5, %s10005_s17  ;;  %s459_s20 = scalar_lea.vmem %s12589_s6, %s10005_s17 }
  0x9a   : > { %v9239_v12 = vld [vmem:[%s9973_s14 + $0x28] sm:$0xff]   ;;  %814 = vmatprep.mubr.bf16.mxu0 %v9246_v11  ;;  %v9241_v14 = vld [vmem:[%s9973_s14 + $0x30] sm:$0xff]   ;;  %v9243_v16 = vld [vmem:[%s9973_s14 + $0x38] sm:$0xff]   ;;  %s450_s10 = scalar_lea.vmem %s12585_s2, %s10005_s17  ;;  %s453_s8 = scalar_lea.vmem %s12586_s3, %s10005_s17 }
  0x9b   : > { %8121 = vmatpush3.bf16.msra.mxu0 %v9231_v3  ;;  %v9244_v17 = vld [vmem:[#allocation3] ss:$8 sps:$4 sm:$0xff]   ;;  %v9247_v18 = vld [vmem:[#allocation3 + $0x14] ss:$8 sps:$4 sm:$0xff]   ;;  %v9249_v19 = vld [vmem:[#allocation3 + $0x10] ss:$8 sps:$4 sm:$0xff]  }
  0x9c   : > { %8122 = vmatprep.subr.bf16.mxu0 %v9232_v4  ;;  %v9250_v20 = vld [vmem:[#allocation3 + $0x24] ss:$8 sps:$4 sm:$0xff]   ;;  %v9252_v21 = vld [vmem:[#allocation3 + $0x20] ss:$8 sps:$4 sm:$0xff]   ;;  %v9253_v22 = vld [vmem:[#allocation3 + $0x34] ss:$8 sps:$4 sm:$0xff]  }
  0x9d   : > { %v9255_v23 = vld [vmem:[#allocation3 + $0x30] ss:$8 sps:$4 sm:$0xff]   ;;  %v9256_v24 = vld [vmem:[#allocation3 + $0x44] ss:$8 sps:$4 sm:$0xff]   ;;  %v9258_v25 = vld [vmem:[#allocation3 + $0x40] ss:$8 sps:$4 sm:$0xff]  }
  0x9e   : > { %v9259_v26 = vld [vmem:[#allocation3 + $0x54] ss:$8 sps:$4 sm:$0xff]   ;;  %v9261_v27 = vld [vmem:[#allocation3 + $0x50] ss:$8 sps:$4 sm:$0xff]   ;;  %v9262_v28 = vld [vmem:[#allocation3 + $0x64] ss:$8 sps:$4 sm:$0xff]  }
  0x9f   : > { %8123 = vmatpush3.bf16.msra.mxu0 %v9233_v5  ;;  %v9264_v29 = vld [vmem:[#allocation3 + $0x60] ss:$8 sps:$4 sm:$0xff]   ;;  %v9265_v30 = vld [vmem:[#allocation3 + $0x74] ss:$8 sps:$4 sm:$0xff]   ;;  %v9267_v31 = vld [vmem:[#allocation3 + $0x70] ss:$8 sps:$4 sm:$0xff]  }
  0xa0   : > { %8124 = vmatprep.subr.bf16.mxu0 %v9234_v6  ;;  %v9268_v32 = vld [vmem:[#allocation3 + $0x84] ss:$8 sps:$4 sm:$0xff]   ;;  %v9270_v33 = vld [vmem:[#allocation3 + $0x80] ss:$8 sps:$4 sm:$0xff]   ;;  %v9271_v34 = vld [vmem:[#allocation3 + $0x94] ss:$8 sps:$4 sm:$0xff]  }
  0xa1   : > { %v9273_v35 = vld [vmem:[#allocation3 + $0x90] ss:$8 sps:$4 sm:$0xff]   ;;  %v9274_v36 = vld [vmem:[#allocation3 + $0xa4] ss:$8 sps:$4 sm:$0xff]   ;;  %v9276_v37 = vld [vmem:[#allocation3 + $0xa0] ss:$8 sps:$4 sm:$0xff]  }
  0xa2   : > { %v9277_v38 = vld [vmem:[#allocation3 + $0xb4] ss:$8 sps:$4 sm:$0xff]   ;;  %v9279_v39 = vld [vmem:[#allocation3 + $0xb0] ss:$8 sps:$4 sm:$0xff]   ;;  %v9280_v40 = vld [vmem:[#allocation3 + $0xc4] ss:$8 sps:$4 sm:$0xff]  }
  0xa3   : > { %8125 = vmatpush3.bf16.msra.mxu0 %v9235_v7  ;;  %v9282_v41 = vld [vmem:[#allocation3 + $0xc0] ss:$8 sps:$4 sm:$0xff]   ;;  %v9283_v42 = vld [vmem:[#allocation3 + $0xd4] ss:$8 sps:$4 sm:$0xff]   ;;  %v9285_v43 = vld [vmem:[#allocation3 + $0xd0] ss:$8 sps:$4 sm:$0xff]  }
  0xa4   : > { %8126 = vmatprep.subr.bf16.mxu0 %v9236_v8  ;;  %v9286_v44 = vld [vmem:[#allocation3 + $0xe4] ss:$8 sps:$4 sm:$0xff]   ;;  %v9288_v45 = vld [vmem:[#allocation3 + $0xe0] ss:$8 sps:$4 sm:$0xff]   ;;  %v9289_v46 = vld [vmem:[#allocation3 + $0xf4] ss:$8 sps:$4 sm:$0xff]  }
  0xa5   : > { %v9291_v47 = vld [vmem:[#allocation3 + $0xf0] ss:$8 sps:$4 sm:$0xff]  }
  0xa7   : > { %8127 = vmatpush3.bf16.msra.mxu0 %v9237_v9 }
  0xa8   : > { %8128 = vmatprep.subr.bf16.mxu0 %v9238_v10 }
  0xab   : > { %8129 = vmatpush3.bf16.msra.mxu0 %v9239_v12 }
  0xac   : > { %8130 = vmatprep.subr.bf16.mxu0 %v9240_v13 }
  0xaf   : > { %8131 = vmatpush3.bf16.msra.mxu0 %v9241_v14 }
  0xb0   : > { %8132 = vmatprep.subr.bf16.mxu0 %v9242_v15 }
  0xb3   : > { %8133 = vmatpush3.bf16.msra.mxu0 %v9243_v16 }
  0xb6   : > { %815 = vmatmul.mubr.bf16.vlgmr.msra.gmra.mrb[0].mxu0 %v9244_v17 }
  0xb7   : > { %822 = vmatprep.mubr.bf16.mxu0 %v9247_v18 }
  0xbe   : > { %823 = vmatmul.mubr.bf16.gmra.mrb[4].mxu0 %v9249_v19 }
  0xbf   : > { %830 = vmatprep.mubr.bf16.mxu0 %v9250_v20 }
  0xc6   : > { %831 = vmatmul.mubr.bf16.gmra.mrb[8].mxu0 %v9252_v21 }
  0xc7   : > { %838 = vmatprep.mubr.bf16.mxu0 %v9253_v22 }
  0xce   : > { %839 = vmatmul.mubr.bf16.gmra.mrb[12].mxu0 %v9255_v23 }
  0xcf   : > { %846 = vmatprep.mubr.bf16.mxu0 %v9256_v24 }
  0xd6   : > { %847 = vmatmul.mubr.bf16.gmra.mrb[16].mxu0 %v9258_v25 }
  0xd7   : > { %854 = vmatprep.mubr.bf16.mxu0 %v9259_v26 }
  0xde   : > { %855 = vmatmul.mubr.bf16.gmra.mrb[20].mxu0 %v9261_v27 }
  0xdf   : > { %862 = vmatprep.mubr.bf16.mxu0 %v9262_v28 }
  0xe6   : > { %863 = vmatmul.mubr.bf16.gmra.mrb[24].mxu0 %v9264_v29 }
  0xe7   : > { %870 = vmatprep.mubr.bf16.mxu0 %v9265_v30 }
  0xee   : > { %871 = vmatmul.mubr.bf16.gmra.mrb[28].mxu0 %v9267_v31 }
  0xef   : > { %878 = vmatprep.mubr.bf16.mxu0 %v9268_v32 }
  0xf6   : > { %879 = vmatmul.mubr.bf16.gmra.mrb[32].mxu0 %v9270_v33 }
  0xf7   : > { %886 = vmatprep.mubr.bf16.mxu0 %v9271_v34 }
  0xfe   : > { %887 = vmatmul.mubr.bf16.gmra.mrb[36].mxu0 %v9273_v35 }
  0xff   : > { %894 = vmatprep.mubr.bf16.mxu0 %v9274_v36 }
 0x106   : > { %895 = vmatmul.mubr.bf16.gmra.mrb[40].mxu0 %v9276_v37 }
 0x107   : > { %902 = vmatprep.mubr.bf16.mxu0 %v9277_v38 }
 0x10e   : > { %903 = vmatmul.mubr.bf16.gmra.mrb[44].mxu0 %v9279_v39 }
 0x10f   : > { %910 = vmatprep.mubr.bf16.mxu0 %v9280_v40 }
 0x116   : > { %911 = vmatmul.mubr.bf16.gmra.mrb[48].mxu0 %v9282_v41 }
 0x117   : > { %918 = vmatprep.mubr.bf16.mxu0 %v9283_v42 }
 0x11e   : > { %919 = vmatmul.mubr.bf16.gmra.mrb[52].mxu0 %v9285_v43 }
 0x11f   : > { %926 = vmatprep.mubr.bf16.mxu0 %v9286_v44 }
 0x126   : > { %927 = vmatmul.mubr.bf16.gmra.mrb[56].mxu0 %v9288_v45 }
 0x127   : > { %934 = vmatprep.mubr.bf16.mxu0 %v9289_v46 }
 0x12e   : > { %935 = vmatmul.mubr.bf16.gmra.mrb[60].mxu0 %v9291_v47 }
 0x189   : > { %v8134_v48 = vpop.f32.mrb[0].mxu0 }
 0x18a   : > { %v8135_v49 = vpop.f32.mrb[1].mxu0 }
 0x18b   : > { %v10007_v50 = vadd.f32 %v8135_v49, %v8134_v48  ;;  %v8137_v51 = vpop.f32.mrb[2].mxu0 }
 0x18c   : > { %v8138_v52 = vpop.f32.mrb[3].mxu0 }
 0x18d   : > { %v10017_v53 = vadd.f32 %v8138_v52, %v8137_v51  ;;  %v982_v5 = vmul.f32 %v10007_v50, %v10007_v50 }
 0x18f   : > { %v983_v2 = vmul.f32 %v10017_v53, %v10017_v53  ;;  %v945_v6 = vadd.f32 %v10017_v53, %v10007_v50 }
 0x191   : > { %v8140_v54 = vpop.f32.mrb[4].mxu0  ;;  %v1014_v11 = vadd.f32 %v983_v2, %v982_v5 }
 0x192   : > { %v8141_v55 = vpop.f32.mrb[5].mxu0 }
 0x193   : > { %v10019_v56 = vadd.f32 %v8141_v55, %v8140_v54  ;;  %v8143_v57 = vpop.f32.mrb[6].mxu0 }
 0x194   : > { %v8144_v58 = vpop.f32.mrb[7].mxu0 }
 0x195   : > { %v10021_v59 = vadd.f32 %v8144_v58, %v8143_v57  ;;  %v984_v7 = vmul.f32 %v10019_v56, %v10019_v56  ;;  %v946_v12 = vadd.f32 %v10019_v56, %v945_v6 }
 0x197   : > { %v1015_v14 = vadd.f32 %v1014_v11, %v984_v7  ;;  %v985_v15 = vmul.f32 %v10021_v59, %v10021_v59  ;;  %v947_v16 = vadd.f32 %v10021_v59, %v946_v12 }
 0x199   : > { %v8146_v60 = vpop.f32.mrb[8].mxu0  ;;  %v1016_v20 = vadd.f32 %v1015_v14, %v985_v15 }
 0x19a   : > { %v8147_v61 = vpop.f32.mrb[9].mxu0 }
 0x19b   : > { %v10023_v62 = vadd.f32 %v8147_v61, %v8146_v60  ;;  %v8149_v63 = vpop.f32.mrb[10].mxu0 }
 0x19c   : > { %v8150_v0 = vpop.f32.mrb[11].mxu0 }
 0x19d   : > { %v10025_v1 = vadd.f32 %v8150_v0, %v8149_v63  ;;  %v986_v17 = vmul.f32 %v10023_v62, %v10023_v62  ;;  %v948_v21 = vadd.f32 %v10023_v62, %v947_v16 }
 0x19f   : > { %v1017_v25 = vadd.f32 %v1016_v20, %v986_v17  ;;  %v987_v26 = vmul.f32 %v10025_v1, %v10025_v1  ;;  %v949_v28 = vadd.f32 %v10025_v1, %v948_v21 }
 0x1a1   : > { %v8152_v3 = vpop.f32.mrb[12].mxu0  ;;  %v1018_v30 = vadd.f32 %v1017_v25, %v987_v26 }
 0x1a2   : > { %v8153_v4 = vpop.f32.mrb[13].mxu0 }
 0x1a3   : > { %v10035_v8 = vadd.f32 %v8153_v4, %v8152_v3  ;;  %v8155_v9 = vpop.f32.mrb[14].mxu0 }
 0x1a4   : > { %v8156_v10 = vpop.f32.mrb[15].mxu0 }
 0x1a5   : > { %v10038_v13 = vadd.f32 %v8156_v10, %v8155_v9  ;;  %v988_v29 = vmul.f32 %v10035_v8, %v10035_v8  ;;  %v950_v31 = vadd.f32 %v10035_v8, %v949_v28 }
 0x1a7   : > { %v1019_v34 = vadd.f32 %v1018_v30, %v988_v29  ;;  %v989_v35 = vmul.f32 %v10038_v13, %v10038_v13  ;;  %v951_v39 = vadd.f32 %v10038_v13, %v950_v31 }
 0x1a9   : > { %v8158_v18 = vpop.f32.mrb[16].mxu0  ;;  %v1020_v42 = vadd.f32 %v1019_v34, %v989_v35 }
 0x1aa   : > { %v8159_v19 = vpop.f32.mrb[17].mxu0 }
 0x1ab   : > { %v10046_v22 = vadd.f32 %v8159_v19, %v8158_v18  ;;  %v8161_v23 = vpop.f32.mrb[18].mxu0 }
 0x1ac   : > { %v8162_v24 = vpop.f32.mrb[19].mxu0 }
 0x1ad   : > { %v10050_v27 = vadd.f32 %v8162_v24, %v8161_v23  ;;  %v990_v40 = vmul.f32 %v10046_v22, %v10046_v22  ;;  %v952_v43 = vadd.f32 %v10046_v22, %v951_v39 }
 0x1af   : > { %v1021_v44 = vadd.f32 %v1020_v42, %v990_v40  ;;  %v991_v45 = vmul.f32 %v10050_v27, %v10050_v27  ;;  %v953_v48 = vadd.f32 %v10050_v27, %v952_v43 }
 0x1b1   : > { %v8164_v32 = vpop.f32.mrb[20].mxu0  ;;  %v1022_v55 = vadd.f32 %v1021_v44, %v991_v45 }
 0x1b2   : > { %v8165_v33 = vpop.f32.mrb[21].mxu0 }
 0x1b3   : > { %v10058_v36 = vadd.f32 %v8165_v33, %v8164_v32  ;;  %v8167_v37 = vpop.f32.mrb[22].mxu0 }
 0x1b4   : > { %v8168_v38 = vpop.f32.mrb[23].mxu0 }
 0x1b5   : > { %v10063_v41 = vadd.f32 %v8168_v38, %v8167_v37  ;;  %v992_v49 = vmul.f32 %v10058_v36, %v10058_v36  ;;  %v954_v57 = vadd.f32 %v10058_v36, %v953_v48 }
 0x1b7   : > { %v1023_v60 = vadd.f32 %v1022_v55, %v992_v49  ;;  %v993_v61 = vmul.f32 %v10063_v41, %v10063_v41  ;;  %v955_v63 = vadd.f32 %v10063_v41, %v954_v57 }
 0x1b9   : > { %v8170_v46 = vpop.f32.mrb[24].mxu0  ;;  %v1024_v4 = vadd.f32 %v1023_v60, %v993_v61 }
 0x1ba   : > { %v8171_v47 = vpop.f32.mrb[25].mxu0 }
 0x1bb   : > { %v10071_v51 = vadd.f32 %v8171_v47, %v8170_v46  ;;  %v8173_v52 = vpop.f32.mrb[26].mxu0 }
 0x1bc   : > { %v8174_v54 = vpop.f32.mrb[27].mxu0 }
 0x1bd   : > { %v10074_v58 = vadd.f32 %v8174_v54, %v8173_v52  ;;  %v994_v0 = vmul.f32 %v10071_v51, %v10071_v51  ;;  %v956_v5 = vadd.f32 %v10071_v51, %v955_v63 }
 0x1bf   : > { %v1025_v10 = vadd.f32 %v1024_v4, %v994_v0  ;;  %v995_v11 = vmul.f32 %v10074_v58, %v10074_v58  ;;  %v957_v14 = vadd.f32 %v10074_v58, %v956_v5 }
 0x1c1   : > { %v8176_v2 = vpop.f32.mrb[28].mxu0  ;;  %v1026_v16 = vadd.f32 %v1025_v10, %v995_v11 }
 0x1c2   : > { %v8177_v3 = vpop.f32.mrb[29].mxu0 }
 0x1c3   : > { %v10082_v6 = vadd.f32 %v8177_v3, %v8176_v2  ;;  %v8179_v7 = vpop.f32.mrb[30].mxu0 }
 0x1c4   : > { %v8180_v9 = vpop.f32.mrb[31].mxu0 }
 0x1c5   : > { %v10086_v12 = vadd.f32 %v8180_v9, %v8179_v7  ;;  %v996_v15 = vmul.f32 %v10082_v6, %v10082_v6  ;;  %v958_v17 = vadd.f32 %v10082_v6, %v957_v14 }
 0x1c7   : > { %v1027_v20 = vadd.f32 %v1026_v16, %v996_v15  ;;  %v997_v21 = vmul.f32 %v10086_v12, %v10086_v12  ;;  %v959_v26 = vadd.f32 %v10086_v12, %v958_v17 }
 0x1c9   : > { %v8182_v18 = vpop.f32.mrb[32].mxu0  ;;  %v1028_v30 = vadd.f32 %v1027_v20, %v997_v21 }
 0x1ca   : > { %v8183_v19 = vpop.f32.mrb[33].mxu0 }
 0x1cb   : > { %v10094_v23 = vadd.f32 %v8183_v19, %v8182_v18  ;;  %v8185_v24 = vpop.f32.mrb[34].mxu0 }
 0x1cc   : > { %v8186_v25 = vpop.f32.mrb[35].mxu0 }
 0x1cd   : > { %v998_v28 = vmul.f32 %v10094_v23, %v10094_v23  ;;  %v10099_v29 = vadd.f32 %v8186_v25, %v8185_v24  ;;  %v960_v31 = vadd.f32 %v10094_v23, %v959_v26 }
 0x1cf   : > { %v1029_v32 = vadd.f32 %v1028_v30, %v998_v28  ;;  %v999_v33 = vmul.f32 %v10099_v29, %v10099_v29  ;;  %v961_v37 = vadd.f32 %v10099_v29, %v960_v31 }
 0x1d1   : > { %v8188_v34 = vpop.f32.mrb[36].mxu0  ;;  %v1030_v42 = vadd.f32 %v1029_v32, %v999_v33 }
 0x1d2   : > { %v8189_v35 = vpop.f32.mrb[37].mxu0 }
 0x1d3   : > { %v10105_v38 = vadd.f32 %v8189_v35, %v8188_v34  ;;  %v8191_v39 = vpop.f32.mrb[38].mxu0 }
 0x1d4   : > { %v8192_v40 = vpop.f32.mrb[39].mxu0 }
 0x1d5   : > { %v962_v43 = vadd.f32 %v10105_v38, %v961_v37  ;;  %v1000_v44 = vmul.f32 %v10105_v38, %v10105_v38  ;;  %v10110_v45 = vadd.f32 %v8192_v40, %v8191_v39 }
 0x1d7   : > { %v1031_v46 = vadd.f32 %v1030_v42, %v1000_v44  ;;  %v963_v47 = vadd.f32 %v10110_v45, %v962_v43  ;;  %v1001_v48 = vmul.f32 %v10110_v45, %v10110_v45 }
 0x1d9   : > { %v1032_v49 = vadd.f32 %v1031_v46, %v1001_v48  ;;  %v8194_v52 = vpop.f32.mrb[40].mxu0 }
 0x1da   : > { %v8195_v54 = vpop.f32.mrb[41].mxu0 }
 0x1db   : > { %v10115_v55 = vadd.f32 %v8195_v54, %v8194_v52  ;;  %v8197_v57 = vpop.f32.mrb[42].mxu0 }
 0x1dc   : > { %v8198_v60 = vpop.f32.mrb[43].mxu0 }
 0x1dd   : > { %v964_v61 = vadd.f32 %v10115_v55, %v963_v47  ;;  %v1002_v63 = vmul.f32 %v10115_v55, %v10115_v55  ;;  %v10120_v0 = vadd.f32 %v8198_v60, %v8197_v57 }
 0x1df   : > { %v1033_v2 = vadd.f32 %v1032_v49, %v1002_v63  ;;  %v965_v3 = vadd.f32 %v10120_v0, %v964_v61  ;;  %v1003_v4 = vmul.f32 %v10120_v0, %v10120_v0 }
 0x1e1   : > { %v1034_v5 = vadd.f32 %v1033_v2, %v1003_v4  ;;  %v8200_v7 = vpop.f32.mrb[44].mxu0 }
 0x1e2   : > { %v8201_v9 = vpop.f32.mrb[45].mxu0 }
 0x1e3   : > { %v10125_v10 = vadd.f32 %v8201_v9, %v8200_v7  ;;  %v8203_v11 = vpop.f32.mrb[46].mxu0 }
 0x1e4   : > { %v8204_v14 = vpop.f32.mrb[47].mxu0 }
 0x1e5   : > { %v966_v15 = vadd.f32 %v10125_v10, %v965_v3  ;;  %v1004_v16 = vmul.f32 %v10125_v10, %v10125_v10  ;;  %v10130_v17 = vadd.f32 %v8204_v14, %v8203_v11 }
 0x1e7   : > { %v1035_v18 = vadd.f32 %v1034_v5, %v1004_v16  ;;  %v967_v19 = vadd.f32 %v10130_v17, %v966_v15  ;;  %v1005_v20 = vmul.f32 %v10130_v17, %v10130_v17 }
 0x1e9   : > { %v1036_v21 = vadd.f32 %v1035_v18, %v1005_v20  ;;  %v8206_v24 = vpop.f32.mrb[48].mxu0 }
 0x1ea   : > { %v8207_v25 = vpop.f32.mrb[49].mxu0 }
 0x1eb   : > { %v10135_v26 = vadd.f32 %v8207_v25, %v8206_v24  ;;  %v8209_v28 = vpop.f32.mrb[50].mxu0 }
 0x1ec   : > { %v8210_v30 = vpop.f32.mrb[51].mxu0 }
 0x1ed   : > { %v968_v31 = vadd.f32 %v10135_v26, %v967_v19  ;;  %v1006_v32 = vmul.f32 %v10135_v26, %v10135_v26  ;;  %v10140_v33 = vadd.f32 %v8210_v30, %v8209_v28 }
 0x1ef   : > { %v1037_v34 = vadd.f32 %v1036_v21, %v1006_v32  ;;  %v969_v35 = vadd.f32 %v10140_v33, %v968_v31  ;;  %v1007_v37 = vmul.f32 %v10140_v33, %v10140_v33 }
 0x1f1   : > { %v1038_v39 = vadd.f32 %v1037_v34, %v1007_v37  ;;  %v8212_v40 = vpop.f32.mrb[52].mxu0 }
 0x1f2   : > { %v8213_v42 = vpop.f32.mrb[53].mxu0 }
 0x1f3   : > { %v10145_v43 = vadd.f32 %v8213_v42, %v8212_v40  ;;  %v8215_v44 = vpop.f32.mrb[54].mxu0 }
 0x1f4   : > { %v8216_v46 = vpop.f32.mrb[55].mxu0 }
 0x1f5   : > { %v970_v47 = vadd.f32 %v10145_v43, %v969_v35  ;;  %v1008_v48 = vmul.f32 %v10145_v43, %v10145_v43  ;;  %v10150_v49 = vadd.f32 %v8216_v46, %v8215_v44 }
 0x1f7   : > { %v1039_v52 = vadd.f32 %v1038_v39, %v1008_v48  ;;  %v971_v54 = vadd.f32 %v10150_v49, %v970_v47  ;;  %v1009_v57 = vmul.f32 %v10150_v49, %v10150_v49 }
 0x1f9   : > { %v1040_v60 = vadd.f32 %v1039_v52, %v1009_v57  ;;  %v8218_v61 = vpop.f32.mrb[56].mxu0 }
 0x1fa   : > { %v8219_v63 = vpop.f32.mrb[57].mxu0 }
 0x1fb   : > { %v10155_v2 = vadd.f32 %v8219_v63, %v8218_v61  ;;  %v8221_v3 = vpop.f32.mrb[58].mxu0 }
 0x1fc   : > { %v8222_v4 = vpop.f32.mrb[59].mxu0 }
 0x1fd   : > { %v972_v5 = vadd.f32 %v10155_v2, %v971_v54  ;;  %v1010_v7 = vmul.f32 %v10155_v2, %v10155_v2  ;;  %v10160_v9 = vadd.f32 %v8222_v4, %v8221_v3 }
 0x1ff   : > { %v1041_v11 = vadd.f32 %v1040_v60, %v1010_v7  ;;  %v973_v14 = vadd.f32 %v10160_v9, %v972_v5  ;;  %v1011_v15 = vmul.f32 %v10160_v9, %v10160_v9 }
 0x201   : > { %v1042_v16 = vadd.f32 %v1041_v11, %v1011_v15  ;;  %v8224_v18 = vpop.f32.mrb[60].mxu0 }
 0x202   : > { %v8225_v19 = vpop.f32.mrb[61].mxu0 }
 0x203   : > { %v10165_v20 = vadd.f32 %v8225_v19, %v8224_v18  ;;  %v8227_v21 = vpop.f32.mrb[62].mxu0 }
 0x204   : > { %v8228_v24 = vpop.f32.mrb[63].mxu0 }
 0x205   : > { %v974_v25 = vadd.f32 %v10165_v20, %v973_v14  ;;  %v1012_v28 = vmul.f32 %v10165_v20, %v10165_v20  ;;  %v10170_v30 = vadd.f32 %v8228_v24, %v8227_v21 }
 0x207   : > { %v1043_v31 = vadd.f32 %v1042_v16, %v1012_v28  ;;  %v975_v32 = vadd.f32 %v10170_v30, %v974_v25  ;;  %v1013_v34 = vmul.f32 %v10170_v30, %v10170_v30 }
 0x209   : > { %v976_v35 = vrot.slane %v975_v32, 4  ;;  %v1044_v37 = vadd.f32 %v1043_v31, %v1013_v34 }
 0x20b   : > { %v977_v39 = vadd.f32 %v976_v35, %v975_v32  ;;  %v1045_v40 = vrot.slane %v1044_v37, 4 }
 0x20d   : > { %v978_v42 = vrot.slane %v977_v39, 2  ;;  %v1046_v44 = vadd.f32 %v1045_v40, %v1044_v37 }
 0x20f   : > { %v979_v46 = vadd.f32 %v978_v42, %v977_v39  ;;  %v1047_v47 = vrot.slane %v1046_v44, 2 }
 0x211   : > { %v980_v48 = vrot.slane %v979_v46, 1  ;;  %v1048_v52 = vadd.f32 %v1047_v47, %v1046_v44 }
 0x213   : > { %v981_v54 = vadd.f32 %v980_v48, %v979_v46  ;;  %v1049_v57 = vrot.slane %v1048_v52, 1 }
 0x215   : > { %v1050_v60 = vadd.f32 %v1049_v57, %v1048_v52  ;;  %v10175_v61 = vmul.f32 0.00390625, %v981_v54 }
 0x217   : > { %v1052_v63 = vmul.f32 0.00390625, %v1050_v60  ;;  %v1053_v3 = vmul.f32 %v10175_v61, %v10175_v61  ;;  %v1077_v7 = vsub.f32 %v10105_v38, %v10175_v61  ;;  %v1078_v11 = vsub.f32 %v10110_v45, %v10175_v61 }
 0x218   : > { %v1079_v15 = vsub.f32 %v10115_v55, %v10175_v61  ;;  %v1080_v16 = vsub.f32 %v10120_v0, %v10175_v61  ;;  %v1081_v18 = vsub.f32 %v10125_v10, %v10175_v61  ;;  %v1082_v19 = vsub.f32 %v10130_v17, %v10175_v61 }
 0x219   : > { %v1054_v4 = vsub.f32 %v1052_v63, %v1053_v3  ;;  %v1083_v38 = vsub.f32 %v10135_v26, %v10175_v61  ;;  %v1084_v45 = vsub.f32 %v10140_v33, %v10175_v61  ;;  %v1085_v21 = vsub.f32 %v10145_v43, %v10175_v61  ;;  %v7635_v63 = vld [vmem:[%s453_s8] ss:$0 sm:$0xff] }
 0x21a   : > { %v1086_v55 = vsub.f32 %v10150_v49, %v10175_v61  ;;  %v1087_v0 = vsub.f32 %v10155_v2, %v10175_v61  ;;  %v1088_v10 = vsub.f32 %v10160_v9, %v10175_v61  ;;  %v1089_v17 = vsub.f32 %v10165_v20, %v10175_v61  ;;  %v943_v49 = vld [vmem:[%s450_s10] sm:$0x1] }
 0x21b   : > { %v1055_v5 = vmax.f32 %v1054_v4, 0.0  ;;  %v1090_v26 = vsub.f32 %v10170_v30, %v10175_v61  ;;  %v1091_v33 = vlaneseq  ;;  %v1059_v9 = vsub.f32 %v10007_v50, %v10175_v61 }
 0x21c   : > { %v1060_v20 = vsub.f32 %v10017_v53, %v10175_v61  ;;  %v1061_v25 = vsub.f32 %v10019_v56, %v10175_v61  ;;  %v1062_v28 = vsub.f32 %v10021_v59, %v10175_v61  ;;  %v1063_v31 = vsub.f32 %v10023_v62, %v10175_v61 }
 0x21d   : > { %v1056_v14 = vadd.f32 1e-05, %v1055_v5  ;;  %v10211_v43 = vshrl.u32 %v1091_v33, 7  ;;  %v1064_v32 = vsub.f32 %v10025_v1, %v10175_v61  ;;  %v1065_v34 = vsub.f32 %v10035_v8, %v10175_v61 }
 0x21e   : > { %v1066_v50 = vsub.f32 %v10038_v13, %v10175_v61  ;;  %v1067_v53 = vsub.f32 %v10046_v22, %v10175_v61  ;;  %v1068_v56 = vsub.f32 %v10050_v27, %v10175_v61  ;;  %v1069_v59 = vsub.f32 %v10058_v36, %v10175_v61 }
 0x21f   : > { %9292 = vrsqrt.f32 %v1056_v14  ;;  %12670 = vst [vmem:[#allocation19_spill] sm:$0xff] %v10211_v43  ;;  %v12609_v24 = vsub.s32 0, %v10211_v43  ;;  %v1070_v62 = vsub.f32 %v10063_v41, %v10175_v61  ;;  %v1071_v1 = vsub.f32 %v10071_v51, %v10175_v61 }
 0x220   : > { %v1072_v8 = vsub.f32 %v10074_v58, %v10175_v61  ;;  %v1073_v22 = vsub.f32 %v10082_v6, %v10175_v61  ;;  %v1074_v27 = vsub.f32 %v10086_v12, %v10175_v61  ;;  %v1075_v36 = vsub.f32 %v10094_v23, %v10175_v61 }
 0x221   : > { %v1076_v41 = vsub.f32 %v10099_v29, %v10175_v61 }
 0x229   : > { %v9293_v2 = vpop.eup %9292 }
 0x22a   : > { %v1058_v30 = vmul.f32 %v9293_v2, %v943_v49 }
 0x22c   : > { %v1094_v13 = vrot.slane %v1058_v30, %v12609_v24 }
 0x22e   : > { %v1095_v35 = vmul.f32 %v1094_v13, %v1059_v9  ;;  %v1096_v51 = vmul.f32 %v1094_v13, %v1060_v20  ;;  %v1097_v37 = vmul.f32 %v1094_v13, %v1061_v25  ;;  %v1098_v39 = vmul.f32 %v1094_v13, %v1062_v28 }
 0x22f   : > { %v1099_v58 = vmul.f32 %v1094_v13, %v1063_v31  ;;  %v1100_v40 = vmul.f32 %v1094_v13, %v1064_v32  ;;  %v1101_v42 = vmul.f32 %v1094_v13, %v1065_v34  ;;  %v1102_v44 = vmul.f32 %v1094_v13, %v1066_v50 }
 0x230   : > { %v1103_v6 = vmul.f32 %v1094_v13, %v1067_v53  ;;  %v1104_v12 = vmul.f32 %v1094_v13, %v1068_v56  ;;  %v1105_v46 = vmul.f32 %v1094_v13, %v1069_v59  ;;  %v1106_v47 = vmul.f32 %v1094_v13, %v1070_v62 }
 0x231   : > { %v1107_v23 = vmul.f32 %v1094_v13, %v1071_v1  ;;  %v1108_v48 = vmul.f32 %v1094_v13, %v1072_v8  ;;  %v1109_v52 = vmul.f32 %v1094_v13, %v1073_v22  ;;  %v1110_v29 = vmul.f32 %v1094_v13, %v1074_v27 }
 0x232   : > { %v1111_v54 = vmul.f32 %v1094_v13, %v1075_v36  ;;  %v1112_v57 = vmul.f32 %v1094_v13, %v1076_v41  ;;  %v1113_v60 = vmul.f32 %v1094_v13, %v1077_v7  ;;  %v1114_v61 = vmul.f32 %v1094_v13, %v1078_v11 }
 0x233   : > { %v1115_v3 = vmul.f32 %v1094_v13, %v1079_v15  ;;  %v1116_v4 = vmul.f32 %v1094_v13, %v1080_v16  ;;  %v1117_v5 = vmul.f32 %v1094_v13, %v1081_v18  ;;  %v1118_v14 = vmul.f32 %v1094_v13, %v1082_v19 }
 0x234   : > { %v1119_v33 = vmul.f32 %v1094_v13, %v1083_v38  ;;  %v1120_v49 = vmul.f32 %v1094_v13, %v1084_v45  ;;  %v1121_v2 = vmul.f32 %v1094_v13, %v1085_v21  ;;  %v1122_v9 = vmul.f32 %v1094_v13, %v1086_v55 }
 0x235   : > { %v1123_v20 = vmul.f32 %v1094_v13, %v1087_v0  ;;  %v1124_v25 = vmul.f32 %v1094_v13, %v1088_v10  ;;  %v1125_v28 = vmul.f32 %v1094_v13, %v1089_v17  ;;  %v1126_v30 = vmul.f32 %v1094_v13, %v1090_v26 }
 0x236   : > { %v10256_v31 = vadd.f32 %v7635_v63, %v1095_v35  ;;  %v10258_v32 = vadd.f32 %v7635_v63, %v1096_v51  ;;  %v10260_v34 = vadd.f32 %v7635_v63, %v1097_v37  ;;  %v10262_v7 = vadd.f32 %v7635_v63, %v1098_v39 }
 0x237   : > { %v10264_v11 = vadd.f32 %v7635_v63, %v1099_v58  ;;  %v10266_v15 = vadd.f32 %v7635_v63, %v1100_v40  ;;  %v10268_v16 = vadd.f32 %v7635_v63, %v1101_v42  ;;  %v10270_v18 = vadd.f32 %v7635_v63, %v1102_v44 }
 0x238   : > { %v10272_v19 = vadd.f32 %v7635_v63, %v1103_v6  ;;  %v10274_v38 = vadd.f32 %v7635_v63, %v1104_v12  ;;  %v10276_v45 = vadd.f32 %v7635_v63, %v1105_v46  ;;  %v10278_v21 = vadd.f32 %v7635_v63, %v1106_v47 }
 0x239   : > { %v10280_v55 = vadd.f32 %v7635_v63, %v1107_v23  ;;  %v10282_v0 = vadd.f32 %v7635_v63, %v1108_v48  ;;  %v10284_v10 = vadd.f32 %v7635_v63, %v1109_v52  ;;  %v10286_v17 = vadd.f32 %v7635_v63, %v1110_v29 }
 0x23a   : > { %v10288_v26 = vadd.f32 %v7635_v63, %v1111_v54  ;;  %v10290_v50 = vadd.f32 %v7635_v63, %v1112_v57  ;;  %v10292_v53 = vadd.f32 %v7635_v63, %v1113_v60  ;;  %v10294_v56 = vadd.f32 %v7635_v63, %v1114_v61 }
 0x23b   : > { %v10296_v59 = vadd.f32 %v7635_v63, %v1115_v3  ;;  %v10298_v62 = vadd.f32 %v7635_v63, %v1116_v4  ;;  %v10300_v1 = vadd.f32 %v7635_v63, %v1117_v5  ;;  %v10302_v8 = vadd.f32 %v7635_v63, %v1118_v14 }
 0x23c   : > { %v10304_v13 = vadd.f32 %v7635_v63, %v1119_v33  ;;  %v10306_v22 = vadd.f32 %v7635_v63, %v1120_v49  ;;  %v10308_v27 = vadd.f32 %v7635_v63, %v1121_v2  ;;  %v10310_v36 = vadd.f32 %v7635_v63, %v1122_v9 }
 0x23d   : > { %v10312_v41 = vadd.f32 %v7635_v63, %v1123_v20  ;;  %v10314_v35 = vadd.f32 %v7635_v63, %v1124_v25  ;;  %v10316_v51 = vadd.f32 %v7635_v63, %v1125_v28  ;;  %v10318_v37 = vadd.f32 %v7635_v63, %v1126_v30  ;;  %1200 = sbr.rel (%p12671_p0) target bundleno = 608 (0x260), region = 72 }
 0x23e   : > { %v1165_v39 = vmax.f32 %v10256_v31, 0.0  ;;  %v1166_v58 = vmax.f32 %v10258_v32, 0.0  ;;  %v1167_v40 = vmax.f32 %v10260_v34, 0.0  ;;  %v1168_v42 = vmax.f32 %v10262_v7, 0.0 }
 0x23f   : > { %v1169_v44 = vmax.f32 %v10264_v11, 0.0  ;;  %v1170_v6 = vmax.f32 %v10266_v15, 0.0  ;;  %v1171_v12 = vmax.f32 %v10268_v16, 0.0  ;;  %v1172_v46 = vmax.f32 %v10270_v18, 0.0 }
 0x240   : > { %v1179_v57 = vmax.f32 %v10284_v10, 0.0  ;;  %v1180_v60 = vmax.f32 %v10286_v17, 0.0  ;;  %v1181_v61 = vmax.f32 %v10288_v26, 0.0  ;;  %v1182_v63 = vmax.f32 %v10290_v50, 0.0 }
 0x241   : > { %v1183_v3 = vmax.f32 %v10292_v53, 0.0  ;;  %v1184_v4 = vmax.f32 %v10294_v56, 0.0  ;;  %v1185_v5 = vmax.f32 %v10296_v59, 0.0  ;;  %v1186_v14 = vmax.f32 %v10298_v62, 0.0 }
 0x242   : > { %v1187_v33 = vmax.f32 %v10300_v1, 0.0  ;;  %v1188_v49 = vmax.f32 %v10302_v8, 0.0  ;;  %v1189_v2 = vmax.f32 %v10304_v13, 0.0  ;;  %v1190_v9 = vmax.f32 %v10306_v22, 0.0 }
 0x243   : > { %v1191_v20 = vmax.f32 %v10308_v27, 0.0  ;;  %v1192_v25 = vmax.f32 %v10310_v36, 0.0  ;;  %v1193_v28 = vmax.f32 %v10312_v41, 0.0  ;;  %v1194_v30 = vmax.f32 %v10314_v35, 0.0 }
 0x244   : > { %v9713_v29 = vmov 0  }
 0x245   : > { %1201 = vst [vmem:[#allocation2] sm:$0xf] %v9713_v29  ;;  %1202 = vst [vmem:[#allocation2 + $0x4] sm:$0xf] %v9713_v29 }
 0x246   : > { %1203 = vst [vmem:[#allocation2 + $0x8] sm:$0x1] %v9713_v29  ;;  %1204 = vst [vmem:[#allocation2 + $0xc] sm:$0xf] %v9713_v29 }
 0x247   : > { %1205 = vst [vmem:[#allocation2 + $0x10] sm:$0xf] %v9713_v29  ;;  %1206 = vst [vmem:[#allocation2 + $0x14] sm:$0x1] %v9713_v29 }
 0x248   : > { %1207 = vst [vmem:[#allocation2 + $0x18] sm:$0xf] %v9713_v29  ;;  %1208 = vst [vmem:[#allocation2 + $0x1c] sm:$0xf] %v9713_v29 }
 0x249   : > { %1209 = vst [vmem:[#allocation2 + $0x20] sm:$0x1] %v9713_v29  ;;  %1210 = vst [vmem:[#allocation2 + $0x24] sm:$0xf] %v9713_v29 }
 0x24a   : > { %1211 = vst [vmem:[#allocation2 + $0x28] sm:$0xf] %v9713_v29  ;;  %1212 = vst [vmem:[#allocation2 + $0x2c] sm:$0x1] %v9713_v29 }
 0x24b   : > { %1213 = vst [vmem:[#allocation2 + $0x30] sm:$0xf] %v9713_v29  ;;  %1214 = vst [vmem:[#allocation2 + $0x34] sm:$0xf] %v9713_v29 }
 0x24c   : > { %1215 = vst [vmem:[#allocation2 + $0x38] sm:$0x1] %v9713_v29  ;;  %1216 = vst [vmem:[#allocation2 + $0x3c] sm:$0xf] %v9713_v29 }
 0x24d   : > { %1217 = vst [vmem:[#allocation2 + $0x40] sm:$0xf] %v9713_v29  ;;  %1218 = vst [vmem:[#allocation2 + $0x44] sm:$0x1] %v9713_v29 }
 0x24e   : > { %1219 = vst [vmem:[#allocation2 + $0x48] sm:$0xf] %v9713_v29  ;;  %1220 = vst [vmem:[#allocation2 + $0x4c] sm:$0xf] %v9713_v29 }
 0x24f   : > { %1221 = vst [vmem:[#allocation2 + $0x50] sm:$0x1] %v9713_v29  ;;  %1222 = vst [vmem:[#allocation2 + $0x54] sm:$0xf] %v9713_v29 }
 0x250   : > { %1223 = vst [vmem:[#allocation2 + $0x58] sm:$0xf] %v9713_v29  ;;  %1224 = vst [vmem:[#allocation2 + $0x5c] sm:$0x1] %v9713_v29 }
 0x251   : > { %1225 = vst [vmem:[#allocation2 + $0x60] sm:$0xf] %v9713_v29  ;;  %1226 = vst [vmem:[#allocation2 + $0x64] sm:$0xf] %v9713_v29 }
 0x252   : > { %1227 = vst [vmem:[#allocation2 + $0x68] sm:$0x1] %v9713_v29  ;;  %1228 = vst [vmem:[#allocation2 + $0x6c] sm:$0xf] %v9713_v29 }
 0x253   : > { %1229 = vst [vmem:[#allocation2 + $0x70] sm:$0xf] %v9713_v29  ;;  %1230 = vst [vmem:[#allocation2 + $0x74] sm:$0x1] %v9713_v29 }
 0x254   : > { %1231 = vst [vmem:[#allocation2 + $0x78] sm:$0xf] %v9713_v29  ;;  %1232 = vst [vmem:[#allocation2 + $0x7c] sm:$0xf] %v9713_v29 }
 0x255   : > { %1233 = vst [vmem:[#allocation2 + $0x80] sm:$0x1] %v9713_v29  ;;  %1234 = vst [vmem:[#allocation2 + $0x84] sm:$0xf] %v9713_v29 }
 0x256   : > { %1235 = vst [vmem:[#allocation2 + $0x88] sm:$0xf] %v9713_v29  ;;  %1236 = vst [vmem:[#allocation2 + $0x8c] sm:$0x1] %v9713_v29 }
 0x257   : > { %1237 = vst [vmem:[#allocation2 + $0x90] sm:$0xf] %v9713_v29  ;;  %1238 = vst [vmem:[#allocation2 + $0x94] sm:$0xf] %v9713_v29 }
 0x258   : > { %1239 = vst [vmem:[#allocation2 + $0x98] sm:$0x1] %v9713_v29  ;;  %1240 = vst [vmem:[#allocation2 + $0x9c] sm:$0xf] %v9713_v29 }
 0x259   : > { %1241 = vst [vmem:[#allocation2 + $0xa0] sm:$0xf] %v9713_v29  ;;  %1242 = vst [vmem:[#allocation2 + $0xa4] sm:$0x1] %v9713_v29 }
 0x25a   : > { %1243 = vst [vmem:[#allocation2 + $0xa8] sm:$0xf] %v9713_v29  ;;  %1244 = vst [vmem:[#allocation2 + $0xac] sm:$0xf] %v9713_v29 }
 0x25b   : > { %1245 = vst [vmem:[#allocation2 + $0xb0] sm:$0x1] %v9713_v29  ;;  %1246 = vst [vmem:[#allocation2 + $0xb4] sm:$0xf] %v9713_v29 }
 0x25c   : > { %1247 = vst [vmem:[#allocation2 + $0xb8] sm:$0xf] %v9713_v29  ;;  %1248 = vst [vmem:[#allocation2 + $0xbc] sm:$0x1] %v9713_v29 }
 0x25d   : > { %1249 = vst [vmem:[#allocation2 + $0xc0] sm:$0xf] %v9713_v29  ;;  %1250 = vst [vmem:[#allocation2 + $0xc4] sm:$0xf] %v9713_v29 }
 0x25e   : > { %1251 = vst [vmem:[#allocation2 + $0xc8] sm:$0x1] %v9713_v29  ;;  %1252 = vst [vmem:[#allocation2 + $0xcc] sm:$0xf] %v9713_v29 }
 0x25f   : > { %1253 = vst [vmem:[#allocation2 + $0xd0] sm:$0xf] %v9713_v29  ;;  %1254 = vst [vmem:[#allocation2 + $0xd4] sm:$0x1] %v9713_v29 }
 0x260 PF: > { %v9294_v54 = vld [vmem:[%s9979_s12 + $0x80] sm:$0xff]   ;;  %v8100_v24 = vpack.c.bf16 %v1179_v57, %v1179_v57  ;;  %v9295_v52 = vld [vmem:[%s9979_s12 + $0x88] sm:$0xff]   ;;  %v8101_v48 = vpack.c.bf16 %v1180_v60, %v1180_v60  ;;  %vm1675_vm0 = vcmask 1043456   ;;  %vm1682_vm1 = vcmask 1040384   ;;  %v9296_v57 = vld [vmem:[%s9979_s12 + $0x90] sm:$0xff]   ;;  %p12773_p4 = scmp.ne.s32.totalorder %s9849_s16, 0 }
 0x261   : > { %8878 = vmatprep.subr.bf16.mxu1 %v9294_v54  ;;  %v8102_v29 = vpack.c.bf16 %v1181_v61, %v1181_v61  ;;  %v8103_v10 = vpack.c.bf16 %v1182_v63, %v1182_v63  ;;  %v10372_v60 = vpack.c.bf16 %v1183_v3, %v1183_v3  ;;  %v10382_v26 = vpack.c.bf16 %v1185_v5, %v1185_v5  ;;  %v9297_v13 = vld [vmem:[%s9979_s12 + $0x98] sm:$0xff]   ;;  %v1729_v41 = vld [vmem:[#allocation2 + $0x60] sm:$0xf]  ;;  %v9298_v3 = vld [vmem:[%s9979_s12 + $0xa0] sm:$0xff]  }
 0x262   : > { %v1474_v23 = vshrl.u32 %v8100_v24, 16  ;;  %8886 = vmatpush3.bf16.msra.mxu1 %v9294_v54  ;;  %v1477_v47 = vshll.u32 %v8100_v24, 16  ;;  %v10377_v24 = vpack.c.bf16 %v1184_v4, %v1184_v4  ;;  %v1482_v50 = vshrl.u32 %v8101_v48, 16 }
 0x263   : > { %8879 = vmatprep.subr.bf16.mxu1 %v9295_v52  ;;  %v10392_v53 = vpack.c.bf16 %v1187_v33, %v1187_v33  ;;  %v10397_v56 = vpack.c.bf16 %v1188_v49, %v1188_v49  ;;  %v10402_v59 = vpack.c.bf16 %v1189_v2, %v1189_v2  ;;  %v10407_v62 = vpack.c.bf16 %v1190_v9, %v1190_v9  ;;  %v1736_v9 = vld [vmem:[#allocation2 + $0x6c] sm:$0xf] }
 0x264   : > { %v1476_v17 = vrot.slane %v1474_v23, 7  ;;  %v10387_v23 = vpack.c.bf16 %v1186_v14, %v1186_v14  ;;  %v10412_v1 = vpack.c.bf16 %v1191_v20, %v1191_v20  ;;  %v10417_v8 = vpack.c.bf16 %v1192_v25, %v1192_v25  ;;  %v1740_v20 = vld [vmem:[#allocation2 + $0x74] sm:$0x1] }
 0x265   : > { %v1484_v61 = vrot.slane %v1482_v50, 7  ;;  %v10423_v22 = vpack.c.bf16 %v1193_v28, %v1193_v28  ;;  %v10428_v27 = vpack.c.bf16 %v1194_v30, %v1194_v30  ;;  %vm1351_vm2 = vsmask.f32 256 }
 0x266   : > { %8887 = vmatpush3.bf16.msra.mxu1 %v9295_v52  ;;  %v1479_v54 = vor.u32 %v1477_v47, %v1476_v17  ;;  %vm1352_vm3 = vsmask.f32 4368  ;;  %v1480_v36 = vrot.slane %v1476_v17, 4  ;;  %v1485_v63 = vshll.u32 %v8101_v48, 16  ;;  %v1733_v48 = vld [vmem:[#allocation2 + $0x68] sm:$0x1]  ;;  %vm10448_vm8 = vmand %vm1682_vm1, %vm1351_vm2 }
 0x267   : > { %8880 = vmatprep.subr.bf16.mxu1 %v9296_v57  ;;  %vm10431_vm4 = vmor %vm1351_vm2, %vm1352_vm3  ;;  %v1489_v47 = vrot.slane %v1484_v61, 4  ;;  %vm1676_vm5 = vsmask.f32 7938  ;;  %vm2886_vm6 = vcmask 1042432   ;;  %v10438_v35 = vpack.c.bf16 %v1165_v39, %v1165_v39 }
 0x268   : > { %v1487_v4 = vor.u32 %v1485_v63, %v1484_v61  ;;  %vm10442_vm7 = vmand %vm1675_vm0, %vm1676_vm5  ;;  %v1491_v14 = vshrl.u32 %v8102_v29, 16  ;;  %v1494_v33 = vshll.u32 %v8102_v29, 16  ;;  %v1499_v49 = vshrl.u32 %v8103_v10, 16 }
 0x269   : > { %v1730_v31 = vsel %vm10442_vm7, %v1479_v54, %v1729_v41  ;;  %v1502_v39 = vshll.u32 %v8103_v10, 16  ;;  %v1508_v25 = vshrl.u32 %v10372_v60, 16  ;;  %v10458_v28 = vpack.c.bf16 %v1166_v58, %v1166_v58 }
 0x26a   : > { %8888 = vmatpush3.bf16.msra.mxu1 %v9296_v57  ;;  %v1488_v30 = vsel %vm10431_vm4, %v1480_v36, %v1487_v4  ;;  %1731 = vst [vmem:[#allocation2 + $0x60] sm:$0xf] %v1730_v31  ;;  %v1734_v29 = vsel %vm10448_vm8, %v1489_v47, %v1733_v48  ;;  %v1493_v57 = vrot.slane %v1491_v14, 7  ;;  %v1501_v17 = vrot.slane %v1499_v49, 7  ;;  %v1747_v14 = vld [vmem:[#allocation2 + $0x80] sm:$0x1] }
 0x26b   : > { %8881 = vmatprep.subr.bf16.mxu1 %v9297_v13  ;;  %1732 = vst [vmem:[#allocation2 + $0x64] sm:$0xf] %v1488_v30  ;;  %1735 = vst [vmem:[#allocation2 + $0x68] sm:$0x1] %v1734_v29  ;;  %vm2887_vm9 = vcmask 1046532   ;;  %v1510_v10 = vrot.slane %v1508_v25, 7  ;;  %v10467_v32 = vpack.c.bf16 %v1167_v40, %v1167_v40  ;;  %v10472_v58 = vpack.c.bf16 %v1168_v42, %v1168_v42 }
 0x26c   : > { %v1496_v50 = vor.u32 %v1494_v33, %v1493_v57  ;;  %v1497_v54 = vrot.slane %v1493_v57, 4  ;;  %v1504_v61 = vor.u32 %v1502_v39, %v1501_v17  ;;  %v1506_v36 = vrot.slane %v1501_v17, 4  ;;  %v9299_v40 = vld [vmem:[%s9979_s12 + $0xa8] sm:$0xff]   ;;  %v9300_v31 = vld [vmem:[%s9979_s12 + $0xb0] sm:$0xff]   ;;  %vm10505_vm10 = vmor %vm2886_vm6, %vm2887_vm9 }
 0x26d   : > { %v1511_v63 = vshll.u32 %v10372_v60, 16  ;;  %v1514_v47 = vrot.slane %v1510_v10, 4  ;;  %v1516_v41 = vshrl.u32 %v10377_v24, 16  ;;  %v1519_v34 = vshll.u32 %v10377_v24, 16 }
 0x26e   : > { %8889 = vmatpush3.bf16.msra.mxu1 %v9297_v13  ;;  %v1505_v7 = vsel %vm10431_vm4, %v1497_v54, %v1504_v61  ;;  %v1737_v42 = vsel %vm10442_vm7, %v1496_v50, %v1736_v9  ;;  %v1741_v4 = vsel %vm10448_vm8, %v1506_v36, %v1740_v20  ;;  %v1743_v13 = vld [vmem:[#allocation2 + $0x78] sm:$0xf]  ;;  %v1525_v60 = vshrl.u32 %v10382_v26, 16 }
 0x26f   : > { %8882 = vmatprep.subr.bf16.mxu1 %v9298_v3  ;;  %1738 = vst [vmem:[#allocation2 + $0x6c] sm:$0xf] %v1737_v42  ;;  %1739 = vst [vmem:[#allocation2 + $0x70] sm:$0xf] %v1505_v7  ;;  %v1513_v48 = vor.u32 %v1511_v63, %v1510_v10  ;;  %v1518_v24 = vrot.slane %v1516_v41, 7  ;;  %v1528_v33 = vshll.u32 %v10382_v26, 16  ;;  %v10492_v20 = vpack.c.bf16 %v1169_v44, %v1169_v44 }
 0x270   : > { %1742 = vst [vmem:[#allocation2 + $0x74] sm:$0x1] %v1741_v4  ;;  %v1533_v49 = vshrl.u32 %v10387_v23, 16  ;;  %v1527_v39 = vrot.slane %v1525_v60, 7  ;;  %v1536_v9 = vshll.u32 %v10387_v23, 16  ;;  %v10497_v25 = vpack.c.bf16 %v1170_v6, %v1170_v6  ;;  %v9301_v42 = vld [vmem:[%s9979_s12 + $0xb8] sm:$0xff]  }
 0x271   : > { %v2846_v30 = vld [vmem:[#allocation2 + $0x60] sm:$0xe]  ;;  %v1521_v29 = vor.u32 %v1519_v34, %v1518_v24  ;;  %v1523_v26 = vrot.slane %v1518_v24, 4  ;;  %v1744_v57 = vsel %vm10442_vm7, %v1513_v48, %v1743_v13  ;;  %v1750_v10 = vld [vmem:[#allocation2 + $0x84] sm:$0xf]  ;;  %v10512_v50 = vpack.c.bf16 %v1171_v12, %v1171_v12 }
 0x272   : > { %8890 = vmatpush3.bf16.msra.mxu1 %v9298_v3  ;;  %v1535_v17 = vrot.slane %v1533_v49, 7  ;;  %v1809_v23 = vld [vmem:[#allocation2 + $0x64] sm:$0xf]  ;;  %v10501_v11 = vld [vmem:[#allocation2 + $0x68] sm:$0x1]  ;;  %v7741_v44 = vrot.slane %v2846_v30, 9  ;;  %v1530_v6 = vor.u32 %v1528_v33, %v1527_v39  ;;  %v10520_v41 = vpack.c.bf16 %v1172_v46, %v1172_v46 }
 0x273   : > { %8883 = vmatprep.subr.bf16.mxu1 %v9299_v40  ;;  %1745 = vst [vmem:[#allocation2 + $0x78] sm:$0xf] %v1744_v57  ;;  %v1531_v3 = vrot.slane %v1527_v39, 4  ;;  %v2947_v54 = vrot.slane %v1809_v23, 5  ;;  %v2950_v61 = vrot.slane %v10501_v11, 5  ;;  %v1522_v36 = vsel %vm10431_vm4, %v1514_v47, %v1521_v29 }
 0x274   : > { %v1754_v63 = vld [vmem:[#allocation2 + $0x8c] sm:$0x1]  ;;  %1746 = vst [vmem:[#allocation2 + $0x7c] sm:$0xf] %v1522_v36  ;;  %v1748_v34 = vsel %vm10448_vm8, %v1523_v26, %v1747_v14  ;;  %v1538_v16 = vor.u32 %v1536_v9, %v1535_v17  ;;  %v1540_v7 = vrot.slane %v1535_v17, 4  ;;  %v1751_v12 = vsel %vm10442_vm7, %v1530_v6, %v1750_v10  ;;  %v9302_v36 = vld [vmem:[%s9979_s12 + $0xc0] sm:$0xff]  }
 0x275   : > { %v2948_v47 = vsel %vm10505_vm10, %v7741_v44, %v2947_v54  ;;  %v2949_v4 = vrot.slane %v2947_v54, 4  ;;  %1749 = vst [vmem:[#allocation2 + $0x80] sm:$0x1] %v1748_v34  ;;  %1752 = vst [vmem:[#allocation2 + $0x84] sm:$0xf] %v1751_v12  ;;  %v1542_v18 = vshrl.u32 %v10392_v53, 16 }
 0x276   : > { %8891 = vmatpush3.bf16.msra.mxu1 %v9299_v40  ;;  %v12680_v46 = vmax.f32 %v10272_v19, 0.0  ;;  %v1811_v60 = vld [vmem:[#allocation2 + $0x70] sm:$0xf]  ;;  %v2847_v24 = vld [vmem:[#allocation2 + $0x6c] sm:$0xe]  ;;  %v1539_v40 = vsel %vm10431_vm4, %v1531_v3, %v1538_v16  ;;  %v1755_v14 = vsel %vm10448_vm8, %v1540_v7, %v1754_v63  ;;  %v12681_v33 = vmax.f32 %v10274_v38, 0.0 }
 0x277   : > { %8884 = vmatprep.subr.bf16.mxu1 %v9300_v31  ;;  %v1849_v48 = vld [vmem:[#allocation2 + $0x74] sm:$0x1]  ;;  %v12682_v19 = vmax.f32 %v10276_v45, 0.0  ;;  %v2951_v9 = vsel %vm10505_vm10, %v2949_v4, %v2950_v61  ;;  %v7742_v30 = vrot.slane %v2847_v24, 9  ;;  %v2954_v29 = vrot.slane %v1811_v60, 5 }
 0x278   : > { %v10533_v13 = vpack.c.bf16 %v12680_v46, %v12680_v46  ;;  %v10542_v49 = vpack.c.bf16 %v12681_v33, %v12681_v33  ;;  %v2957_v26 = vrot.slane %v1849_v48, 5  ;;  %1753 = vst [vmem:[#allocation2 + $0x88] sm:$0xf] %v1539_v40  ;;  %1756 = vst [vmem:[#allocation2 + $0x8c] sm:$0x1] %v1755_v14  ;;  %v7773_v57 = vcombine.low %v2948_v47, %v2951_v9 }
 0x279   : > { %v10547_v39 = vpack.c.bf16 %v12682_v19, %v12682_v19  ;;  %v1544_v17 = vrot.slane %v1542_v18, 7  ;;  %v1545_v38 = vshll.u32 %v10392_v53, 16  ;;  %v1550_v10 = vshrl.u32 %v10397_v56, 16  ;;  %v1757_v23 = vld [vmem:[#allocation2 + $0x90] sm:$0xf] }
 0x27a   : > { %8892 = vmatpush3.bf16.msra.mxu1 %v9300_v31  ;;  %v2955_v45 = vsel %vm10505_vm10, %v7742_v30, %v2954_v29  ;;  %v2956_v44 = vrot.slane %v2954_v29, 4  ;;  %v2848_v6 = vld [vmem:[#allocation2 + $0x78] sm:$0xe]  ;;  %v1553_v3 = vshll.u32 %v10397_v56, 16  ;;  %v1761_v54 = vld [vmem:[#allocation2 + $0x98] sm:$0x1]  ;;  %8574 = vmatprep.mubr.bf16.mxu1 %v7773_v57 }
 0x27b   : > { %v1559_v61 = vshrl.u32 %v10402_v59, 16  ;;  %8885 = vmatprep.subr.bf16.mxu1 %v9301_v42  ;;  %v7743_v63 = vrot.slane %v2848_v6, 9  ;;  %v1547_v34 = vor.u32 %v1545_v38, %v1544_v17  ;;  %v1548_v53 = vrot.slane %v1544_v17, 4  ;;  %v1813_v7 = vld [vmem:[#allocation2 + $0x7c] sm:$0xf]  ;;  %v9303_v30 = vld [vmem:[%s9979_s12 + $0xc8] sm:$0xff]  }
 0x27c   : > { %v1552_v16 = vrot.slane %v1550_v10, 7  ;;  %v2958_v31 = vsel %vm10505_vm10, %v2956_v44, %v2957_v26  ;;  %v1562_v47 = vshll.u32 %v10402_v59, 16  ;;  %v1567_v56 = vshrl.u32 %v10407_v62, 16  ;;  %v1850_v18 = vld [vmem:[#allocation2 + $0x80] sm:$0x1]  ;;  %v9304_v6 = vld [vmem:[%s9979_s12 + $0xd0] sm:$0xff]  }
 0x27d   : > { %v1561_v12 = vrot.slane %v1559_v61, 7  ;;  %v7774_v4 = vcombine.low %v2955_v45, %v2958_v31  ;;  %v2961_v46 = vrot.slane %v1813_v7, 5  ;;  %v2849_v60 = vld [vmem:[#allocation2 + $0x84] sm:$0xe]  ;;  %v2964_v40 = vrot.slane %v1850_v18, 5 }
 0x27e   : > { %v1555_v48 = vor.u32 %v1553_v3, %v1552_v16  ;;  %v1557_v24 = vrot.slane %v1552_v16, 4  ;;  %8893 = vmatpush3.bf16.msra.mxu1 %v9301_v42  ;;  %v7744_v14 = vrot.slane %v2849_v60, 9  ;;  %v1758_v33 = vsel %vm10442_vm7, %v1547_v34, %v1757_v23  ;;  %v1764_v9 = vld [vmem:[#allocation2 + $0x9c] sm:$0xf] }
 0x27f   : > { %v1564_v19 = vor.u32 %v1562_v47, %v1561_v12  ;;  %8590 = vmatprep.subr.bf16.mxu1 %v9302_v36  ;;  %v2962_v59 = vsel %vm10505_vm10, %v7743_v63, %v2961_v46  ;;  %v2963_v29 = vrot.slane %v2961_v46, 4  ;;  %v1815_v26 = vld [vmem:[#allocation2 + $0x88] sm:$0xf]  ;;  %v1851_v57 = vld [vmem:[#allocation2 + $0x8c] sm:$0x1]  ;;  %v1565_v23 = vrot.slane %v1561_v12, 4 }
 0x280   : > { %v1556_v17 = vsel %vm10431_vm4, %v1548_v53, %v1555_v48  ;;  %1759 = vst [vmem:[#allocation2 + $0x90] sm:$0xf] %v1758_v33  ;;  %v1762_v42 = vsel %vm10448_vm8, %v1557_v24, %v1761_v54  ;;  %v2968_v38 = vrot.slane %v1815_v26, 5  ;;  %v2971_v10 = vrot.slane %v1851_v57, 5  ;;  %v1768_v63 = vld [vmem:[#allocation2 + $0xa4] sm:$0x1] }
 0x281   : > { %1760 = vst [vmem:[#allocation2 + $0x94] sm:$0xf] %v1556_v17  ;;  %1763 = vst [vmem:[#allocation2 + $0x98] sm:$0x1] %v1762_v42  ;;  %v1569_v45 = vrot.slane %v1567_v56, 7  ;;  %8575 = vmatmul.mubr.bf16.vlgmr.msra.gmra.mrb[0].mxu1 %v7774_v4  ;;  %v2965_v44 = vsel %vm10505_vm10, %v2963_v29, %v2964_v40  ;;  %v1570_v3 = vshll.u32 %v10407_v62, 16  ;;  %v1765_v61 = vsel %vm10442_vm7, %v1564_v19, %v1764_v9 }
 0x282   : > { %v1576_v54 = vshrl.u32 %v10412_v1, 16  ;;  %8591 = vmatpush3.bf16.msra.mxu1 %v9302_v36  ;;  %v7775_v34 = vcombine.low %v2962_v59, %v2965_v44  ;;  %v2969_v53 = vsel %vm10505_vm10, %v7744_v14, %v2968_v38  ;;  %v2970_v16 = vrot.slane %v2968_v38, 4  ;;  %1766 = vst [vmem:[#allocation2 + $0x9c] sm:$0xf] %v1765_v61  ;;  %v9322_v56 = vld [vmem:[%s9979_s12 + $0x40] sm:$0xff]   ;;  %v9305_v24 = vld [vmem:[%s9979_s12 + $0xd8] sm:$0xff]  }
 0x283   : > { %v1574_v31 = vrot.slane %v1569_v45, 4  ;;  %8592 = vmatprep.subr.bf16.mxu1 %v9303_v30  ;;  %v1572_v7 = vor.u32 %v1570_v3, %v1569_v45  ;;  %v1579_v62 = vshll.u32 %v10412_v1, 16  ;;  %v1584_v47 = vshrl.u32 %v10417_v8, 16  ;;  %v1771_v46 = vld [vmem:[#allocation2 + $0xa8] sm:$0xf]  ;;  %8446 = vmatprep.subr.bf16.mxu0 %v9322_v56 }
 0x284   : > { %v1578_v12 = vrot.slane %v1576_v54, 7  ;;  %8578 = vmatprep.mubr.bf16.mxu1 %v7775_v34  ;;  %v2972_v36 = vsel %vm10505_vm10, %v2970_v16, %v2971_v10  ;;  %v1587_v18 = vshll.u32 %v10417_v8, 16  ;;  %v1593_v60 = vshrl.u32 %v10423_v22, 16  ;;  %v1775_v9 = vld [vmem:[#allocation2 + $0xb0] sm:$0x1]  ;;  %8447 = vmatpush3.bf16.msra.mxu0 %v9322_v56 }
 0x285   : > { %v1769_v4 = vsel %vm10448_vm8, %v1574_v31, %v1768_v63  ;;  %v7776_v48 = vcombine.low %v2969_v53, %v2972_v36  ;;  %v1573_v1 = vsel %vm10431_vm4, %v1565_v23, %v1572_v7  ;;  %v1586_v19 = vrot.slane %v1584_v47, 7  ;;  %v1778_v3 = vld [vmem:[#allocation2 + $0xb4] sm:$0xf]  ;;  %v1782_v7 = vld [vmem:[#allocation2 + $0xbc] sm:$0x1]  ;;  %v9326_v36 = vld [vmem:[%s9979_s12 + $0x48] sm:$0xff]  }
 0x286   : > { %1770 = vst [vmem:[#allocation2 + $0xa4] sm:$0x1] %v1769_v4  ;;  %v1581_v40 = vor.u32 %v1579_v62, %v1578_v12  ;;  %v1582_v14 = vrot.slane %v1578_v12, 4  ;;  %8593 = vmatpush3.bf16.msra.mxu1 %v9303_v30  ;;  %1767 = vst [vmem:[#allocation2 + $0xa0] sm:$0xf] %v1573_v1  ;;  %v1595_v59 = vrot.slane %v1593_v60, 7  ;;  %8448 = vmatprep.subr.bf16.mxu0 %v9326_v36 }
 0x287   : > { %v2850_v33 = vld [vmem:[#allocation2 + $0x90] sm:$0xe]  ;;  %v1596_v8 = vshll.u32 %v10423_v22, 16  ;;  %v1601_v29 = vshrl.u32 %v10428_v27, 16  ;;  %8594 = vmatprep.subr.bf16.mxu1 %v9304_v6  ;;  %v1604_v38 = vshll.u32 %v10428_v27, 16  ;;  %v12683_v30 = vmax.f32 %v10278_v21, 0.0 }
 0x288   : > { %v1817_v26 = vld [vmem:[#allocation2 + $0x94] sm:$0xf]  ;;  %v1852_v57 = vld [vmem:[#allocation2 + $0x98] sm:$0x1]  ;;  %v7745_v17 = vrot.slane %v2850_v33, 9  ;;  %v1772_v42 = vsel %vm10442_vm7, %v1581_v40, %v1771_v46  ;;  %v1589_v22 = vor.u32 %v1587_v18, %v1586_v19  ;;  %v1591_v44 = vrot.slane %v1586_v19, 4  ;;  %8449 = vmatpush3.bf16.msra.mxu0 %v9326_v36 }
 0x289   : > { %v10600_v10 = vpack.c.bf16 %v12683_v30, %v12683_v30  ;;  %v2975_v23 = vrot.slane %v1817_v26, 5  ;;  %v2978_v45 = vrot.slane %v1852_v57, 5  ;;  %1773 = vst [vmem:[#allocation2 + $0xa8] sm:$0xf] %v1772_v42  ;;  %8579 = vmatmul.mubr.bf16.gmra.mrb[4].mxu1 %v7776_v48  ;;  %v2851_v61 = vld [vmem:[#allocation2 + $0x9c] sm:$0xe]  ;;  %v1598_v63 = vor.u32 %v1596_v8, %v1595_v59 }
 0x28a   : > { %v1599_v54 = vrot.slane %v1595_v59, 4  ;;  %v1603_v34 = vrot.slane %v1601_v29, 7  ;;  %v1355_v27 = vshrl.u32 %v10438_v35, 16  ;;  %8595 = vmatpush3.bf16.msra.mxu1 %v9304_v6  ;;  %v7746_v16 = vrot.slane %v2851_v61, 9  ;;  %v9306_v12 = vld [vmem:[%s9979_s12 + $0xe0] sm:$0xff]   ;;  %v9327_v1 = vld [vmem:[%s9979_s12 + $0x50] sm:$0xff]  }
 0x28b   : > { %v2976_v21 = vsel %vm10505_vm10, %v7745_v17, %v2975_v23  ;;  %v2977_v53 = vrot.slane %v2975_v23, 4  ;;  %v1590_v31 = vsel %vm10431_vm4, %v1582_v14, %v1589_v22  ;;  %8596 = vmatprep.subr.bf16.mxu1 %v9305_v24  ;;  %v1776_v62 = vsel %vm10448_vm8, %v1591_v44, %v1775_v9  ;;  %v1678_v59 = vld [vmem:[#allocation2 + $0xc] sm:$0xf]  ;;  %v9307_v29 = vld [vmem:[%s9979_s12 + $0xe8] sm:$0xff]   ;;  %8450 = vmatprep.subr.bf16.mxu0 %v9327_v1 }
 0x28c   : > { %1774 = vst [vmem:[#allocation2 + $0xac] sm:$0xf] %v1590_v31  ;;  %v1606_v47 = vor.u32 %v1604_v38, %v1603_v34  ;;  %v1608_v56 = vrot.slane %v1603_v34, 4  ;;  %v1779_v6 = vsel %vm10442_vm7, %v1598_v63, %v1778_v3  ;;  %1777 = vst [vmem:[#allocation2 + $0xb0] sm:$0x1] %v1776_v62  ;;  %v1357_v46 = vrot.slane %v1355_v27, 7  ;;  %8451 = vmatpush3.bf16.msra.mxu0 %v9327_v1 }
 0x28d   : > { %v2979_v4 = vsel %vm10505_vm10, %v2977_v53, %v2978_v45  ;;  %v1853_v18 = vld [vmem:[#allocation2 + $0xa4] sm:$0x1]  ;;  %1780 = vst [vmem:[#allocation2 + $0xb4] sm:$0xf] %v1779_v6  ;;  %v1358_v60 = vshll.u32 %v10438_v35, 16  ;;  %v1363_v48 = vshrl.u32 %v10458_v28, 16 }
 0x28e   : > { %v7777_v40 = vcombine.low %v2976_v21, %v2979_v4  ;;  %v1819_v14 = vld [vmem:[#allocation2 + $0xa0] sm:$0xf]  ;;  %v2985_v33 = vrot.slane %v1853_v18, 5  ;;  %v1607_v19 = vsel %vm10431_vm4, %v1599_v54, %v1606_v47  ;;  %v1783_v9 = vsel %vm10448_vm8, %v1608_v56, %v1782_v7  ;;  %8597 = vmatpush3.bf16.msra.mxu1 %v9305_v24  ;;  %v10637_v61 = vld [vmem:[%s9979_s12 + $0xf0] sm:$0xff]   ;;  %v1687_v34 = vld [vmem:[#allocation2 + $0x18] sm:$0xf] }
 0x28f   : > { %v2982_v8 = vrot.slane %v1819_v14, 5  ;;  %1781 = vst [vmem:[#allocation2 + $0xb8] sm:$0xf] %v1607_v19  ;;  %1784 = vst [vmem:[#allocation2 + $0xbc] sm:$0x1] %v1783_v9  ;;  %v1360_v35 = vor.u32 %v1358_v60, %v1357_v46  ;;  %v1361_v26 = vrot.slane %v1357_v46, 4  ;;  %8598 = vmatprep.subr.bf16.mxu1 %v9306_v12 }
 0x290   : > { %v10623_v57 = vrot.slane %v1363_v48, 7  ;;  %8582 = vmatprep.mubr.bf16.mxu1 %v7777_v40  ;;  %v2852_v17 = vld [vmem:[#allocation2 + $0xa8] sm:$0xe]  ;;  %v1366_v42 = vshll.u32 %v10458_v28, 16  ;;  %v1372_v38 = vshrl.u32 %v10467_v32, 16  ;;  %v1375_v30 = vshll.u32 %v10467_v32, 16 }
 0x291   : > { %v1380_v24 = vshrl.u32 %v10472_v58, 16  ;;  %v2983_v23 = vsel %vm10505_vm10, %v7746_v16, %v2982_v8  ;;  %v2984_v45 = vrot.slane %v2982_v8, 4  ;;  %v7747_v22 = vrot.slane %v2852_v17, 9  ;;  %v9331_v31 = vld [vmem:[%s9979_s12 + $0x58] sm:$0xff]   ;;  %v6114_v43 = vld [vmem:[#allocation2 + $0xa8] sm:$0xe] }
 0x292   : > { %v12684_v44 = vmax.f32 %v10280_v55, 0.0  ;;  %v1368_v28 = vor.u32 %v1366_v42, %v10623_v57  ;;  %v1679_v32 = vsel %vm10442_vm7, %v1360_v35, %v1678_v59  ;;  %v1374_v63 = vrot.slane %v1372_v38, 7  ;;  %8599 = vmatpush3.bf16.msra.mxu1 %v9306_v12  ;;  %v9332_v12 = vld [vmem:[%s9979_s12 + $0x60] sm:$0xff]   ;;  %8452 = vmatprep.subr.bf16.mxu0 %v9331_v31  ;;  %v9309_v35 = vld [vmem:[%s9979_s12 + $0xf8] sm:$0xff]  }
 0x293   : > { %v10642_v54 = vrot.slane %v1380_v24, 7  ;;  %v2986_v27 = vsel %vm10505_vm10, %v2984_v45, %v2985_v33  ;;  %v1821_v55 = vld [vmem:[#allocation2 + $0xac] sm:$0xf]  ;;  %1680 = vst [vmem:[#allocation2 + $0xc] sm:$0xf] %v1679_v32  ;;  %v1383_v21 = vshll.u32 %v10472_v58, 16  ;;  %8600 = vmatprep.subr.bf16.mxu1 %v9307_v29  ;;  %8453 = vmatpush3.bf16.msra.mxu0 %v9331_v31 }
 0x294   : > { %v10634_v3 = vpack.c.bf16 %v12684_v44, %v12684_v44  ;;  %v1389_v53 = vshrl.u32 %v10492_v20, 16  ;;  %v1392_v16 = vshll.u32 %v10492_v20, 16  ;;  %v7778_v7 = vcombine.low %v2983_v23, %v2986_v27  ;;  %v1854_v62 = vld [vmem:[#allocation2 + $0xb0] sm:$0x1]  ;;  %v2853_v56 = vld [vmem:[#allocation2 + $0xb4] sm:$0xe]  ;;  %8454 = vmatprep.subr.bf16.mxu0 %v9332_v12 }
 0x295   : > { %v2989_v47 = vrot.slane %v1821_v55, 5  ;;  %v1369_v6 = vsel %vm10431_vm4, %v1361_v26, %v1368_v28  ;;  %v1377_v36 = vor.u32 %v1375_v30, %v1374_v63  ;;  %v2992_v4 = vrot.slane %v1854_v62, 5  ;;  %v1694_v33 = vld [vmem:[#allocation2 + $0x24] sm:$0xf]  ;;  %v1701_v23 = vld [vmem:[#allocation2 + $0x30] sm:$0xf] }
 0x296   : > { %v7748_v18 = vrot.slane %v2853_v56, 9  ;;  %1681 = vst [vmem:[#allocation2 + $0x10] sm:$0xf] %v1369_v6  ;;  %v1378_v58 = vrot.slane %v1374_v63, 4  ;;  %v1385_v46 = vor.u32 %v1383_v21, %v10642_v54  ;;  %v2071_v20 = vshll.u32 %v10501_v11, 16  ;;  %8583 = vmatmul.mubr.bf16.gmra.mrb[8].mxu1 %v7778_v7  ;;  %v9336_v45 = vld [vmem:[%s9979_s12 + $0x68] sm:$0xff]  }
 0x297   : > { %v2990_v60 = vsel %vm10505_vm10, %v7747_v22, %v2989_v47  ;;  %v2991_v48 = vrot.slane %v2989_v47, 4  ;;  %v1823_v1 = vld [vmem:[#allocation2 + $0xb8] sm:$0xf]  ;;  %v1855_v40 = vld [vmem:[#allocation2 + $0xbc] sm:$0x1]  ;;  %v1688_v14 = vsel %vm10442_vm7, %v1377_v36, %v1687_v34  ;;  %8601 = vmatpush3.bf16.msra.mxu1 %v9307_v29  ;;  %v1391_v11 = vrot.slane %v1389_v53, 7  ;;  %8455 = vmatpush3.bf16.msra.mxu0 %v9332_v12 }
 0x298   : > { %v2996_v19 = vrot.slane %v1823_v1, 5  ;;  %v2999_v9 = vrot.slane %v1855_v40, 5  ;;  %v1386_v59 = vsel %vm10431_vm4, %v1378_v58, %v1385_v46  ;;  %1689 = vst [vmem:[#allocation2 + $0x18] sm:$0xf] %v1688_v14  ;;  %8602 = vmatprep.subr.bf16.mxu1 %v10637_v61  ;;  %v1397_v26 = vshrl.u32 %v10497_v25, 16  ;;  %v10672_v22 = vld [vmem:[%s9979_s12 + $0x100] sm:$0xff]   ;;  %8456 = vmatprep.subr.bf16.mxu0 %v9336_v45 }
 0x299   : > { %v2993_v8 = vsel %vm10505_vm10, %v2991_v48, %v2992_v4  ;;  %1690 = vst [vmem:[#allocation2 + $0x1c] sm:$0xf] %v1386_v59  ;;  %v1400_v29 = vshll.u32 %v10497_v25, 16  ;;  %v1406_v17 = vshrl.u32 %v10512_v50, 16  ;;  %v1394_v24 = vor.u32 %v1392_v16, %v1391_v11  ;;  %v1715_v1 = vld [vmem:[#allocation2 + $0x48] sm:$0xf] }
 0x29a   : > { %v7779_v42 = vcombine.low %v2990_v60, %v2993_v8  ;;  %v2997_v38 = vsel %vm10505_vm10, %v7748_v18, %v2996_v19  ;;  %v2998_v30 = vrot.slane %v2996_v19, 4  ;;  %v1395_v44 = vrot.slane %v1391_v11, 4  ;;  %v9337_v8 = vld [vmem:[%s9979_s12 + $0x70] sm:$0xff]  }
 0x29b   : > { %v10674_v28 = vrot.slane %v1397_v26, 7  ;;  %v1408_v32 = vrot.slane %v1406_v17, 7  ;;  %v1409_v63 = vshll.u32 %v10512_v50, 16  ;;  %8603 = vmatpush3.bf16.msra.mxu1 %v10637_v61  ;;  %v1695_v34 = vsel %vm10442_vm7, %v1394_v24, %v1694_v33  ;;  %8457 = vmatpush3.bf16.msra.mxu0 %v9336_v45  ;;  %v1722_v17 = vld [vmem:[#allocation2 + $0x54] sm:$0xf] }
 0x29c   : > { %8586 = vmatprep.mubr.bf16.mxu1 %v7779_v42  ;;  %v3000_v25 = vsel %vm10505_vm10, %v2998_v30, %v2999_v9  ;;  %v1414_v27 = vshrl.u32 %v10520_v41, 16  ;;  %v1417_v55 = vshll.u32 %v10520_v41, 16  ;;  %v10684_v21 = vrot.slane %v2071_v20, 5  ;;  %8604 = vmatprep.subr.bf16.mxu1 %v9309_v35  ;;  %1696 = vst [vmem:[#allocation2 + $0x24] sm:$0xf] %v1695_v34  ;;  %v9315_v9 = vld [vmem:[%s9979_s12 + $0x108] sm:$0xff]  }
 0x29d   : > { %v7780_v53 = vcombine.low %v2997_v38, %v3000_v25  ;;  %v9310_v16 = vld [vmem:[#allocation2 + $0xc] sm:$0xff]   ;;  %v1402_v50 = vor.u32 %v1400_v29, %v10674_v28  ;;  %v1411_v31 = vor.u32 %v1409_v63, %v1408_v32  ;;  %v1412_v7 = vrot.slane %v1408_v32, 4  ;;  %8458 = vmatprep.subr.bf16.mxu0 %v9337_v8 }
 0x29e   : > { %v10687_v62 = vrot.slane %v1414_v27, 7  ;;  %v1423_v61 = vshrl.u32 %v10533_v13, 16  ;;  %v1426_v47 = vshll.u32 %v10533_v13, 16  ;;  %v1431_v6 = vshrl.u32 %v10542_v49, 16  ;;  %v1708_v13 = vld [vmem:[#allocation2 + $0x3c] sm:$0xf] }
 0x29f   : > { %8587 = vmatmul.mubr.bf16.gmra.mrb[12].mxu1 %v7780_v53  ;;  %v1403_v41 = vsel %vm10431_vm4, %v1395_v44, %v1402_v50  ;;  %v1702_v56 = vsel %vm10442_vm7, %v1411_v31, %v1701_v23  ;;  %v1434_v36 = vshll.u32 %v10542_v49, 16  ;;  %v1440_v18 = vshrl.u32 %v10547_v39, 16  ;;  %8459 = vmatpush3.bf16.msra.mxu0 %v9337_v8  ;;  %v9318_v25 = vld [vmem:[%s9979_s12 + $0x110] sm:$0xff]  }
 0x2a0   : > { %8605 = vmatpush3.bf16.msra.mxu1 %v9309_v35  ;;  %8606 = vmatprep.mubr.bf16.mxu1 %v9310_v16  ;;  %1697 = vst [vmem:[#allocation2 + $0x28] sm:$0xf] %v1403_v41  ;;  %v1419_v12 = vor.u32 %v1417_v55, %v10687_v62  ;;  %1703 = vst [vmem:[#allocation2 + $0x30] sm:$0xf] %v1702_v56  ;;  %v1425_v4 = vrot.slane %v1423_v61, 7  ;;  %v12685_v58 = vmax.f32 %v10282_v0, 0.0 }
 0x2a1   : > { %8638 = vmatprep.subr.bf16.mxu1 %v10672_v22  ;;  %v10703_v20 = vrot.slane %v1431_v6, 7  ;;  %v1443_v49 = vshll.u32 %v10547_v39, 16  ;;  %v1448_v60 = vshrl.u32 %v10600_v10, 16  ;;  %v1451_v48 = vshll.u32 %v10600_v10, 16  ;;  %v9311_v19 = vld [vmem:[#allocation2 + $0x18] sm:$0xff]  }
 0x2a2   : > { %v8099_v46 = vpack.c.bf16 %v12685_v58, %v12685_v58  ;;  %v1420_v40 = vsel %vm10431_vm4, %v1412_v7, %v1419_v12  ;;  %v1428_v14 = vor.u32 %v1426_v47, %v1425_v4  ;;  %v1429_v0 = vrot.slane %v1425_v4, 4  ;;  %v9325_v12 = vld [vmem:[%s9979_s12 + $0x120] sm:$0xff]   ;;  %v1794_v52 = vld [vmem:[#allocation2 + $0xc] sm:$0xf] }
 0x2a3   : > { %v1442_v33 = vrot.slane %v1440_v18, 7  ;;  %1704 = vst [vmem:[#allocation2 + $0x34] sm:$0xf] %v1420_v40  ;;  %v1436_v59 = vor.u32 %v1434_v36, %v10703_v20  ;;  %v10712_v11 = vrot.slane %v1448_v60, 7  ;;  %v1457_v39 = vshrl.u32 %v10634_v3, 16  ;;  %v9330_v60 = vld [vmem:[%s9979_s12 + $0x128] sm:$0xff]  }
 0x2a4   : > { %v1709_v10 = vsel %vm10442_vm7, %v1428_v14, %v1708_v13  ;;  %v1460_v29 = vshll.u32 %v10634_v3, 16  ;;  %v1370_v42 = vrot.slane %v10623_v57, 4  ;;  %v1465_v45 = vshrl.u32 %v8099_v46, 16  ;;  %v3709_v57 = vld [vmem:[#allocation2 + $0xc] sm:$0xf] }
 0x2a5   : > { %v1445_v35 = vor.u32 %v1443_v49, %v1442_v33  ;;  %v1446_v26 = vrot.slane %v1442_v33, 4  ;;  %v1437_v38 = vsel %vm10431_vm4, %v1429_v0, %v1436_v59  ;;  %1710 = vst [vmem:[#allocation2 + $0x3c] sm:$0xf] %v1709_v10  ;;  %v1453_v30 = vor.u32 %v1451_v48, %v10712_v11  ;;  %v1785_v49 = vld [vmem:[#allocation2 + $0xc0] sm:$0xf]  ;;  %v9341_v33 = vld [vmem:[%s9979_s12 + $0x78] sm:$0xff]  }
 0x2a6   : > { %v1459_v24 = vrot.slane %v1457_v39, 7  ;;  %1711 = vst [vmem:[#allocation2 + $0x40] sm:$0xf] %v1437_v38  ;;  %v1468_v44 = vshll.u32 %v8099_v46, 16  ;;  %v1387_v3 = vrot.slane %v10642_v54, 4  ;;  %v10730_v55 = vrot.slane %v1465_v45, 7  ;;  %8460 = vmatprep.subr.bf16.mxu0 %v9341_v33 }
 0x2a7   : > { %v1716_v23 = vsel %vm10442_vm7, %v1445_v35, %v1715_v1  ;;  %8607 = vmatmul.mubr.bf16.vlgmr.msra.gmra.mrb[16].mxu1 %v9311_v19  ;;  %v9313_v32 = vld [vmem:[#allocation2 + $0x24] sm:$0xff]   ;;  %v1454_v63 = vsel %vm10431_vm4, %v1446_v26, %v1453_v30  ;;  %v12686_v16 = vmax.f32 %v10316_v51, 0.0  ;;  %v1404_v31 = vrot.slane %v10674_v28, 4  ;;  %v10756_v59 = vld [vmem:[#allocation2] sm:$0xf]  ;;  %8461 = vmatpush3.bf16.msra.mxu0 %v9341_v33 }
 0x2a8   : > { %1717 = vst [vmem:[#allocation2 + $0x48] sm:$0xf] %v1716_v23  ;;  %v1462_v34 = vor.u32 %v1460_v29, %v1459_v24  ;;  %8639 = vmatpush3.bf16.msra.mxu1 %v10672_v22  ;;  %1718 = vst [vmem:[#allocation2 + $0x4c] sm:$0xf] %v1454_v63  ;;  %v1463_v27 = vrot.slane %v1459_v24, 4  ;;  %8610 = vmatprep.mubr.bf16.mxu1 %v9313_v32  ;;  %v1470_v61 = vor.u32 %v1468_v44, %v10730_v55  ;;  %v9321_v22 = vld [vmem:[%s9979_s12 + $0x118] sm:$0xff]  }
 0x2a9   : > { %8640 = vmatprep.subr.bf16.mxu1 %v9315_v9  ;;  %v8116_v50 = vpack.c.bf16 %v12686_v16, %v12686_v16  ;;  %v12687_v51 = vmax.f32 %v10318_v37, 0.0  ;;  %v1421_v36 = vrot.slane %v10687_v62, 4  ;;  %v1438_v40 = vrot.slane %v10703_v20, 4  ;;  %v10758_v39 = vld [vmem:[#allocation2 + $0x4] sm:$0xf] }
 0x2aa   : > { %v1723_v53 = vsel %vm10442_vm7, %v1462_v34, %v1722_v17  ;;  %v9314_v7 = vld [vmem:[#allocation2 + $0x30] sm:$0xff]   ;;  %v1471_v47 = vsel %vm10431_vm4, %v1463_v27, %v1470_v61  ;;  %v1455_v14 = vrot.slane %v10712_v11, 4  ;;  %vm1856_vm11 = vsmask.f32 3328  ;;  %v1840_v35 = vld [vmem:[#allocation2 + $0x8] sm:$0x1] }
 0x2ab   : > { %1724 = vst [vmem:[#allocation2 + $0x54] sm:$0xf] %v1723_v53  ;;  %1725 = vst [vmem:[#allocation2 + $0x58] sm:$0xf] %v1471_v47  ;;  %v8117_v56 = vpack.c.bf16 %v12687_v51, %v12687_v51  ;;  %v1610_v6 = vshrl.u32 %v8116_v50, 16  ;;  %v1613_v18 = vshll.u32 %v8116_v50, 16 }
 0x2ac   : > { %8641 = vmatpush3.bf16.msra.mxu1 %v9315_v9  ;;  %v1472_v8 = vrot.slane %v10730_v55, 4  ;;  %v1860_v26 = vshrl.u32 %v10756_v59, 16  ;;  %v1863_v29 = vshll.u32 %v10756_v59, 16  ;;  %v9335_v17 = vld [vmem:[%s9979_s12 + $0x130] sm:$0xff]   ;;  %v1869_v38 = vshll.u32 %v10758_v39, 16  ;;  %v9320_v63 = vld [vmem:[#allocation2 + $0x60] sm:$0xff]  }
 0x2ad   : > { %v9316_v41 = vld [vmem:[#allocation2 + $0x3c] sm:$0xff]   ;;  %8642 = vmatprep.subr.bf16.mxu1 %v9318_v25  ;;  %v1612_v4 = vrot.slane %v1610_v6, 7  ;;  %v1618_v58 = vshrl.u32 %v8117_v56, 16  ;;  %v1621_v46 = vshll.u32 %v8117_v56, 16  ;;  %v1873_v30 = vshrl.u32 %v10758_v39, 16  ;;  %v9323_v50 = vld [vmem:[#allocation2 + $0x6c] sm:$0xff]  }
 0x2ae   : > { %v1879_v24 = vshll.u32 %v1840_v35, 16  ;;  %v1684_v23 = vld [vmem:[#allocation2 + $0x14] sm:$0x1]  ;;  %vm1857_vm12 = vsmask.f32 7440  ;;  %v1862_v45 = vrot.slane %v1860_v26, 4 }
 0x2af   : > { %8611 = vmatmul.mubr.bf16.gmra.mrb[20].mxu1 %v9314_v7  ;;  %v9317_v13 = vld [vmem:[#allocation2 + $0x48] sm:$0xff]   ;;  %v1615_v48 = vor.u32 %v1613_v18, %v1612_v4  ;;  %v1616_v37 = vrot.slane %v1612_v4, 4  ;;  %v10748_v1 = vrot.slane %v1618_v58, 7  ;;  %v1865_v44 = vrot.slane %v1863_v29, 5  ;;  %v1795_v53 = vld [vmem:[#allocation2 + $0x10] sm:$0xf]  ;;  %vm10776_vm13 = vmor %vm1856_vm11, %vm1857_vm12 }
 0x2b0   : > { %8614 = vmatprep.mubr.bf16.mxu1 %v9316_v41  ;;  %8643 = vmatpush3.bf16.msra.mxu1 %v9318_v25  ;;  %v1685_v32 = vsel %vm10448_vm8, %v1370_v42, %v1684_v23  ;;  %v1871_v25 = vrot.slane %v1869_v38, 5  ;;  %v1875_v34 = vrot.slane %v1873_v30, 4  ;;  %v1881_v27 = vrot.slane %v1879_v24, 5  ;;  %v9340_v41 = vld [vmem:[%s9979_s12 + $0x138] sm:$0xff]  }
 0x2b1   : > { %8644 = vmatprep.subr.bf16.mxu1 %v9321_v22  ;;  %v1623_v19 = vor.u32 %v1621_v46, %v10748_v1  ;;  %v1786_v9 = vsel %vm10442_vm7, %v1615_v48, %v1785_v49  ;;  %v1625_v10 = vrot.slane %v10748_v1, 4  ;;  %1686 = vst [vmem:[#allocation2 + $0x14] sm:$0x1] %v1685_v32  ;;  %v1884_v16 = vshrl.u32 %v1794_v52, 16  ;;  %v3710_v6 = vld [vmem:[#allocation2 + $0x10] sm:$0xf] }
 0x2b2   : > { %v9319_v0 = vld [vmem:[#allocation2 + $0x54] sm:$0xff]   ;;  %1787 = vst [vmem:[#allocation2 + $0xc0] sm:$0xf] %v1786_v9  ;;  %v1866_v7 = vor.u32 %v1865_v44, %v1862_v45  ;;  %v1887_v61 = vshll.u32 %v1794_v52, 16  ;;  %v1897_v47 = vshrl.u32 %v1795_v53, 16  ;;  %v1876_v51 = vor.u32 %v1875_v34, %v1871_v25 }
 0x2b3   : > { %v1624_v5 = vsel %vm10431_vm4, %v1616_v37, %v1623_v19  ;;  %v1886_v56 = vrot.slane %v1884_v16, 4  ;;  %v3761_v4 = vshll.u32 %v3709_v57, 16  ;;  %v1691_v48 = vld [vmem:[#allocation2 + $0x20] sm:$0x1]  ;;  %v3767_v19 = vshll.u32 %v3710_v6, 16 }
 0x2b4   : > { %8645 = vmatpush3.bf16.msra.mxu1 %v9321_v22  ;;  %1788 = vst [vmem:[#allocation2 + $0xc4] sm:$0xf] %v1624_v5  ;;  %v1893_v22 = vshll.u32 %v1795_v53, 16  ;;  %v1867_v18 = vrot.slane %v1866_v7, 4  ;;  %v1889_v58 = vrot.slane %v1887_v61, 5  ;;  %v1899_v49 = vrot.slane %v1897_v47, 4 }
 0x2b5   : > { %8646 = vmatprep.subr.bf16.mxu1 %v9325_v12  ;;  %v1877_v37 = vrot.slane %v1876_v51, 4  ;;  %v3763_v33 = vrot.slane %v3761_v4, 5  ;;  %v3771_v29 = vshrl.u32 %v3710_v6, 16  ;;  %v3713_v5 = vld [vmem:[#allocation2 + $0x1c] sm:$0xf]  ;;  %v3769_v24 = vrot.slane %v3767_v19, 5 }
 0x2b6   : > { %v1895_v46 = vrot.slane %v1893_v22, 5  ;;  %v1872_v9 = vsel %vm10776_vm13, %v1867_v18, %v1871_v25  ;;  %v1890_v35 = vor.u32 %v1889_v58, %v1886_v56  ;;  %v1692_v23 = vsel %vm10448_vm8, %v1387_v3, %v1691_v48  ;;  %v10793_v25 = vld [vmem:[%s9979_s12 + $0x140] sm:$0xff]   ;;  %v9328_v61 = vld [vmem:[#allocation2 + $0x84] sm:$0xff]   ;;  %v1698_v58 = vld [vmem:[#allocation2 + $0x2c] sm:$0x1] }
 0x2b7   : > { %8615 = vmatmul.mubr.bf16.gmra.mrb[24].mxu1 %v9317_v13  ;;  %v10781_v13 = vld [vmem:[%s9979_s12] sm:$0xff]   ;;  %v1882_v38 = vsel %vm10776_vm13, %v1877_v37, %v1881_v27  ;;  %1693 = vst [vmem:[#allocation2 + $0x20] sm:$0x1] %v1692_v23  ;;  %v3773_v53 = vrot.slane %v3771_v29, 4  ;;  %v3791_v51 = vshll.u32 %v3713_v5, 16  ;;  %v3795_v18 = vshrl.u32 %v3713_v5, 16 }
 0x2b8   : > { %8618 = vmatprep.mubr.bf16.mxu1 %v9319_v0  ;;  %8647 = vmatpush3.bf16.msra.mxu1 %v9325_v12  ;;  %v3758_v12 = vshrl.u32 %v3709_v57, 16  ;;  %v1900_v26 = vor.u32 %v1899_v49, %v1895_v46  ;;  %v7685_v45 = vcombine.low %v1872_v9, %v1882_v38  ;;  %v1841_v44 = vld [vmem:[#allocation2 + $0x14] sm:$0x1]  ;;  %v1891_v32 = vrot.slane %v1890_v35, 4  ;;  %v9324_v7 = vld [vmem:[#allocation2 + $0x78] sm:$0xff]  }
 0x2b9   : > { %8648 = vmatprep.subr.bf16.mxu1 %v9330_v60  ;;  %8494 = vmatprep.subr.bf16.mxu0 %v10781_v13  ;;  %v3711_v52 = vld [vmem:[#allocation2 + $0x14] sm:$0x1]  ;;  %v1903_v34 = vshll.u32 %v1841_v44, 16  ;;  %v3774_v57 = vor.u32 %v3773_v53, %v3769_v24  ;;  %v1797_v56 = vld [vmem:[#allocation2 + $0x1c] sm:$0xf]  ;;  %v3793_v48 = vrot.slane %v3791_v51, 5 }
 0x2ba   : > { %v3760_v0 = vrot.slane %v3758_v12, 4  ;;  %8462 = vmatprep.mubr.bf16.mxu0 %v7685_v45  ;;  %v1896_v54 = vsel %vm10776_vm13, %v1891_v32, %v1895_v46  ;;  %v3777_v16 = vshll.u32 %v3711_v52, 16  ;;  %v3797_v19 = vrot.slane %v3795_v18, 4  ;;  %v1798_v35 = vld [vmem:[#allocation2 + $0x24] sm:$0xf] }
 0x2bb   : > { %v1905_v22 = vrot.slane %v1903_v34, 5  ;;  %v3775_v49 = vrot.slane %v3774_v57, 4  ;;  %v1917_v38 = vshll.u32 %v1797_v56, 16  ;;  %v1799_v32 = vld [vmem:[#allocation2 + $0x28] sm:$0xf]  ;;  %v1921_v34 = vshrl.u32 %v1797_v56, 16 }
 0x2bc   : > { %8649 = vmatpush3.bf16.msra.mxu1 %v9330_v60  ;;  %v3712_v60 = vld [vmem:[#allocation2 + $0x18] sm:$0xf]  ;;  %v3764_v30 = vor.u32 %v3763_v33, %v3760_v0  ;;  %v3779_v6 = vrot.slane %v3777_v16, 5  ;;  %v3798_v45 = vor.u32 %v3797_v19, %v3793_v48  ;;  %v3715_v53 = vld [vmem:[#allocation2 + $0x24] sm:$0xf]  ;;  %v1932_v16 = vshrl.u32 %v1798_v35, 16 }
 0x2bd   : > { %8650 = vmatprep.subr.bf16.mxu1 %v9335_v17  ;;  %v3782_v3 = vshrl.u32 %v3712_v60, 16  ;;  %v1945_v56 = vshrl.u32 %v1799_v32, 16 }
 0x2be   : > { %v3765_v27 = vrot.slane %v3764_v30, 4  ;;  %v3714_v29 = vld [vmem:[#allocation2 + $0x20] sm:$0x1]  ;;  %v1699_v30 = vsel %vm10448_vm8, %v1404_v31, %v1698_v58  ;;  %v3799_v31 = vrot.slane %v3798_v45, 4  ;;  %v1934_v51 = vrot.slane %v1932_v16, 4 }
 0x2bf   : > { %8619 = vmatmul.mubr.bf16.gmra.mrb[28].mxu1 %v9320_v63  ;;  %v1901_v63 = vrot.slane %v1900_v26, 4  ;;  %v3784_v12 = vrot.slane %v3782_v3, 4  ;;  %v3780_v26 = vsel %vm10776_vm13, %v3775_v49, %v3779_v6  ;;  %v3801_v44 = vshll.u32 %v3714_v29, 16  ;;  %1700 = vst [vmem:[#allocation2 + $0x2c] sm:$0x1] %v1699_v30  ;;  %v9349_v3 = vld [vmem:[%s9979_s12 + $0x10] sm:$0xff]  }
 0x2c0   : > { %8622 = vmatprep.mubr.bf16.mxu1 %v9323_v50  ;;  %8651 = vmatpush3.bf16.msra.mxu1 %v9335_v17  ;;  %v3785_v50 = vshll.u32 %v3712_v60, 16  ;;  %v1796_v17 = vld [vmem:[#allocation2 + $0x18] sm:$0xf]  ;;  %v3770_v47 = vsel %vm10776_vm13, %v3765_v27, %v3769_v24  ;;  %v1842_v60 = vld [vmem:[#allocation2 + $0x20] sm:$0x1]  ;;  %v1947_v49 = vrot.slane %v1945_v56, 4 }
 0x2c1   : > { %8652 = vmatprep.subr.bf16.mxu1 %v9340_v41  ;;  %v1906_v46 = vsel %vm10776_vm13, %v1901_v63, %v1905_v22  ;;  %v1908_v37 = vshrl.u32 %v1796_v17, 16  ;;  %v1911_v9 = vshll.u32 %v1796_v17, 16  ;;  %v10809_v24 = vcombine.low %v3770_v47, %v3780_v26  ;;  %v9333_v47 = vld [vmem:[#allocation2 + $0x9c] sm:$0xff]   ;;  %v3716_v6 = vld [vmem:[#allocation2 + $0x28] sm:$0xf] }
 0x2c2   : > { %v3787_v4 = vrot.slane %v3785_v50, 5  ;;  %v7686_v0 = vcombine.low %v1896_v54, %v1906_v46  ;;  %v1919_v63 = vrot.slane %v1917_v38, 5  ;;  %v1927_v27 = vshll.u32 %v1842_v60, 16  ;;  %v9329_v50 = vld [vmem:[#allocation2 + $0x90] sm:$0xff]   ;;  %v1705_v29 = vld [vmem:[#allocation2 + $0x38] sm:$0x1] }
 0x2c3   : > { %v1910_v5 = vrot.slane %v1908_v37, 4  ;;  %v1913_v52 = vrot.slane %v1911_v9, 5  ;;  %v3803_v54 = vrot.slane %v3801_v44, 5  ;;  %v1935_v22 = vshll.u32 %v1798_v35, 16 }
 0x2c4   : > { %8653 = vmatpush3.bf16.msra.mxu1 %v9340_v41  ;;  %v3788_v33 = vor.u32 %v3787_v4, %v3784_v12  ;;  %v9348_v41 = vld [vmem:[%s9979_s12 + $0x8] sm:$0xff]   ;;  %8463 = vmatmul.mubr.bf16.vlgmr.msra.gmra.mrb[64].mxu0 %v7686_v0  ;;  %v3809_v37 = vshll.u32 %v3715_v53, 16  ;;  %v9351_v0 = vld [vmem:[%s9979_s12 + $0x18] sm:$0xff]   ;;  %v3815_v26 = vshll.u32 %v3716_v6, 16 }
 0x2c5   : > { %8686 = vmatprep.subr.bf16.mxu1 %v10793_v25  ;;  %8495 = vmatpush3.bf16.msra.mxu0 %v10781_v13  ;;  %v1914_v17 = vor.u32 %v1913_v52, %v1910_v5  ;;  %v3804_v57 = vsel %vm10776_vm13, %v3799_v31, %v3803_v54  ;;  %v1941_v13 = vshll.u32 %v1799_v32, 16  ;;  %v1937_v58 = vrot.slane %v1935_v22, 5  ;;  %v3718_v52 = vld [vmem:[#allocation2 + $0x30] sm:$0xf]  ;;  %v9352_v31 = vld [vmem:[%s9979_s12 + $0x20] sm:$0xff]   ;;  %v9334_v54 = vld [vmem:[#allocation2 + $0xa8] sm:$0xff]  }
 0x2c6   : > { %v3789_v23 = vrot.slane %v3788_v33, 4  ;;  %8496 = vmatprep.subr.bf16.mxu0 %v9348_v41  ;;  %v1843_v9 = vld [vmem:[#allocation2 + $0x2c] sm:$0x1]  ;;  %v3811_v30 = vrot.slane %v3809_v37, 5  ;;  %v3817_v44 = vrot.slane %v3815_v26, 5  ;;  %v3819_v32 = vshrl.u32 %v3716_v6, 16 }
 0x2c7   : > { %8623 = vmatmul.mubr.bf16.gmra.mrb[0].mxu1 %v9324_v7  ;;  %v1923_v7 = vrot.slane %v1921_v34, 4  ;;  %v1915_v4 = vrot.slane %v1914_v17, 4  ;;  %v1943_v46 = vrot.slane %v1941_v13, 5  ;;  %v1938_v35 = vor.u32 %v1937_v58, %v1934_v51 }
 0x2c8   : > { %8626 = vmatprep.mubr.bf16.mxu1 %v9328_v61  ;;  %v3794_v28 = vsel %vm10776_vm13, %v3789_v23, %v3793_v48  ;;  %v1929_v61 = vrot.slane %v1927_v27, 5  ;;  %v3806_v48 = vshrl.u32 %v3715_v53, 16  ;;  %v1951_v5 = vshll.u32 %v1843_v9, 16 }
 0x2c9   : > { %v10817_v12 = vcombine.low %v3794_v28, %v3804_v57  ;;  %v1924_v18 = vor.u32 %v1923_v7, %v1919_v63  ;;  %8497 = vmatpush3.bf16.msra.mxu0 %v9348_v41  ;;  %v1920_v33 = vsel %vm10776_vm13, %v1915_v4, %v1919_v63  ;;  %v1948_v60 = vor.u32 %v1947_v49, %v1943_v46  ;;  %v3717_v41 = vld [vmem:[#allocation2 + $0x2c] sm:$0x1]  ;;  %v3719_v28 = vld [vmem:[#allocation2 + $0x34] sm:$0xf]  ;;  %v1712_v49 = vld [vmem:[#allocation2 + $0x44] sm:$0x1] }
 0x2ca   : > { %8498 = vmatprep.subr.bf16.mxu0 %v9349_v3  ;;  %v3808_v38 = vrot.slane %v3806_v48, 4  ;;  %v1939_v45 = vrot.slane %v1938_v35, 4  ;;  %v1953_v27 = vrot.slane %v1951_v5, 5  ;;  %v3825_v17 = vshll.u32 %v3717_v41, 16  ;;  %v9354_v48 = vld [vmem:[%s9979_s12 + $0x28] sm:$0xff]  }
 0x2cb   : > { %v1925_v19 = vrot.slane %v1924_v18, 4  ;;  %v1949_v34 = vrot.slane %v1948_v60, 4  ;;  %v1706_v7 = vsel %vm10448_vm8, %v1421_v36, %v1705_v29  ;;  %v3830_v57 = vshrl.u32 %v3718_v52, 16  ;;  %v1801_v18 = vld [vmem:[#allocation2 + $0x34] sm:$0xf] }
 0x2cc   : > { %v3812_v53 = vor.u32 %v3811_v30, %v3808_v38  ;;  %v1944_v16 = vsel %vm10776_vm13, %v1939_v45, %v1943_v46  ;;  %1707 = vst [vmem:[#allocation2 + $0x38] sm:$0x1] %v1706_v7  ;;  %v3833_v51 = vshll.u32 %v3718_v52, 16  ;;  %v3827_v6 = vrot.slane %v3825_v17, 5  ;;  %v1802_v35 = vld [vmem:[#allocation2 + $0x3c] sm:$0xf] }
 0x2cd   : > { %v1930_v23 = vsel %vm10776_vm13, %v1925_v19, %v1929_v61  ;;  %8499 = vmatpush3.bf16.msra.mxu0 %v9349_v3  ;;  %v1800_v61 = vld [vmem:[#allocation2 + $0x30] sm:$0xf]  ;;  %v9338_v3 = vld [vmem:[#allocation2 + $0xb4] sm:$0xff]   ;;  %v1954_v22 = vsel %vm10776_vm13, %v1949_v34, %v1953_v27  ;;  %v3839_v4 = vshll.u32 %v3719_v28, 16  ;;  %v3832_v36 = vrot.slane %v3830_v57, 4  ;;  %v9339_v45 = vld [vmem:[#allocation2 + $0xc0] sm:$0xff]  }
 0x2ce   : > { %v7687_v63 = vcombine.low %v1920_v33, %v1930_v23  ;;  %8500 = vmatprep.subr.bf16.mxu0 %v9351_v0  ;;  %v7688_v13 = vcombine.low %v1944_v16, %v1954_v22  ;;  %v3835_v58 = vrot.slane %v3833_v51, 5  ;;  %v3843_v46 = vshrl.u32 %v3719_v28, 16  ;;  %v1719_v5 = vld [vmem:[#allocation2 + $0x50] sm:$0x1]  ;;  %v1803_v34 = vld [vmem:[#allocation2 + $0x40] sm:$0xf] }
 0x2cf   : > { %8627 = vmatmul.mubr.bf16.gmra.mrb[4].mxu1 %v9329_v50  ;;  %v3821_v50 = vrot.slane %v3819_v32, 4  ;;  %v3841_v33 = vrot.slane %v3839_v4, 5  ;;  %v1956_v19 = vshrl.u32 %v1800_v61, 16  ;;  %v1959_v9 = vshll.u32 %v1800_v61, 16  ;;  %v9355_v27 = vld [vmem:[%s9979_s12 + $0x30] sm:$0xff]   ;;  %v9357_v51 = vld [vmem:[%s9979_s12 + $0x38] sm:$0xff]  }
 0x2d0   : > { %8630 = vmatprep.mubr.bf16.mxu1 %v9333_v47  ;;  %8466 = vmatprep.mubr.bf16.mxu0 %v7687_v63  ;;  %v3813_v47 = vrot.slane %v3812_v53, 4  ;;  %v3836_v26 = vor.u32 %v3835_v58, %v3832_v36  ;;  %v3845_v29 = vrot.slane %v3843_v46, 4  ;;  %v1969_v60 = vshrl.u32 %v1801_v18, 16  ;;  %v3721_v61 = vld [vmem:[#allocation2 + $0x3c] sm:$0xf] }
 0x2d1   : > { %v3822_v56 = vor.u32 %v3821_v50, %v3817_v44  ;;  %8501 = vmatpush3.bf16.msra.mxu0 %v9351_v0  ;;  %v1965_v0 = vshll.u32 %v1801_v18, 16  ;;  %v1958_v38 = vrot.slane %v1956_v19, 4  ;;  %v1961_v30 = vrot.slane %v1959_v9, 5  ;;  %v3722_v4 = vld [vmem:[#allocation2 + $0x40] sm:$0xf] }
 0x2d2   : > { %v3818_v62 = vsel %vm10776_vm13, %v3813_v47, %v3817_v44  ;;  %8502 = vmatprep.subr.bf16.mxu0 %v9352_v31  ;;  %8467 = vmatmul.mubr.bf16.gmra.mrb[68].mxu0 %v7688_v13  ;;  %v1713_v23 = vsel %vm10448_vm8, %v1438_v40, %v1712_v49  ;;  %v3837_v32 = vrot.slane %v3836_v26, 4  ;;  %v3846_v52 = vor.u32 %v3845_v29, %v3841_v33 }
 0x2d3   : > { %v3823_v37 = vrot.slane %v3822_v56, 4  ;;  %v1967_v63 = vrot.slane %v1965_v0, 5  ;;  %1714 = vst [vmem:[#allocation2 + $0x44] sm:$0x1] %v1713_v23  ;;  %v3720_v53 = vld [vmem:[#allocation2 + $0x38] sm:$0x1]  ;;  %v1720_v40 = vsel %vm10448_vm8, %v1455_v14, %v1719_v5 }
 0x2d4   : > { %v1844_v28 = vld [vmem:[#allocation2 + $0x38] sm:$0x1]  ;;  %v1971_v16 = vrot.slane %v1969_v60, 4  ;;  %v1980_v20 = vshrl.u32 %v1802_v35, 16  ;;  %v3847_v50 = vrot.slane %v3846_v52, 4  ;;  %v3849_v17 = vshll.u32 %v3720_v53, 16 }
 0x2d5   : > { %v3828_v41 = vsel %vm10776_vm13, %v3823_v37, %v3827_v6  ;;  %8503 = vmatpush3.bf16.msra.mxu0 %v9352_v31  ;;  %v3842_v31 = vsel %vm10776_vm13, %v3837_v32, %v3841_v33  ;;  %v1975_v7 = vshll.u32 %v1844_v28, 16  ;;  %1721 = vst [vmem:[#allocation2 + $0x50] sm:$0x1] %v1720_v40  ;;  %v1983_v57 = vshll.u32 %v1802_v35, 16  ;;  %v3724_v37 = vld [vmem:[#allocation2 + $0x48] sm:$0xf] }
 0x2d6   : > { %v10842_v44 = vcombine.low %v3818_v62, %v3828_v41  ;;  %8504 = vmatprep.subr.bf16.mxu0 %v9354_v48  ;;  %v1972_v22 = vor.u32 %v1971_v16, %v1967_v63  ;;  %v1982_v47 = vrot.slane %v1980_v20, 4  ;;  %v3851_v13 = vrot.slane %v3849_v17, 5  ;;  %v3725_v41 = vld [vmem:[#allocation2 + $0x4c] sm:$0xf]  ;;  %v1804_v32 = vld [vmem:[#allocation2 + $0x48] sm:$0xf] }
 0x2d7   : > { %8631 = vmatmul.mubr.bf16.gmra.mrb[8].mxu1 %v9334_v54  ;;  %v1962_v54 = vor.u32 %v1961_v30, %v1958_v38  ;;  %v1977_v56 = vrot.slane %v1975_v7, 5  ;;  %v1989_v11 = vshll.u32 %v1803_v34, 16  ;;  %v1993_v6 = vshrl.u32 %v1803_v34, 16  ;;  %v9343_v52 = vld [vmem:[%s9979_s12 + $0x148] sm:$0xff]  }
 0x2d8   : > { %8634 = vmatprep.mubr.bf16.mxu1 %v9338_v3  ;;  %v1973_v18 = vrot.slane %v1972_v22, 4  ;;  %v1985_v62 = vrot.slane %v1983_v57, 5  ;;  %v3854_v36 = vshrl.u32 %v3721_v61, 16  ;;  %v3852_v58 = vsel %vm10776_vm13, %v3847_v50, %v3851_v13  ;;  %v9344_v13 = vld [vmem:[%s9979_s12 + $0x150] sm:$0xff]  }
 0x2d9   : > { %v1963_v3 = vrot.slane %v1962_v54, 4  ;;  %8505 = vmatpush3.bf16.msra.mxu0 %v9354_v48  ;;  %v1991_v46 = vrot.slane %v1989_v11, 5  ;;  %v1995_v49 = vrot.slane %v1993_v6, 4  ;;  %v3857_v48 = vshll.u32 %v3721_v61, 16  ;;  %v9440_v61 = vld [vmem:[%s9979_s12 + $0x80] sm:$0xff]  }
 0x2da   : > { %8506 = vmatprep.subr.bf16.mxu0 %v9355_v27  ;;  %v10857_v33 = vcombine.low %v3842_v31, %v3852_v58  ;;  %v1978_v19 = vsel %vm10776_vm13, %v1973_v18, %v1977_v56  ;;  %v1845_v9 = vld [vmem:[#allocation2 + $0x44] sm:$0x1]  ;;  %v1986_v35 = vor.u32 %v1985_v62, %v1982_v47  ;;  %v3856_v29 = vrot.slane %v3854_v36, 4  ;;  %v1805_v56 = vld [vmem:[#allocation2 + $0x4c] sm:$0xf] }
 0x2db   : > { %v1968_v14 = vsel %vm10776_vm13, %v1963_v3, %v1967_v63  ;;  %v3723_v26 = vld [vmem:[#allocation2 + $0x44] sm:$0x1]  ;;  %v1999_v60 = vshll.u32 %v1845_v9, 16  ;;  %v3859_v5 = vrot.slane %v3857_v48, 5  ;;  %v3863_v30 = vshll.u32 %v3722_v4, 16 }
 0x2dc   : > { %v7689_v0 = vcombine.low %v1968_v14, %v1978_v19  ;;  %v1987_v38 = vrot.slane %v1986_v35, 4  ;;  %v3867_v23 = vshrl.u32 %v3722_v4, 16  ;;  %v3726_v28 = vld [vmem:[#allocation2 + $0x50] sm:$0x1]  ;;  %v3878_v54 = vshrl.u32 %v3724_v37, 16 }
 0x2dd   : > { %8507 = vmatpush3.bf16.msra.mxu0 %v9355_v27  ;;  %v2001_v34 = vrot.slane %v1999_v60, 5  ;;  %v3860_v53 = vor.u32 %v3859_v5, %v3856_v29  ;;  %v3865_v16 = vrot.slane %v3863_v30, 5  ;;  %v3881_v7 = vshll.u32 %v3724_v37, 16  ;;  %v1726_v14 = vld [vmem:[#allocation2 + $0x5c] sm:$0x1]  ;;  %v9345_v29 = vld [vmem:[%s9979_s12 + $0x158] sm:$0xff]  }
 0x2de   : > { %8508 = vmatprep.subr.bf16.mxu0 %v9357_v51  ;;  %8470 = vmatprep.mubr.bf16.mxu0 %v7689_v0  ;;  %v1992_v27 = vsel %vm10776_vm13, %v1987_v38, %v1991_v46  ;;  %v3869_v20 = vrot.slane %v3867_v23, 4  ;;  %v3880_v17 = vrot.slane %v3878_v54, 4  ;;  %v3887_v47 = vshll.u32 %v3725_v41, 16  ;;  %v1846_v36 = vld [vmem:[#allocation2 + $0x50] sm:$0x1] }
 0x2df   : > { %8635 = vmatmul.mubr.bf16.gmra.mrb[12].mxu1 %v9339_v45  ;;  %v3873_v45 = vshll.u32 %v3723_v26, 16  ;;  %v3861_v50 = vrot.slane %v3860_v53, 4  ;;  %v3891_v57 = vshrl.u32 %v3725_v41, 16  ;;  %v3883_v11 = vrot.slane %v3881_v7, 5  ;;  %v1807_v37 = vld [vmem:[#allocation2 + $0x58] sm:$0xf] }
 0x2e0   : > { %8654 = vmatprep.mubr.bf16.mxu1 %v10809_v24  ;;  %v1996_v24 = vor.u32 %v1995_v49, %v1991_v46  ;;  %v3870_v22 = vor.u32 %v3869_v20, %v3865_v16  ;;  %v3897_v6 = vshll.u32 %v3726_v28, 16  ;;  %v2004_v4 = vshrl.u32 %v1804_v32, 16  ;;  %v1806_v46 = vld [vmem:[#allocation2 + $0x54] sm:$0xf]  ;;  %v3728_v53 = vld [vmem:[#allocation2 + $0x58] sm:$0xf] }
 0x2e1   : > { %v3875_v40 = vrot.slane %v3873_v45, 5  ;;  %8509 = vmatpush3.bf16.msra.mxu0 %v9357_v51  ;;  %v3866_v51 = vsel %vm10776_vm13, %v3861_v50, %v3865_v16  ;;  %v3889_v18 = vrot.slane %v3887_v47, 5  ;;  %v3893_v62 = vrot.slane %v3891_v57, 4  ;;  %v3727_v45 = vld [vmem:[#allocation2 + $0x54] sm:$0xf] }
 0x2e2   : > { %v1997_v63 = vrot.slane %v1996_v24, 4  ;;  %8542 = vmatprep.subr.bf16.mxu0 %v9440_v61  ;;  %v2007_v58 = vshll.u32 %v1804_v32, 16  ;;  %v3884_v49 = vor.u32 %v3883_v11, %v3880_v17  ;;  %v2006_v48 = vrot.slane %v2004_v4, 4  ;;  %v9347_v61 = vld [vmem:[%s9979_s12 + $0x160] sm:$0xff]  }
 0x2e3   : > { %v3894_v9 = vor.u32 %v3893_v62, %v3889_v18  ;;  %v2017_v26 = vshrl.u32 %v1805_v56, 16  ;;  %v2023_v5 = vshll.u32 %v1846_v36, 16  ;;  %v1727_v23 = vsel %vm10448_vm8, %v1472_v8, %v1726_v14  ;;  %v3731_v62 = vld [vmem:[#allocation2 + $0x64] sm:$0xf]  ;;  %v3732_v36 = vld [vmem:[#allocation2 + $0x68] sm:$0x1] }
 0x2e4   : > { %v2002_v31 = vsel %vm10776_vm13, %v1997_v63, %v2001_v34  ;;  %v2009_v35 = vrot.slane %v2007_v58, 5  ;;  %v3885_v24 = vrot.slane %v3884_v49, 4  ;;  %1728 = vst [vmem:[#allocation2 + $0x5c] sm:$0x1] %v1727_v23  ;;  %v2031_v34 = vshll.u32 %v1806_v46, 16 }
 0x2e5   : > { %v7690_v3 = vcombine.low %v1992_v27, %v2002_v31  ;;  %v3895_v41 = vrot.slane %v3894_v9, 4  ;;  %v2019_v30 = vrot.slane %v2017_v26, 4  ;;  %v2025_v63 = vrot.slane %v2023_v5, 5  ;;  %v3730_v31 = vld [vmem:[#allocation2 + $0x60] sm:$0xf] }
 0x2e6   : > { %v2010_v38 = vor.u32 %v2009_v35, %v2006_v48  ;;  %v3890_v32 = vsel %vm10776_vm13, %v3885_v24, %v3889_v18  ;;  %v2037_v27 = vshll.u32 %v1807_v37, 16  ;;  %v2033_v20 = vrot.slane %v2031_v34, 5  ;;  %v9353_v24 = vld [vmem:[%s9979_s12 + $0x170] sm:$0xff]  }
 0x2e7   : > { %8655 = vmatmul.mubr.bf16.vlgmr.msra.gmra.mrb[16].mxu1 %v10817_v12  ;;  %8471 = vmatmul.mubr.bf16.gmra.mrb[72].mxu0 %v7690_v3  ;;  %v3871_v12 = vrot.slane %v3870_v22, 4  ;;  %v3902_v7 = vshrl.u32 %v3727_v45, 16  ;;  %v3905_v47 = vshll.u32 %v3727_v45, 16  ;;  %v3911_v57 = vshll.u32 %v3728_v53, 16 }
 0x2e8   : > { %8687 = vmatpush3.bf16.msra.mxu1 %v10793_v25  ;;  %8658 = vmatprep.mubr.bf16.mxu1 %v10842_v44  ;;  %v3899_v25 = vrot.slane %v3897_v6, 5  ;;  %v2013_v44 = vshll.u32 %v1805_v56, 16  ;;  %v2011_v54 = vrot.slane %v2010_v38, 4  ;;  %v3926_v11 = vshrl.u32 %v3730_v31, 16  ;;  %v9350_v6 = vld [vmem:[%s9979_s12 + $0x168] sm:$0xff]  }
 0x2e9   : > { %8688 = vmatprep.subr.bf16.mxu1 %v9343_v52  ;;  %v3876_v19 = vsel %vm10776_vm13, %v3871_v12, %v3875_v40  ;;  %v2041_v40 = vshrl.u32 %v1807_v37, 16  ;;  %v3904_v56 = vrot.slane %v3902_v7, 4  ;;  %v3907_v18 = vrot.slane %v3905_v47, 5 }
 0x2ea   : > { %v7849_v0 = vcombine.low %v3866_v51, %v3876_v19  ;;  %v2015_v60 = vrot.slane %v2013_v44, 5  ;;  %v3900_v28 = vsel %vm10776_vm13, %v3895_v41, %v3899_v25  ;;  %v3915_v51 = vshrl.u32 %v3728_v53, 16 }
 0x2eb   : > { %v7850_v8 = vcombine.low %v3890_v32, %v3900_v28  ;;  %v2043_v22 = vrot.slane %v2041_v40, 4  ;;  %v1847_v58 = vld [vmem:[#allocation2 + $0x5c] sm:$0x1]  ;;  %v3913_v49 = vrot.slane %v3911_v57, 5  ;;  %v7709_v48 = vcombine.low %v10756_v59, %v10758_v39 }
 0x2ec   : > { %8689 = vmatpush3.bf16.msra.mxu1 %v9343_v52  ;;  %v2028_v52 = vshrl.u32 %v1806_v46, 16  ;;  %v2020_v55 = vor.u32 %v2019_v30, %v2015_v60  ;;  %v2016_v50 = vsel %vm10776_vm13, %v2011_v54, %v2015_v60  ;;  %v3729_v46 = vld [vmem:[#allocation2 + $0x5c] sm:$0x1]  ;;  %v3917_v25 = vrot.slane %v3915_v51, 4  ;;  %v1810_v54 = vld [vmem:[#allocation2 + $0x6c] sm:$0xf] }
 0x2ed   : > { %8690 = vmatprep.subr.bf16.mxu1 %v9344_v13  ;;  %v2047_v19 = vshll.u32 %v1847_v58, 16  ;;  %v3908_v9 = vor.u32 %v3907_v18, %v3904_v56  ;;  %v3921_v26 = vshll.u32 %v3729_v46, 16  ;;  %v3935_v41 = vshll.u32 %v3731_v62, 16  ;;  %v3733_v51 = vld [vmem:[#allocation2 + $0x6c] sm:$0xf]  ;;  %v10906_v18 = vld [vmem:[%s9979_s12 + $0x180] sm:$0xff]  }
 0x2ee   : > { %v2030_v16 = vrot.slane %v2028_v52, 4  ;;  %v2021_v17 = vrot.slane %v2020_v55, 4  ;;  %v3918_v35 = vor.u32 %v3917_v25, %v3913_v49  ;;  %v3939_v38 = vshrl.u32 %v3731_v62, 16  ;;  %v9442_v46 = vld [vmem:[#allocation2 + $0x70] sm:$0xf] }
 0x2ef   : > { %8659 = vmatmul.mubr.bf16.gmra.mrb[20].mxu1 %v10857_v33  ;;  %v2039_v33 = vrot.slane %v2037_v27, 5  ;;  %v2049_v60 = vrot.slane %v2047_v19, 5  ;;  %v3909_v5 = vrot.slane %v3908_v9, 4  ;;  %v3923_v23 = vrot.slane %v3921_v26, 5  ;;  %v9443_v19 = vld [vmem:[#allocation2 + $0x74] sm:$0x1] }
 0x2f0   : > { %8662 = vmatprep.mubr.bf16.mxu1 %v7849_v0  ;;  %8691 = vmatpush3.bf16.msra.mxu1 %v9344_v13  ;;  %v2034_v3 = vor.u32 %v2033_v20, %v2030_v16  ;;  %v2026_v13 = vsel %vm10776_vm13, %v2021_v17, %v2025_v63  ;;  %v3929_v0 = vshll.u32 %v3730_v31, 16  ;;  %v3919_v30 = vrot.slane %v3918_v35, 4  ;;  %v1808_v63 = vld [vmem:[#allocation2 + $0x60] sm:$0xf] }
 0x2f1   : > { %8692 = vmatprep.subr.bf16.mxu1 %v9345_v29  ;;  %v7691_v4 = vcombine.low %v2016_v50, %v2026_v13  ;;  %v2044_v12 = vor.u32 %v2043_v22, %v2039_v33  ;;  %v3945_v32 = vshll.u32 %v3732_v36, 16  ;;  %v3914_v34 = vsel %vm10776_vm13, %v3909_v5, %v3913_v49  ;;  %v9356_v22 = vld [vmem:[%s9979_s12 + $0x178] sm:$0xff]  }
 0x2f2   : > { %v2035_v14 = vrot.slane %v2034_v3, 4  ;;  %v3931_v45 = vrot.slane %v3929_v0, 5  ;;  %v3937_v53 = vrot.slane %v3935_v41, 5  ;;  %v3941_v28 = vrot.slane %v3939_v38, 4  ;;  %v3735_v0 = vld [vmem:[#allocation2 + $0x74] sm:$0x1] }
 0x2f3   : > { %8474 = vmatprep.mubr.bf16.mxu0 %v7691_v4  ;;  %v2045_v37 = vrot.slane %v2044_v12, 4  ;;  %v3924_v27 = vsel %vm10776_vm13, %v3919_v30, %v3923_v23  ;;  %v3947_v16 = vrot.slane %v3945_v32, 5  ;;  %v2052_v31 = vshrl.u32 %v1808_v63, 16  ;;  %v3734_v12 = vld [vmem:[#allocation2 + $0x70] sm:$0xf] }
 0x2f4   : > { %8693 = vmatpush3.bf16.msra.mxu1 %v9345_v29  ;;  %v2040_v44 = vsel %vm10776_vm13, %v2035_v14, %v2039_v33  ;;  %v3928_v29 = vrot.slane %v3926_v11, 4  ;;  %v7851_v20 = vcombine.low %v3914_v34, %v3924_v27  ;;  %v3942_v40 = vor.u32 %v3941_v28, %v3937_v53  ;;  %v9441_v33 = vld [vmem:[#allocation2 + $0x64] sm:$0xf]  ;;  %v3736_v23 = vld [vmem:[#allocation2 + $0x78] sm:$0xf] }
 0x2f5   : > { %8694 = vmatprep.subr.bf16.mxu1 %v9347_v61  ;;  %v2050_v52 = vsel %vm10776_vm13, %v2045_v37, %v2049_v60  ;;  %v2055_v50 = vshll.u32 %v1808_v63, 16  ;;  %v2061_v7 = vshll.u32 %v9441_v33, 16  ;;  %v2076_v3 = vshrl.u32 %v1810_v54, 16 }
 0x2f6   : > { %v7692_v55 = vcombine.low %v2040_v44, %v2050_v52  ;;  %v3943_v47 = vrot.slane %v3942_v40, 4  ;;  %v2054_v57 = vrot.slane %v2052_v31, 4  ;;  %v2079_v56 = vshll.u32 %v1810_v54, 16  ;;  %v3737_v54 = vld [vmem:[#allocation2 + $0x7c] sm:$0xf] }
 0x2f7   : > { %8663 = vmatmul.mubr.bf16.gmra.mrb[24].mxu1 %v7850_v8  ;;  %v3932_v8 = vor.u32 %v3931_v45, %v3928_v29  ;;  %v2057_v13 = vrot.slane %v2055_v50, 5  ;;  %v2063_v4 = vrot.slane %v2061_v7, 5  ;;  %v2078_v14 = vrot.slane %v2076_v3, 4  ;;  %v3738_v50 = vld [vmem:[#allocation2 + $0x80] sm:$0x1] }
 0x2f8   : > { %8695 = vmatpush3.bf16.msra.mxu1 %v9347_v61  ;;  %8475 = vmatmul.mubr.bf16.gmra.mrb[76].mxu0 %v7692_v55  ;;  %v2065_v61 = vshrl.u32 %v9441_v33, 16  ;;  %v3948_v62 = vsel %vm10776_vm13, %v3943_v47, %v3947_v16  ;;  %v2081_v58 = vrot.slane %v2079_v56, 5  ;;  %v2085_v49 = vshll.u32 %v9442_v46, 16  ;;  %v1812_v3 = vld [vmem:[#allocation2 + $0x78] sm:$0xf] }
 0x2f9   : > { %8696 = vmatprep.subr.bf16.mxu1 %v9350_v6  ;;  %v3933_v17 = vrot.slane %v3932_v8, 4  ;;  %8666 = vmatprep.mubr.bf16.mxu1 %v7851_v20  ;;  %v2058_v36 = vor.u32 %v2057_v13, %v2054_v57  ;;  %v2089_v37 = vshrl.u32 %v9442_v46, 16  ;;  %v2095_v9 = vshll.u32 %v9443_v19, 16 }
 0x2fa   : > { %v2082_v26 = vor.u32 %v2081_v58, %v2078_v14  ;;  %v2087_v29 = vrot.slane %v2085_v49, 5  ;;  %v3950_v60 = vshrl.u32 %v3733_v51, 16  ;;  %v3953_v30 = vshll.u32 %v3733_v51, 16  ;;  %v10922_v49 = vld [vmem:[#allocation2 + $0x7c] sm:$0xf] }
 0x2fb   : > { %v3938_v11 = vsel %vm10776_vm13, %v3933_v17, %v3937_v53  ;;  %v2059_v35 = vrot.slane %v2058_v36, 4  ;;  %v2091_v41 = vrot.slane %v2089_v37, 4  ;;  %v2097_v38 = vrot.slane %v2095_v9, 5 }
 0x2fc   : > { %8697 = vmatpush3.bf16.msra.mxu1 %v9350_v6  ;;  %v2067_v6 = vrot.slane %v2065_v61, 4  ;;  %v7852_v25 = vcombine.low %v3938_v11, %v3948_v62  ;;  %v2083_v45 = vrot.slane %v2082_v26, 4  ;;  %v3952_v32 = vrot.slane %v3950_v60, 4 }
 0x2fd   : > { %8698 = vmatprep.subr.bf16.mxu1 %v9353_v24  ;;  %v3959_v63 = vshll.u32 %v3734_v12, 16  ;;  %v2092_v34 = vor.u32 %v2091_v41, %v2087_v29  ;;  %v3955_v53 = vrot.slane %v3953_v30, 5  ;;  %v3963_v28 = vshrl.u32 %v3734_v12, 16 }
 0x2fe   : > { %v2068_v44 = vor.u32 %v2067_v6, %v2063_v4  ;;  %v2088_v27 = vsel %vm10776_vm13, %v2083_v45, %v2087_v29  ;;  %v3969_v16 = vshll.u32 %v3735_v0, 16  ;;  %v3974_v17 = vshrl.u32 %v3736_v23, 16 }
 0x2ff   : > { %8667 = vmatmul.mubr.bf16.gmra.mrb[28].mxu1 %v7852_v25  ;;  %v3961_v8 = vrot.slane %v3959_v63, 5  ;;  %v2093_v20 = vrot.slane %v2092_v34, 4  ;;  %v3956_v40 = vor.u32 %v3955_v53, %v3952_v32  ;;  %v3965_v31 = vrot.slane %v3963_v28, 4 }
 0x300   : > { %8699 = vmatpush3.bf16.msra.mxu1 %v9353_v24  ;;  %v2069_v5 = vrot.slane %v2068_v44, 4  ;;  %v2064_v24 = vsel %vm10776_vm13, %v2059_v35, %v2063_v4  ;;  %v3971_v33 = vrot.slane %v3969_v16, 5  ;;  %v3983_v7 = vshll.u32 %v3737_v54, 16  ;;  %v1814_v44 = vld [vmem:[#allocation2 + $0x84] sm:$0xf] }
 0x301   : > { %8700 = vmatprep.subr.bf16.mxu1 %v9356_v22  ;;  %v3987_v61 = vshrl.u32 %v3737_v54, 16  ;;  %v3957_v47 = vrot.slane %v3956_v40, 4  ;;  %v3966_v57 = vor.u32 %v3965_v31, %v3961_v8  ;;  %v3976_v13 = vrot.slane %v3974_v17, 4  ;;  %v10934_v16 = vld [vmem:[#allocation2 + $0x88] sm:$0xf] }
 0x302   : > { %v2074_v52 = vsel %vm10776_vm13, %v2069_v5, %v10684_v21  ;;  %v3977_v21 = vshll.u32 %v3736_v23, 16  ;;  %v3985_v11 = vrot.slane %v3983_v7, 5  ;;  %v3993_v12 = vshll.u32 %v3738_v50, 16  ;;  %v10938_v31 = vld [vmem:[#allocation2 + $0x8c] sm:$0x1] }
 0x303   : > { %v7693_v55 = vcombine.low %v2064_v24, %v2074_v52  ;;  %v3989_v4 = vrot.slane %v3987_v61, 4  ;;  %v3962_v6 = vsel %vm10776_vm13, %v3957_v47, %v3961_v8  ;;  %v3967_v14 = vrot.slane %v3966_v57, 4  ;;  %v3739_v52 = vld [vmem:[#allocation2 + $0x84] sm:$0xf]  ;;  %v9447_v17 = vld [vmem:[#allocation2 + $0x8c] sm:$0x1] }
 0x304   : > { %8701 = vmatpush3.bf16.msra.mxu1 %v9356_v22  ;;  %v2098_v22 = vsel %vm10776_vm13, %v2093_v20, %v2097_v38  ;;  %v3979_v51 = vrot.slane %v3977_v21, 5  ;;  %v2100_v62 = vshrl.u32 %v1812_v3, 16  ;;  %v2103_v46 = vshll.u32 %v1812_v3, 16  ;;  %v9445_v38 = vld [vmem:[#allocation2 + $0x80] sm:$0x1] }
 0x305   : > { %8734 = vmatprep.subr.bf16.mxu1 %v10906_v18  ;;  %8478 = vmatprep.mubr.bf16.mxu0 %v7693_v55  ;;  %v7694_v56 = vcombine.low %v2088_v27, %v2098_v22  ;;  %v3990_v58 = vor.u32 %v3989_v4, %v3985_v11  ;;  %v2109_v25 = vshll.u32 %v10922_v49, 16  ;;  %v3972_v37 = vsel %vm10776_vm13, %v3967_v14, %v3971_v33  ;;  %v10932_v55 = vld [vmem:[#allocation2 + $0x88] sm:$0xf]  ;;  %v3742_v61 = vld [vmem:[#allocation2 + $0x90] sm:$0xf] }
 0x306   : > { %v3980_v36 = vor.u32 %v3979_v51, %v3976_v13  ;;  %v3995_v19 = vrot.slane %v3993_v12, 5  ;;  %v2102_v9 = vrot.slane %v2100_v62, 4  ;;  %v2113_v35 = vshrl.u32 %v10922_v49, 16  ;;  %v10945_v62 = vld [vmem:[#allocation2 + $0x94] sm:$0xf] }
 0x307   : > { %8479 = vmatmul.mubr.bf16.gmra.mrb[80].mxu0 %v7694_v56  ;;  %v7853_v26 = vcombine.low %v3962_v6, %v3972_v37  ;;  %v3991_v0 = vrot.slane %v3990_v58, 4  ;;  %v2105_v60 = vrot.slane %v2103_v46, 5  ;;  %v2111_v5 = vrot.slane %v2109_v25, 5 }
 0x308   : > { %v3981_v29 = vrot.slane %v3980_v36, 4  ;;  %v2115_v41 = vrot.slane %v2113_v35, 4  ;;  %v2119_v30 = vshll.u32 %v9445_v38, 16  ;;  %v2124_v23 = vshrl.u32 %v1814_v44, 16 }
 0x309   : > { %8670 = vmatprep.mubr.bf16.mxu1 %v7853_v26  ;;  %v3996_v45 = vsel %vm10776_vm13, %v3991_v0, %v3995_v19  ;;  %v2106_v32 = vor.u32 %v2105_v60, %v2102_v9  ;;  %v2127_v63 = vshll.u32 %v1814_v44, 16  ;;  %v2133_v20 = vshll.u32 %v10934_v16, 16  ;;  %v10951_v9 = vld [vmem:[#allocation2 + $0x98] sm:$0x1] }
 0x30a   : > { %v3986_v24 = vsel %vm10776_vm13, %v3981_v29, %v3985_v11  ;;  %v2116_v53 = vor.u32 %v2115_v41, %v2111_v5  ;;  %v2121_v28 = vrot.slane %v2119_v30, 5  ;;  %v2126_v54 = vrot.slane %v2124_v23, 4 }
 0x30b   : > { %v7854_v34 = vcombine.low %v3986_v24, %v3996_v45  ;;  %v2107_v27 = vrot.slane %v2106_v32, 4  ;;  %v2129_v8 = vrot.slane %v2127_v63, 5  ;;  %v2137_v40 = vshrl.u32 %v10934_v16, 16 }
 0x30c   : > { %v2117_v50 = vrot.slane %v2116_v53, 4  ;;  %v2143_v33 = vshll.u32 %v9447_v17, 16  ;;  %v3998_v21 = vshrl.u32 %v3739_v52, 16  ;;  %v4001_v7 = vshll.u32 %v3739_v52, 16 }
 0x30d   : > { %8671 = vmatmul.mubr.bf16.gmra.mrb[0].mxu1 %v7854_v34  ;;  %v2112_v3 = vsel %vm10776_vm13, %v2107_v27, %v2111_v5  ;;  %v2130_v22 = vor.u32 %v2129_v8, %v2126_v54  ;;  %v2135_v47 = vrot.slane %v2133_v20, 5  ;;  %v2139_v57 = vrot.slane %v2137_v40, 4  ;;  %v10953_v5 = vld [vmem:[#allocation2 + $0x90] sm:$0xf]  ;;  %v10963_v54 = vld [vmem:[#allocation2 + $0x9c] sm:$0xf] }
 0x30e   : > { %v2122_v13 = vsel %vm10776_vm13, %v2117_v50, %v2121_v28  ;;  %v2145_v56 = vrot.slane %v2143_v33, 5  ;;  %v4000_v51 = vrot.slane %v3998_v21, 4  ;;  %v4003_v11 = vrot.slane %v4001_v7, 5  ;;  %v10966_v40 = vld [vmem:[#allocation2 + $0x94] sm:$0xf] }
 0x30f   : > { %v7695_v4 = vcombine.low %v2112_v3, %v2122_v13  ;;  %v2131_v6 = vrot.slane %v2130_v22, 4  ;;  %v2140_v14 = vor.u32 %v2139_v57, %v2135_v47  ;;  %v4007_v12 = vshll.u32 %v10932_v55, 16 }
 0x310   : > { %v4004_v36 = vor.u32 %v4003_v11, %v4000_v51  ;;  %v4011_v58 = vshrl.u32 %v10932_v55, 16  ;;  %v4017_v46 = vshll.u32 %v10938_v31, 16  ;;  %v4022_v25 = vshrl.u32 %v3742_v61, 16 }
 0x311   : > { %8482 = vmatprep.mubr.bf16.mxu0 %v7695_v4  ;;  %v2136_v44 = vsel %vm10776_vm13, %v2131_v6, %v2135_v47  ;;  %v2141_v37 = vrot.slane %v2140_v14, 4  ;;  %v4009_v19 = vrot.slane %v4007_v12, 5  ;;  %v4025_v35 = vshll.u32 %v3742_v61, 16  ;;  %v9449_v47 = vld [vmem:[#allocation2 + $0x98] sm:$0x1] }
 0x312   : > { %v4005_v26 = vrot.slane %v4004_v36, 4  ;;  %v4013_v29 = vrot.slane %v4011_v58, 4  ;;  %v4019_v0 = vrot.slane %v4017_v46, 5  ;;  %v4024_v60 = vrot.slane %v4022_v25, 4  ;;  %v10978_v46 = vld [vmem:[#allocation2 + $0xa0] sm:$0xf] }
 0x313   : > { %v2146_v41 = vsel %vm10776_vm13, %v2141_v37, %v2145_v56  ;;  %v4027_v38 = vrot.slane %v4025_v35, 5  ;;  %v4031_v30 = vshll.u32 %v10945_v62, 16  ;;  %v4035_v23 = vshrl.u32 %v10945_v62, 16  ;;  %v3745_v37 = vld [vmem:[#allocation2 + $0x9c] sm:$0xf] }
 0x314   : > { %v7696_v24 = vcombine.low %v2136_v44, %v2146_v41  ;;  %v4010_v45 = vsel %vm10776_vm13, %v4005_v26, %v4009_v19  ;;  %v4014_v32 = vor.u32 %v4013_v29, %v4009_v19  ;;  %v4041_v63 = vshll.u32 %v10951_v9, 16  ;;  %v10982_v19 = vld [vmem:[#allocation2 + $0xa0] sm:$0xf] }
 0x315   : > { %v4028_v52 = vor.u32 %v4027_v38, %v4024_v60  ;;  %v4033_v34 = vrot.slane %v4031_v30, 5  ;;  %v4037_v53 = vrot.slane %v4035_v23, 4  ;;  %v2148_v28 = vshrl.u32 %v10953_v5, 16  ;;  %v10984_v60 = vld [vmem:[#allocation2 + $0xa4] sm:$0x1] }
 0x316   : > { %8483 = vmatmul.mubr.bf16.gmra.mrb[84].mxu0 %v7696_v24  ;;  %v4015_v27 = vrot.slane %v4014_v32, 4  ;;  %v4043_v8 = vrot.slane %v4041_v63, 5  ;;  %v2151_v20 = vshll.u32 %v10953_v5, 16  ;;  %v2157_v50 = vshll.u32 %v10966_v40, 16  ;;  %v9451_v23 = vld [vmem:[#allocation2 + $0xa4] sm:$0x1] }
 0x317   : > { %v4029_v17 = vrot.slane %v4028_v52, 4  ;;  %v4038_v33 = vor.u32 %v4037_v53, %v4033_v34  ;;  %v2150_v21 = vrot.slane %v2148_v28, 4  ;;  %v2161_v7 = vshrl.u32 %v10966_v40, 16  ;;  %v10988_v53 = vld [vmem:[#allocation2 + $0xac] sm:$0xf] }
 0x318   : > { %v4020_v61 = vsel %vm10776_vm13, %v4015_v27, %v4019_v0  ;;  %v2153_v3 = vrot.slane %v2151_v20, 5  ;;  %v2159_v22 = vrot.slane %v2157_v50, 5  ;;  %v2167_v57 = vshll.u32 %v9449_v47, 16 }
 0x319   : > { %v7855_v13 = vcombine.low %v4010_v45, %v4020_v61  ;;  %v4034_v56 = vsel %vm10776_vm13, %v4029_v17, %v4033_v34  ;;  %v4039_v51 = vrot.slane %v4038_v33, 4  ;;  %v2163_v11 = vrot.slane %v2161_v7, 4  ;;  %v3748_v34 = vld [vmem:[#allocation2 + $0xa8] sm:$0xf]  ;;  %v10993_v7 = vld [vmem:[#allocation2 + $0xb0] sm:$0x1] }
 0x31a   : > { %v2154_v4 = vor.u32 %v2153_v3, %v2150_v21  ;;  %v2169_v6 = vrot.slane %v2167_v57, 5  ;;  %v2172_v14 = vshrl.u32 %v10963_v54, 16  ;;  %v2175_v12 = vshll.u32 %v10963_v54, 16 }
 0x31b   : > { %8674 = vmatprep.mubr.bf16.mxu1 %v7855_v13  ;;  %v4044_v36 = vsel %vm10776_vm13, %v4039_v51, %v4043_v8  ;;  %v2164_v58 = vor.u32 %v2163_v11, %v2159_v22  ;;  %v2181_v25 = vshll.u32 %v10978_v46, 16  ;;  %v2185_v44 = vshrl.u32 %v10978_v46, 16 }
 0x31c   : > { %v7856_v35 = vcombine.low %v4034_v56, %v4044_v36  ;;  %v2155_v26 = vrot.slane %v2154_v4, 4  ;;  %v2174_v29 = vrot.slane %v2172_v14, 4  ;;  %v2177_v0 = vrot.slane %v2175_v12, 5  ;;  %v11002_v12 = vld [vmem:[#allocation2 + $0xa8] sm:$0xf] }
 0x31d   : > { %v2165_v41 = vrot.slane %v2164_v58, 4  ;;  %v2183_v38 = vrot.slane %v2181_v25, 5  ;;  %v2187_v30 = vrot.slane %v2185_v44, 4  ;;  %v2191_v24 = vshll.u32 %v9451_v23, 16  ;;  %v11010_v23 = vld [vmem:[#allocation2 + $0xb4] sm:$0xf] }
 0x31e   : > { %8675 = vmatmul.mubr.bf16.gmra.mrb[4].mxu1 %v7856_v35  ;;  %v2160_v45 = vsel %vm10776_vm13, %v2155_v26, %v2159_v22  ;;  %v2178_v32 = vor.u32 %v2177_v0, %v2174_v29  ;;  %v4046_v63 = vshrl.u32 %v3745_v37, 16  ;;  %v4049_v52 = vshll.u32 %v3745_v37, 16 }
 0x31f   : > { %v2170_v28 = vsel %vm10776_vm13, %v2165_v41, %v2169_v6  ;;  %v2188_v27 = vor.u32 %v2187_v30, %v2183_v38  ;;  %v2193_v8 = vrot.slane %v2191_v24, 5  ;;  %v4055_v20 = vshll.u32 %v10982_v19, 16 }
 0x320   : > { %v7697_v50 = vcombine.low %v2160_v45, %v2170_v28  ;;  %v2179_v17 = vrot.slane %v2178_v32, 4  ;;  %v4048_v33 = vrot.slane %v4046_v63, 4  ;;  %v4051_v21 = vrot.slane %v4049_v52, 5  ;;  %v11012_v63 = vld [vmem:[#allocation2 + $0xac] sm:$0xf] }
 0x321   : > { %v2189_v61 = vrot.slane %v2188_v27, 4  ;;  %v4057_v3 = vrot.slane %v4055_v20, 5  ;;  %v4059_v22 = vshrl.u32 %v10982_v19, 16  ;;  %v4065_v47 = vshll.u32 %v10984_v60, 16 }
 0x322   : > { %8486 = vmatprep.mubr.bf16.mxu0 %v7697_v50  ;;  %v2184_v57 = vsel %vm10776_vm13, %v2179_v17, %v2183_v38  ;;  %v4052_v13 = vor.u32 %v4051_v21, %v4048_v33  ;;  %v4070_v56 = vshrl.u32 %v3748_v34, 16  ;;  %v4073_v51 = vshll.u32 %v3748_v34, 16  ;;  %v9453_v33 = vld [vmem:[#allocation2 + $0xb0] sm:$0x1] }
 0x323   : > { %v2194_v11 = vsel %vm10776_vm13, %v2189_v61, %v2193_v8  ;;  %v4061_v4 = vrot.slane %v4059_v22, 4  ;;  %v4067_v6 = vrot.slane %v4065_v47, 5  ;;  %v4079_v14 = vshll.u32 %v10988_v53, 16 }
 0x324   : > { %v7698_v36 = vcombine.low %v2184_v57, %v2194_v11  ;;  %v4053_v58 = vrot.slane %v4052_v13, 4  ;;  %v4072_v25 = vrot.slane %v4070_v56, 4  ;;  %v4075_v44 = vrot.slane %v4073_v51, 5  ;;  %v3751_v57 = vld [vmem:[#allocation2 + $0xb4] sm:$0xf] }
 0x325   : > { %v4062_v37 = vor.u32 %v4061_v4, %v4057_v3  ;;  %v4081_v35 = vrot.slane %v4079_v14, 5  ;;  %v4083_v26 = vshrl.u32 %v10988_v53, 16  ;;  %v4089_v29 = vshll.u32 %v10993_v7, 16  ;;  %v11022_v4 = vld [vmem:[#allocation2 + $0xb8] sm:$0xf] }
 0x326   : > { %8487 = vmatmul.mubr.bf16.gmra.mrb[88].mxu0 %v7698_v36  ;;  %v4058_v0 = vsel %vm10776_vm13, %v4053_v58, %v4057_v3  ;;  %v4076_v41 = vor.u32 %v4075_v44, %v4072_v25  ;;  %v2196_v38 = vshrl.u32 %v11002_v12, 16  ;;  %v2199_v30 = vshll.u32 %v11002_v12, 16  ;;  %v11024_v36 = vld [vmem:[#allocation2 + $0xb8] sm:$0xf] }
 0x327   : > { %v4063_v24 = vrot.slane %v4062_v37, 4  ;;  %v4085_v45 = vrot.slane %v4083_v26, 4  ;;  %v4091_v32 = vrot.slane %v4089_v29, 5  ;;  %v2205_v52 = vshll.u32 %v11012_v63, 16  ;;  %v9455_v26 = vld [vmem:[#allocation2 + $0xbc] sm:$0x1] }
 0x328   : > { %v4077_v34 = vrot.slane %v4076_v41, 4  ;;  %v2198_v28 = vrot.slane %v2196_v38, 4  ;;  %v2201_v27 = vrot.slane %v2199_v30, 5  ;;  %v2209_v8 = vshrl.u32 %v11012_v63, 16 }
 0x329   : > { %v4068_v20 = vsel %vm10776_vm13, %v4063_v24, %v4067_v6  ;;  %v4086_v50 = vor.u32 %v4085_v45, %v4081_v35  ;;  %v2207_v17 = vrot.slane %v2205_v52, 5  ;;  %v2215_v21 = vshll.u32 %v9453_v33, 16  ;;  %v1789_v45 = vld [vmem:[#allocation2 + $0xc8] sm:$0x1] }
 0x32a   : > { %v7857_v61 = vcombine.low %v4058_v0, %v4068_v20  ;;  %v4082_v3 = vsel %vm10776_vm13, %v4077_v34, %v4081_v35  ;;  %v2202_v22 = vor.u32 %v2201_v27, %v2198_v28  ;;  %v2211_v47 = vrot.slane %v2209_v8, 4  ;;  %v11030_v0 = vld [vmem:[#allocation2 + $0xbc] sm:$0x1]  ;;  %v3754_v8 = vld [vmem:[#allocation2 + $0xc0] sm:$0xf] }
 0x32b   : > { %v4087_v13 = vrot.slane %v4086_v50, 4  ;;  %v2217_v56 = vrot.slane %v2215_v21, 5  ;;  %v2220_v51 = vshrl.u32 %v11010_v23, 16  ;;  %v2223_v11 = vshll.u32 %v11010_v23, 16  ;;  %v11038_v21 = vld [vmem:[#allocation2 + $0xc4] sm:$0xf] }
 0x32c   : > { %8678 = vmatprep.mubr.bf16.mxu1 %v7857_v61  ;;  %v2203_v6 = vrot.slane %v2202_v22, 4  ;;  %v2212_v14 = vor.u32 %v2211_v47, %v2207_v17  ;;  %v2229_v58 = vshll.u32 %v11024_v36, 16  ;;  %v2233_v25 = vshrl.u32 %v11024_v36, 16 }
 0x32d   : > { %v4092_v44 = vsel %vm10776_vm13, %v4087_v13, %v4091_v32  ;;  %v2222_v37 = vrot.slane %v2220_v51, 4  ;;  %v2225_v35 = vrot.slane %v2223_v11, 5  ;;  %v2239_v29 = vshll.u32 %v9455_v26, 16 }
 0x32e   : > { %v7858_v41 = vcombine.low %v4082_v3, %v4092_v44  ;;  %v2208_v38 = vsel %vm10776_vm13, %v2203_v6, %v2207_v17  ;;  %v2213_v30 = vrot.slane %v2212_v14, 4  ;;  %v2231_v24 = vrot.slane %v2229_v58, 5  ;;  %v4463_v58 = vld [vmem:[#allocation2 + $0xc] sm:$0xe] }
 0x32f   : > { %v2226_v52 = vor.u32 %v2225_v35, %v2222_v37  ;;  %v2235_v34 = vrot.slane %v2233_v25, 4  ;;  %v2241_v28 = vrot.slane %v2239_v29, 5  ;;  %v4094_v27 = vshrl.u32 %v3751_v57, 16 }
 0x330   : > { %8679 = vmatmul.mubr.bf16.gmra.mrb[8].mxu1 %v7858_v41  ;;  %v2218_v32 = vsel %vm10776_vm13, %v2213_v30, %v2217_v56  ;;  %v4097_v20 = vshll.u32 %v3751_v57, 16  ;;  %v4103_v50 = vshll.u32 %v11022_v4, 16  ;;  %v4107_v33 = vshrl.u32 %v11022_v4, 16 }
 0x331   : > { %v7699_v17 = vcombine.low %v2208_v38, %v2218_v32  ;;  %v2227_v61 = vrot.slane %v2226_v52, 4  ;;  %v2236_v3 = vor.u32 %v2235_v34, %v2231_v24  ;;  %v4096_v22 = vrot.slane %v4094_v27, 4  ;;  %v9456_v52 = vld [vmem:[#allocation2 + $0x10] sm:$0xf] }
 0x332   : > { %v4099_v47 = vrot.slane %v4097_v20, 5  ;;  %v4105_v13 = vrot.slane %v4103_v50, 5  ;;  %v4109_v51 = vrot.slane %v4107_v33, 4  ;;  %v4113_v11 = vshll.u32 %v11030_v0, 16 }
 0x333   : > { %8490 = vmatprep.mubr.bf16.mxu0 %v7699_v17  ;;  %v2232_v56 = vsel %vm10776_vm13, %v2227_v61, %v2231_v24  ;;  %v2237_v57 = vrot.slane %v2236_v3, 4  ;;  %v1790_v6 = vsel %vm10448_vm8, %v1625_v10, %v1789_v45  ;;  %v4118_v14 = vshrl.u32 %v3754_v8, 16  ;;  %v9457_v17 = vld [vmem:[#allocation2 + $0x14] sm:$0x1] }
 0x334   : > { %v4100_v25 = vor.u32 %v4099_v47, %v4096_v22  ;;  %v4110_v44 = vor.u32 %v4109_v51, %v4105_v13  ;;  %v4115_v37 = vrot.slane %v4113_v11, 5  ;;  %1791 = vst [vmem:[#allocation2 + $0xc8] sm:$0x1] %v1790_v6  ;;  %v4121_v35 = vshll.u32 %v3754_v8, 16  ;;  %v4464_v22 = vld [vmem:[#allocation2 + $0x18] sm:$0xe] }
 0x335   : > { %v2242_v26 = vsel %vm10776_vm13, %v2237_v57, %v2241_v28  ;;  %v4120_v29 = vrot.slane %v4118_v14, 4  ;;  %v4127_v41 = vshll.u32 %v11038_v21, 16  ;;  %v4131_v38 = vshrl.u32 %v11038_v21, 16  ;;  %v9458_v47 = vld [vmem:[#allocation2 + $0x1c] sm:$0xf] }
 0x336   : > { %v7700_v30 = vcombine.low %v2232_v56, %v2242_v26  ;;  %v4101_v1 = vrot.slane %v4100_v25, 4  ;;  %v4111_v24 = vrot.slane %v4110_v44, 4  ;;  %v4123_v2 = vrot.slane %v4121_v35, 5  ;;  %v4465_v11 = vld [vmem:[#allocation2 + $0x24] sm:$0xe] }
 0x337   : > { %v4129_v10 = vrot.slane %v4127_v41, 5  ;;  %v4133_v45 = vrot.slane %v4131_v38, 4  ;;  %v4529_v34 = vrot.slane %v9456_v52, 5  ;;  %v7869_v32 = vrot.slane %v4463_v58, 9  ;;  %v9459_v6 = vld [vmem:[#allocation2 + $0xc] sm:$0xf] }
 0x338   : > { %8491 = vmatmul.mubr.bf16.gmra.mrb[92].mxu0 %v7700_v30  ;;  %v4106_v27 = vsel %vm10776_vm13, %v4101_v1, %v4105_v13  ;;  %v4116_v28 = vsel %vm10776_vm13, %v4111_v24, %v4115_v37  ;;  %v4124_v8 = vor.u32 %v4123_v2, %v4120_v29  ;;  %v4532_v61 = vrot.slane %v9457_v17, 5  ;;  %v11061_v14 = vld [vmem:[#allocation2 + $0x10] sm:$0xf]  ;;  %v9461_v25 = vld [vmem:[#allocation2 + $0x18] sm:$0xf] }
 0x339   : > { %v7859_v20 = vcombine.low %v4106_v27, %v4116_v28  ;;  %v4134_v50 = vor.u32 %v4133_v45, %v4129_v10  ;;  %8510 = vmatprep.mubr.bf16.mxu0 %v7709_v48  ;;  %v4531_v33 = vrot.slane %v4529_v34, 4  ;;  %v4536_v51 = vrot.slane %v9458_v47, 5  ;;  %v11068_v44 = vld [vmem:[#allocation2 + $0x1c] sm:$0xf]  ;;  %v9463_v35 = vld [vmem:[#allocation2 + $0x28] sm:$0xf] }
 0x33a   : > { %v4125_v3 = vrot.slane %v4124_v8, 4  ;;  %v7710_v59 = vcombine.low %v9459_v6, %v11061_v14  ;;  %v4530_v39 = vsel %vm10505_vm10, %v7869_v32, %v4529_v34  ;;  %v7870_v58 = vrot.slane %v4464_v22, 9  ;;  %v9464_v30 = vld [vmem:[#allocation2 + $0x20] sm:$0x1]  ;;  %v4466_v24 = vld [vmem:[#allocation2 + $0x30] sm:$0xe] }
 0x33b   : > { %8682 = vmatprep.mubr.bf16.mxu1 %v7859_v20  ;;  %v11058_v13 = vld [vmem:[#allocation2 + $0xc8] sm:$0x1]  ;;  %v4135_v56 = vrot.slane %v4134_v50, 4  ;;  %v4533_v48 = vsel %vm10505_vm10, %v4531_v33, %v4532_v61  ;;  %v7711_v37 = vcombine.low %v9461_v25, %v11068_v44  ;;  %v4543_v26 = vrot.slane %v9463_v35, 5  ;;  %v9465_v45 = vld [vmem:[#allocation2 + $0x2c] sm:$0x1] }
 0x33c   : > { %v4137_v57 = vshll.u32 %v11058_v13, 16  ;;  %v4130_v29 = vsel %vm10776_vm13, %v4125_v3, %v4129_v10  ;;  %v4538_v38 = vrot.slane %v4536_v51, 4  ;;  %v4539_v1 = vrot.slane %v9464_v30, 5  ;;  %v9466_v8 = vld [vmem:[#allocation2 + $0x34] sm:$0xf]  ;;  %v9467_v10 = vld [vmem:[%s9979_s12 + $0x80] sm:$0xff]  }
 0x33d   : > { %v7871_v2 = vrot.slane %v4465_v11, 9  ;;  %v4546_v52 = vrot.slane %v9465_v45, 5  ;;  %v7901_v27 = vcombine.low %v4530_v39, %v4533_v48  ;;  %v4545_v28 = vrot.slane %v4543_v26, 4  ;;  %v9468_v50 = vld [vmem:[#allocation2 + $0x24] sm:$0xf]  ;;  %v9477_v45 = vld [vmem:[%s9979_s12 + $0x90] sm:$0xff]  }
 0x33e   : > { %v4139_v41 = vrot.slane %v4137_v57, 5  ;;  %v4550_v32 = vrot.slane %v9466_v8, 5  ;;  %v11076_v33 = vld [vmem:[#allocation2 + $0x28] sm:$0xf]  ;;  %v9470_v61 = vld [vmem:[#allocation2 + $0x40] sm:$0xf]  ;;  %v4537_v47 = vsel %vm10505_vm10, %v7870_v58, %v4536_v51  ;;  %v4540_v11 = vsel %vm10505_vm10, %v4538_v38, %v4539_v1 }
 0x33f   : > { %v7712_v17 = vcombine.low %v9468_v50, %v11076_v33  ;;  %v4557_v3 = vrot.slane %v9470_v61, 5  ;;  %v9471_v22 = vld [vmem:[%s9979_s12 + $0x88] sm:$0xff]   ;;  %v9472_v57 = vld [vmem:[#allocation2 + $0x38] sm:$0x1]  ;;  %v4544_v39 = vsel %vm10505_vm10, %v7871_v2, %v4543_v26  ;;  %v4547_v48 = vsel %vm10505_vm10, %v4545_v28, %v4546_v52  ;;  %v11088_v51 = vld [vmem:[#allocation2 + $0x34] sm:$0xf] }
 0x340   : > { %v4140_v34 = vsel %vm10776_vm13, %v4135_v56, %v4139_v41  ;;  %8511 = vmatmul.mubr.bf16.vlgmr.msra.gmra.mrb[64].mxu0 %v7710_v59  ;;  %v7872_v56 = vrot.slane %v4466_v24, 9  ;;  %v4553_v6 = vrot.slane %v9472_v57, 5  ;;  %v4467_v59 = vld [vmem:[#allocation2 + $0x3c] sm:$0xe]  ;;  %v4552_v25 = vrot.slane %v4550_v32, 4  ;;  %v9363_v50 = vld [vmem:[%s9979_s12 + $0x188] sm:$0xff]  }
 0x341   : > { %v7860_v20 = vcombine.low %v4130_v29, %v4140_v34  ;;  %8514 = vmatprep.mubr.bf16.mxu0 %v7711_v37  ;;  %8543 = vmatpush3.bf16.msra.mxu0 %v9467_v10  ;;  %v9473_v37 = vld [vmem:[#allocation2 + $0x4c] sm:$0xf]  ;;  %v9474_v29 = vld [vmem:[#allocation2 + $0x30] sm:$0xf]  ;;  %v4468_v41 = vld [vmem:[#allocation2 + $0x48] sm:$0xe]  ;;  %v7902_v26 = vcombine.low %v4537_v47, %v4540_v11  ;;  %v7903_v2 = vcombine.low %v4544_v39, %v4547_v48 }
 0x342   : > { %8544 = vmatprep.subr.bf16.mxu0 %v9471_v22  ;;  %v4564_v35 = vrot.slane %v9473_v37, 5  ;;  %v7713_v58 = vcombine.low %v9474_v29, %v11088_v51  ;;  %v7873_v38 = vrot.slane %v4467_v59, 9  ;;  %v4559_v30 = vrot.slane %v4557_v3, 4  ;;  %v9476_v1 = vld [vmem:[#allocation2 + $0x44] sm:$0x1]  ;;  %v9482_v39 = vld [vmem:[%s9979_s12 + $0x98] sm:$0xff]  }
 0x343   : > { %8683 = vmatmul.mubr.bf16.gmra.mrb[12].mxu1 %v7860_v20  ;;  %v4560_v24 = vrot.slane %v9476_v1, 5  ;;  %v11094_v52 = vsel %vm10505_vm10, %v7872_v56, %v4550_v32  ;;  %v4469_v34 = vld [vmem:[#allocation2 + $0x54] sm:$0xe]  ;;  %v7874_v28 = vrot.slane %v4468_v41, 9  ;;  %v9478_v20 = vld [vmem:[#allocation2 + $0x50] sm:$0x1] }
 0x344   : > { %8702 = vmatprep.mubr.bf16.mxu1 %v7901_v27  ;;  %v11098_v27 = vsel %vm10505_vm10, %v4552_v25, %v4553_v6  ;;  %v4566_v8 = vrot.slane %v4564_v35, 4  ;;  %v4567_v10 = vrot.slane %v9478_v20, 5  ;;  %v9479_v61 = vld [vmem:[#allocation2 + $0x58] sm:$0xf]  ;;  %v11101_v47 = vld [vmem:[#allocation2 + $0x60] sm:$0xe]  ;;  %v11108_v56 = vsel %vm10505_vm10, %v7873_v38, %v4557_v3 }
 0x345   : > { %8545 = vmatpush3.bf16.msra.mxu0 %v9471_v22  ;;  %v4571_v22 = vrot.slane %v9479_v61, 5  ;;  %v9480_v32 = vld [vmem:[#allocation2 + $0x3c] sm:$0xf]  ;;  %v11103_v11 = vld [vmem:[#allocation2 + $0x40] sm:$0xf]  ;;  %v11112_v57 = vsel %vm10505_vm10, %v4559_v30, %v4560_v24  ;;  %v7875_v6 = vrot.slane %v4469_v34, 9  ;;  %v7904_v48 = vcombine.low %v11094_v52, %v11098_v27 }
 0x346   : > { %8546 = vmatprep.subr.bf16.mxu0 %v9477_v45  ;;  %v4473_v59 = vld [vmem:[#allocation2 + $0x84] sm:$0xe]  ;;  %v9483_v25 = vld [vmem:[#allocation2 + $0x48] sm:$0xf]  ;;  %v11117_v37 = vld [vmem:[#allocation2 + $0x4c] sm:$0xf]  ;;  %v11132_v24 = vsel %vm10505_vm10, %v7874_v28, %v4564_v35  ;;  %v7905_v20 = vcombine.low %v11108_v56, %v11112_v57 }
 0x347   : > { %v7715_v29 = vcombine.low %v9483_v25, %v11117_v37  ;;  %v11122_v3 = vld [vmem:[#allocation2 + $0x58] sm:$0xf]  ;;  %v11126_v38 = vld [vmem:[#allocation2 + $0x64] sm:$0xf]  ;;  %v4474_v1 = vld [vmem:[#allocation2 + $0x90] sm:$0xe]  ;;  %v11145_v28 = vsel %vm10505_vm10, %v7875_v6, %v4571_v22 }
 0x348   : > { %8515 = vmatmul.mubr.bf16.gmra.mrb[68].mxu0 %v7712_v17  ;;  %v7714_v17 = vcombine.low %v9480_v32, %v11103_v11  ;;  %v4578_v30 = vrot.slane %v11126_v38, 5  ;;  %v7876_v34 = vrot.slane %v11101_v47, 9  ;;  %v4475_v27 = vld [vmem:[#allocation2 + $0x9c] sm:$0xe]  ;;  %v7879_v61 = vrot.slane %v4473_v59, 9 }
 0x349   : > { %8518 = vmatprep.mubr.bf16.mxu0 %v7713_v58  ;;  %8547 = vmatpush3.bf16.msra.mxu0 %v9477_v45  ;;  %v11120_v58 = vld [vmem:[#allocation2 + $0x54] sm:$0xf]  ;;  %v11136_v45 = vsel %vm10505_vm10, %v4566_v8, %v4567_v10  ;;  %v4599_v35 = vrot.slane %v10932_v55, 5  ;;  %v4602_v8 = vrot.slane %v10938_v31, 5  ;;  %v7880_v10 = vrot.slane %v4474_v1, 9  ;;  %v9489_v25 = vld [vmem:[%s9979_s12 + $0xa0] sm:$0xff]  }
 0x34a   : > { %8548 = vmatprep.subr.bf16.mxu0 %v9482_v39  ;;  %v7716_v41 = vcombine.low %v11120_v58, %v11122_v3  ;;  %v4606_v32 = vrot.slane %v10945_v62, 5  ;;  %v7906_v56 = vcombine.low %v11132_v24, %v11136_v45  ;;  %v11154_v57 = vrot.slane %v4578_v30, 4  ;;  %v11160_v31 = vld [vmem:[#allocation2 + $0x68] sm:$0x1]  ;;  %v4476_v1 = vld [vmem:[#allocation2 + $0xa8] sm:$0xe] }
 0x34b   : > { %8703 = vmatmul.mubr.bf16.vlgmr.msra.gmra.mrb[16].mxu1 %v7902_v26  ;;  %v9488_v26 = vld [vmem:[#allocation2 + $0x5c] sm:$0x1]  ;;  %v11158_v55 = vsel %vm10505_vm10, %v7879_v61, %v4599_v35  ;;  %v9492_v61 = vld [vmem:[#allocation2 + $0x60] sm:$0xf]  ;;  %v9498_v45 = vld [vmem:[#allocation2 + $0x70] sm:$0xf] }
 0x34c   : > { %8735 = vmatpush3.bf16.msra.mxu1 %v10906_v18  ;;  %8706 = vmatprep.mubr.bf16.mxu1 %v7903_v2  ;;  %v4574_v52 = vrot.slane %v9488_v26, 5  ;;  %v9366_v18 = vld [vmem:[%s9979_s12 + $0x190] sm:$0xff]   ;;  %v4573_v2 = vrot.slane %v4571_v22, 4  ;;  %v4601_v22 = vrot.slane %v4599_v35, 4  ;;  %v11165_v6 = vsel %vm10505_vm10, %v7880_v10, %v4606_v32  ;;  %v9375_v58 = vld [vmem:[%s9979_s12 + $0x1a8] sm:$0xff]  }
 0x34d   : > { %8736 = vmatprep.subr.bf16.mxu1 %v9363_v50  ;;  %8549 = vmatpush3.bf16.msra.mxu0 %v9482_v39  ;;  %v4608_v59 = vrot.slane %v4606_v32, 4  ;;  %v4609_v39 = vrot.slane %v10951_v9, 5  ;;  %v7881_v10 = vrot.slane %v4475_v27, 9  ;;  %v4477_v32 = vld [vmem:[#allocation2 + $0xb4] sm:$0xe]  ;;  %v4620_v27 = vrot.slane %v10988_v53, 5 }
 0x34e   : > { %8550 = vmatprep.subr.bf16.mxu0 %v9489_v25  ;;  %v11170_v26 = vsel %vm10505_vm10, %v4573_v2, %v4574_v52  ;;  %v11175_v62 = vsel %vm10505_vm10, %v4601_v22, %v4602_v8  ;;  %v4613_v52 = vrot.slane %v10982_v19, 5  ;;  %v4616_v2 = vrot.slane %v10984_v60, 5  ;;  %v9494_v60 = vld [vmem:[#allocation2 + $0x70] sm:$0xf]  ;;  %v9372_v53 = vld [vmem:[%s9979_s12 + $0x1a0] sm:$0xff]  }
 0x34f   : > { %v7911_v9 = vcombine.low %v11158_v55, %v11175_v62  ;;  %v7882_v22 = vrot.slane %v4476_v1, 9  ;;  %v7907_v19 = vcombine.low %v11145_v28, %v11170_v26  ;;  %v4622_v1 = vrot.slane %v4620_v27, 4  ;;  %v4471_v8 = vld [vmem:[#allocation2 + $0x6c] sm:$0xe] }
 0x350   : > { %8737 = vmatpush3.bf16.msra.mxu1 %v9363_v50  ;;  %8519 = vmatmul.mubr.bf16.gmra.mrb[72].mxu0 %v7714_v17  ;;  %v9369_v50 = vld [vmem:[%s9979_s12 + $0x198] sm:$0xff]   ;;  %v9491_v17 = vld [vmem:[#allocation2 + $0x64] sm:$0xf]  ;;  %v4630_v26 = vrot.slane %v11030_v0, 5  ;;  %v2839_v62 = vld [vmem:[#allocation2 + $0xc] sm:$0xe] }
 0x351   : > { %8738 = vmatprep.subr.bf16.mxu1 %v9366_v18  ;;  %8522 = vmatprep.mubr.bf16.mxu0 %v7715_v29  ;;  %v7717_v35 = vcombine.low %v9492_v61, %v9491_v17  ;;  %v11181_v29 = vsel %vm10505_vm10, %v4608_v59, %v4609_v39  ;;  %v4623_v17 = vrot.slane %v10993_v7, 5  ;;  %v9493_v61 = vld [vmem:[%s9979_s12 + $0xa8] sm:$0xff]   ;;  %v4615_v39 = vrot.slane %v4613_v52, 4 }
 0x352   : > { %8551 = vmatpush3.bf16.msra.mxu0 %v9489_v25  ;;  %v4478_v59 = vld [vmem:[#allocation2 + $0xc0] sm:$0xe]  ;;  %v4585_v25 = vrot.slane %v9494_v60, 5  ;;  %v11199_v7 = vsel %vm10505_vm10, %v7882_v22, %v4620_v27 }
 0x353   : > { %8707 = vmatmul.mubr.bf16.gmra.mrb[20].mxu1 %v7904_v48  ;;  %8552 = vmatprep.subr.bf16.mxu0 %v9493_v61  ;;  %v11194_v48 = vsel %vm10505_vm10, %v7881_v10, %v4613_v52  ;;  %v11204_v28 = vsel %vm10505_vm10, %v4615_v39, %v4616_v2  ;;  %v7884_v10 = vrot.slane %v4478_v59, 9  ;;  %v4634_v52 = vrot.slane %v11038_v21, 5  ;;  %v9496_v39 = vld [vmem:[#allocation2 + $0x74] sm:$0x1] }
 0x354   : > { %8710 = vmatprep.mubr.bf16.mxu1 %v7905_v20  ;;  %8739 = vmatpush3.bf16.msra.mxu1 %v9366_v18  ;;  %v7883_v20 = vrot.slane %v4477_v32, 9  ;;  %v4627_v18 = vrot.slane %v11022_v4, 5  ;;  %v7913_v60 = vcombine.low %v11194_v48, %v11204_v28  ;;  %v11212_v22 = vsel %vm10505_vm10, %v4622_v1, %v4623_v17  ;;  %v9495_v32 = vld [vmem:[%s9979_s12 + $0xb0] sm:$0xff]   ;;  %v2841_v28 = vld [vmem:[#allocation2 + $0x24] sm:$0xe] }
 0x355   : > { %8740 = vmatprep.subr.bf16.mxu1 %v9369_v50  ;;  %v7914_v0 = vcombine.low %v11199_v7, %v11212_v22  ;;  %v11226_v21 = vsel %vm10505_vm10, %v7884_v10, %v4634_v52  ;;  %v4636_v27 = vrot.slane %v4634_v52, 4  ;;  %v4637_v17 = vrot.slane %v11058_v13, 5  ;;  %v9500_v10 = vld [vmem:[#allocation2 + $0x7c] sm:$0xf] }
 0x356   : > { %8553 = vmatpush3.bf16.msra.mxu0 %v9493_v61  ;;  %v11217_v4 = vsel %vm10505_vm10, %v7883_v20, %v4627_v18  ;;  %v4629_v2 = vrot.slane %v4627_v18, 4  ;;  %v7877_v61 = vrot.slane %v4471_v8, 9  ;;  %v4587_v59 = vrot.slane %v4585_v25, 4 }
 0x357   : > { %8554 = vmatprep.subr.bf16.mxu0 %v9495_v32  ;;  %v4588_v1 = vrot.slane %v9496_v39, 5  ;;  %v11238_v20 = vsel %vm10505_vm10, %v4636_v27, %v4637_v17  ;;  %v4579_v8 = vsel %vm10505_vm10, %v7876_v34, %v4578_v30  ;;  %v12690_v18 = vrot.slane %v11160_v31, 5  ;;  %v4472_v30 = vld [vmem:[#allocation2 + $0x78] sm:$0xe] }
 0x358   : > { %8523 = vmatmul.mubr.bf16.gmra.mrb[76].mxu0 %v7716_v41  ;;  %8741 = vmatpush3.bf16.msra.mxu1 %v9369_v50  ;;  %v11232_v41 = vsel %vm10505_vm10, %v4629_v2, %v4630_v26  ;;  %v7916_v13 = vcombine.low %v11226_v21, %v11238_v20  ;;  %v4592_v52 = vrot.slane %v9500_v10, 5  ;;  %v4586_v38 = vsel %vm10505_vm10, %v7877_v61, %v4585_v25  ;;  %v9501_v34 = vld [vmem:[#allocation2 + $0x78] sm:$0xf]  ;;  %v9381_v25 = vld [vmem:[%s9979_s12 + $0x1b8] sm:$0xff]  }
 0x359   : > { %8526 = vmatprep.mubr.bf16.mxu0 %v7717_v35  ;;  %8742 = vmatprep.subr.bf16.mxu1 %v9372_v53  ;;  %v7915_v50 = vcombine.low %v11217_v4, %v11232_v41  ;;  %v9497_v35 = vld [vmem:[%s9979_s12 + $0xb8] sm:$0xff]   ;;  %v4582_v24 = vsel %vm10505_vm10, %v11154_v57, %v12690_v18  ;;  %v4589_v47 = vsel %vm10505_vm10, %v4587_v59, %v4588_v1  ;;  %v7878_v2 = vrot.slane %v4472_v30, 9  ;;  %v9503_v59 = vld [vmem:[#allocation2 + $0x84] sm:$0xf] }
 0x35a   : > { %8555 = vmatpush3.bf16.msra.mxu0 %v9495_v32  ;;  %v7719_v31 = vcombine.low %v9501_v34, %v10922_v49  ;;  %v7908_v57 = vcombine.low %v4579_v8, %v4582_v24  ;;  %v7909_v32 = vcombine.low %v4586_v38, %v4589_v47  ;;  %v4594_v27 = vrot.slane %v4592_v52, 4  ;;  %v9504_v8 = vld [vmem:[#allocation2 + $0x4] sm:$0xf]  ;;  %v2838_v24 = vld [vmem:[#allocation2] sm:$0xe] }
 0x35b   : > { %8711 = vmatmul.mubr.bf16.gmra.mrb[24].mxu1 %v7906_v56  ;;  %8556 = vmatprep.subr.bf16.mxu0 %v9497_v35  ;;  %v9499_v56 = vld [vmem:[#allocation2 + $0x6c] sm:$0xf]  ;;  %v4593_v61 = vsel %vm10505_vm10, %v7878_v2, %v4592_v52  ;;  %v7720_v39 = vcombine.low %v9503_v59, %v10934_v16  ;;  %v7721_v1 = vcombine.low %v10953_v5, %v10966_v40  ;;  %v2891_v18 = vrot.slane %v9504_v8, 5  ;;  %v9505_v40 = vld [vmem:[#allocation2 + $0x8] sm:$0x1] }
 0x35c   : > { %8714 = vmatprep.mubr.bf16.mxu1 %v7907_v19  ;;  %v7718_v26 = vcombine.low %v9499_v56, %v9498_v45  ;;  %8743 = vmatpush3.bf16.msra.mxu1 %v9372_v53  ;;  %v9378_v19 = vld [vmem:[%s9979_s12 + $0x1b0] sm:$0xff]   ;;  %v9502_v53 = vld [vmem:[#allocation2 + $0x80] sm:$0x1]  ;;  %v7722_v16 = vcombine.low %v10963_v54, %v10978_v46  ;;  %v7723_v5 = vcombine.low %v11002_v12, %v11012_v63  ;;  %v2894_v45 = vrot.slane %v9505_v40, 5  ;;  %v2840_v12 = vld [vmem:[#allocation2 + $0x18] sm:$0xe] }
 0x35d   : > { %8744 = vmatprep.subr.bf16.mxu1 %v9375_v58  ;;  %v4595_v17 = vrot.slane %v9502_v53, 5  ;;  %v7733_v56 = vrot.slane %v2838_v24, 9  ;;  %v2898_v10 = vrot.slane %v11061_v14, 5  ;;  %v2905_v54 = vrot.slane %v11068_v44, 5  ;;  %v9506_v14 = vld [vmem:[#allocation2 + $0x14] sm:$0x1] }
 0x35e   : > { %8557 = vmatpush3.bf16.msra.mxu0 %v9497_v35  ;;  %v12691_v46 = vcombine.low %v11165_v6, %v11181_v29  ;;  %v7724_v63 = vcombine.low %v11010_v23, %v11024_v36  ;;  %v7734_v38 = vrot.slane %v2839_v62, 9  ;;  %v7735_v30 = vrot.slane %v2840_v12, 9  ;;  %v9507_v44 = vld [vmem:[#allocation2 + $0x20] sm:$0x1]  ;;  %v9508_v53 = vld [vmem:[#allocation2 + $0x2c] sm:$0x1] }
 0x35f   : > { %v4596_v49 = vsel %vm10505_vm10, %v4594_v27, %v4595_v17  ;;  %v2892_v52 = vsel %vm10505_vm10, %v7733_v56, %v2891_v18  ;;  %v2900_v47 = vrot.slane %v2898_v10, 4  ;;  %v2907_v34 = vrot.slane %v2905_v54, 4  ;;  %v9510_v24 = vld [vmem:[#allocation2 + $0x44] sm:$0x1]  ;;  %v2845_v62 = vld [vmem:[#allocation2 + $0x54] sm:$0xe] }
 0x360   : > { %8527 = vmatmul.mubr.bf16.gmra.mrb[80].mxu0 %v7718_v26  ;;  %8745 = vmatpush3.bf16.msra.mxu1 %v9375_v58  ;;  %v11272_v58 = vld [vmem:[%s9979_s12 + $0x1c0] sm:$0xff]   ;;  %v7910_v35 = vcombine.low %v4593_v61, %v4596_v49  ;;  %v2893_v26 = vrot.slane %v2891_v18, 4  ;;  %v2899_v6 = vsel %vm10505_vm10, %v7734_v38, %v2898_v10  ;;  %v2912_v48 = vrot.slane %v11076_v33, 5  ;;  %v9387_v10 = vld [vmem:[%s9979_s12 + $0x1c8] sm:$0xff]   ;;  %v9388_v38 = vld [vmem:[#allocation2 + $0x48] sm:$0xff]  }
 0x361   : > { %8530 = vmatprep.mubr.bf16.mxu0 %v7719_v31  ;;  %8746 = vmatprep.subr.bf16.mxu1 %v9378_v19  ;;  %v2908_v31 = vrot.slane %v9507_v44, 5  ;;  %v2906_v23 = vsel %vm10505_vm10, %v7735_v30, %v2905_v54  ;;  %v7736_v2 = vrot.slane %v2841_v28, 9  ;;  %v2915_v17 = vrot.slane %v9508_v53, 5  ;;  %v9509_v49 = vld [vmem:[#allocation2 + $0x38] sm:$0x1]  ;;  %v9393_v30 = vld [vmem:[%s9979_s12 + $0x1d8] sm:$0xff]  }
 0x362   : > { %v2895_v55 = vsel %vm10505_vm10, %v2893_v26, %v2894_v45  ;;  %v2914_v27 = vrot.slane %v2912_v48, 4  ;;  %v2922_v59 = vrot.slane %v9509_v49, 5  ;;  %v2926_v4 = vrot.slane %v11103_v11, 5  ;;  %v9511_v45 = vld [vmem:[#allocation2 + $0x50] sm:$0x1]  ;;  %v9383_v26 = vld [vmem:[#allocation2 + $0x24] sm:$0xff]  }
 0x363   : > { %8715 = vmatmul.mubr.bf16.gmra.mrb[28].mxu1 %v7908_v57  ;;  %v2909_v36 = vsel %vm10505_vm10, %v2907_v34, %v2908_v31  ;;  %v2842_v57 = vld [vmem:[#allocation2 + $0x30] sm:$0xe]  ;;  %v2913_v7 = vsel %vm10505_vm10, %v7736_v2, %v2912_v48  ;;  %v2936_v56 = vrot.slane %v9511_v45, 5  ;;  %v5348_v34 = vld [vmem:[#allocation2 + $0x18] sm:$0xf]  ;;  %v9391_v49 = vld [vmem:[#allocation2 + $0x60] sm:$0xff]  }
 0x364   : > { %8718 = vmatprep.mubr.bf16.mxu1 %v7909_v32  ;;  %8747 = vmatpush3.bf16.msra.mxu1 %v9378_v19  ;;  %v7765_v19 = vcombine.low %v2892_v52, %v2895_v55  ;;  %v7767_v33 = vcombine.low %v2906_v23, %v2909_v36  ;;  %v2916_v22 = vsel %vm10505_vm10, %v2914_v27, %v2915_v17  ;;  %v2928_v11 = vrot.slane %v2926_v4, 4  ;;  %v11342_v44 = vld [vmem:[#allocation2 + $0x1c] sm:$0xf]  ;;  %v5354_v23 = vld [vmem:[#allocation2 + $0x30] sm:$0xf]  ;;  %v9389_v27 = vld [vmem:[#allocation2 + $0x54] sm:$0xff]  }
 0x365   : > { %8748 = vmatprep.subr.bf16.mxu1 %v9381_v25  ;;  %v9396_v31 = vld [vmem:[%s9979_s12 + $0x1e0] sm:$0xff]   ;;  %v11347_v36 = vld [vmem:[#allocation2 + $0x34] sm:$0xf]  ;;  %v11351_v2 = vld [vmem:[#allocation2 + $0x40] sm:$0xf] }
 0x366   : > { %v5357_v28 = vld [vmem:[#allocation2 + $0x3c] sm:$0xf] }
 0x368   : > { %8531 = vmatmul.mubr.bf16.gmra.mrb[84].mxu0 %v7720_v39  ;;  %8749 = vmatpush3.bf16.msra.mxu1 %v9381_v25  ;;  %v7737_v25 = vrot.slane %v2842_v57, 9  ;;  %v2933_v39 = vrot.slane %v11117_v37, 5  ;;  %v9385_v37 = vld [vmem:[#allocation2 + $0x30] sm:$0xff]   ;;  %v5400_v57 = vshll.u32 %v5348_v34, 16 }
 0x369   : > { %8534 = vmatprep.mubr.bf16.mxu0 %v7721_v1  ;;  %8782 = vmatprep.subr.bf16.mxu1 %v11272_v58  ;;  %v2844_v1 = vld [vmem:[#allocation2 + $0x48] sm:$0xe] }
 0x36a   : > { %v2935_v40 = vrot.slane %v2933_v39, 4 }
 0x36b   : > { %8719 = vmatmul.mubr.bf16.gmra.mrb[0].mxu1 %v7910_v35  ;;  %v7768_v35 = vcombine.low %v2913_v7, %v2916_v22  ;;  %v5448_v7 = vshll.u32 %v5354_v23, 16  ;;  %v5454_v22 = vshll.u32 %v11347_v36, 16 }
 0x36c   : > { %8722 = vmatprep.mubr.bf16.mxu1 %v7911_v9  ;;  %v2901_v9 = vrot.slane %v9506_v14, 5  ;;  %v2937_v55 = vsel %vm10505_vm10, %v2935_v40, %v2936_v56  ;;  %v5360_v56 = vld [vmem:[#allocation2 + $0x48] sm:$0xf] }
 0x36e   : > { %v2902_v29 = vsel %vm10505_vm10, %v2900_v47, %v2901_v9 }
 0x36f   : > { %v7766_v32 = vcombine.low %v2899_v6, %v2902_v29  ;;  %v5351_v6 = vld [vmem:[#allocation2 + $0x24] sm:$0xf]  ;;  %v11345_v29 = vld [vmem:[#allocation2 + $0x28] sm:$0xf] }
 0x370   : > { %8535 = vmatmul.mubr.bf16.gmra.mrb[88].mxu0 %v7722_v16  ;;  %v2929_v16 = vrot.slane %v9510_v24, 5  ;;  %v5421_v53 = vshrl.u32 %v5351_v6, 16  ;;  %v5424_v17 = vshll.u32 %v5351_v6, 16  ;;  %v11364_v24 = vld [vmem:[#allocation2 + $0x2c] sm:$0x1] }
 0x371   : > { %8538 = vmatprep.mubr.bf16.mxu0 %v7723_v5  ;;  %v7739_v5 = vrot.slane %v2844_v1, 9  ;;  %v5482_v1 = vshrl.u32 %v11351_v2, 16 }
 0x372   : > { %v2930_v20 = vsel %vm10505_vm10, %v2928_v11, %v2929_v16  ;;  %v5423_v16 = vrot.slane %v5421_v53, 4 }
 0x373   : > { %8723 = vmatmul.mubr.bf16.gmra.mrb[4].mxu1 %v12691_v46  ;;  %v2934_v52 = vsel %vm10505_vm10, %v7739_v5, %v2933_v39  ;;  %v9390_v46 = vld [vmem:[%s9979_s12 + $0x1d0] sm:$0xff]   ;;  %v5478_v39 = vshll.u32 %v11351_v2, 16  ;;  %v5426_v5 = vrot.slane %v5424_v17, 5 }
 0x374   : > { %8726 = vmatprep.mubr.bf16.mxu1 %v7913_v60  ;;  %v2919_v60 = vrot.slane %v11088_v51, 5  ;;  %v9382_v51 = vld [vmem:[#allocation2 + $0x18] sm:$0xff]   ;;  %v7771_v12 = vcombine.low %v2934_v52, %v2937_v55 }
 0x376   : > { %v2921_v61 = vrot.slane %v2919_v60, 4 }
 0x378   : > { %8539 = vmatmul.mubr.bf16.gmra.mrb[92].mxu0 %v7724_v63  ;;  %v2923_v41 = vsel %vm10505_vm10, %v2921_v61, %v2922_v59  ;;  %v7740_v63 = vrot.slane %v2845_v62, 9  ;;  %v5434_v61 = vshrl.u32 %v11345_v29, 16  ;;  %v9399_v59 = vld [vmem:[%s9979_s12 + $0x1e8] sm:$0xff]   ;;  %v11374_v62 = vrot.slane %v5478_v39, 5  ;;  %v11390_v39 = vld [vmem:[#allocation2 + $0x58] sm:$0xf] }
 0x379   : > { %8558 = vmatprep.mubr.bf16.mxu0 %v7765_v19  ;;  %v9386_v19 = vld [vmem:[#allocation2 + $0x3c] sm:$0xff]  }
 0x37a   : > { %v5436_v45 = vrot.slane %v5434_v61, 4 }
 0x37b   : > { %8727 = vmatmul.mubr.bf16.gmra.mrb[8].mxu1 %v7914_v0  ;;  %v2920_v0 = vsel %vm10505_vm10, %v7737_v25, %v2919_v60  ;;  %v5397_v60 = vshrl.u32 %v5348_v34, 16  ;;  %v5430_v25 = vshll.u32 %v11345_v29, 16 }
 0x37c   : > { %8730 = vmatprep.mubr.bf16.mxu1 %v7915_v50  ;;  %v2843_v50 = vld [vmem:[#allocation2 + $0x3c] sm:$0xe]  ;;  %v7769_v8 = vcombine.low %v2920_v0, %v2923_v41  ;;  %v11358_v0 = vld [vmem:[#allocation2 + $0x20] sm:$0x1]  ;;  %v5469_v41 = vshrl.u32 %v5357_v28, 16 }
 0x37d   : > { %v7738_v18 = vrot.slane %v2843_v50, 9  ;;  %v5472_v50 = vshll.u32 %v5357_v28, 16  ;;  %v11366_v40 = vrot.slane %v5430_v25, 5 }
 0x37e   : > { %v5471_v52 = vrot.slane %v5469_v41, 4 }
 0x37f   : > { %v2927_v21 = vsel %vm10505_vm10, %v7738_v18, %v2926_v4  ;;  %v5458_v4 = vshrl.u32 %v11347_v36, 16  ;;  %v5474_v55 = vrot.slane %v5472_v50, 5 }
 0x380   : > { %8559 = vmatmul.mubr.bf16.vlgmr.msra.gmra.mrb[64].mxu0 %v7766_v32  ;;  %v7770_v54 = vcombine.low %v2927_v21, %v2930_v20  ;;  %v5406_v32 = vshll.u32 %v11342_v44, 16  ;;  %v11370_v21 = vrot.slane %v5454_v22, 5  ;;  %v5363_v22 = vld [vmem:[#allocation2 + $0x54] sm:$0xf] }
 0x381   : > { %8562 = vmatprep.mubr.bf16.mxu0 %v7767_v33  ;;  %v5410_v33 = vshrl.u32 %v11342_v44, 16  ;;  %v5460_v20 = vrot.slane %v5458_v4, 4  ;;  %v5475_v28 = vor.u32 %v5474_v55, %v5471_v52  ;;  %v5526_v52 = vshll.u32 %v11390_v39, 16 }
 0x382   : > { %v11362_v18 = vrot.slane %v5406_v32, 5  ;;  %v5530_v55 = vshrl.u32 %v11390_v39, 16 }
 0x383   : > { %8731 = vmatmul.mubr.bf16.gmra.mrb[12].mxu1 %v7916_v13  ;;  %v2940_v13 = vrot.slane %v11122_v3, 5  ;;  %v9512_v3 = vld [vmem:[#allocation2 + $0x5c] sm:$0x1]  ;;  %v5412_v11 = vrot.slane %v5410_v33, 4  ;;  %v9405_v33 = vld [vmem:[%s9979_s12 + $0x1f8] sm:$0xff]  }
 0x384   : > { %8750 = vmatprep.mubr.bf16.mxu1 %v9382_v51  ;;  %v2943_v9 = vrot.slane %v9512_v3, 5  ;;  %v5445_v51 = vshrl.u32 %v5354_v23, 16  ;;  %v5493_v3 = vshrl.u32 %v5360_v56, 16  ;;  %v9394_v23 = vld [vmem:[#allocation2 + $0x78] sm:$0xff]  }
 0x385   : > { %v2942_v14 = vrot.slane %v2940_v13, 4 }
 0x386   : > { %v5495_v17 = vrot.slane %v5493_v3, 4 }
 0x387   : > { %v2944_v47 = vsel %vm10505_vm10, %v2942_v14, %v2943_v9  ;;  %v11378_v14 = vld [vmem:[#allocation2 + $0x4c] sm:$0xf]  ;;  %v5496_v9 = vshll.u32 %v5360_v56, 16  ;;  %v5517_v56 = vshrl.u32 %v5363_v22, 16 }
 0x388   : > { %8563 = vmatmul.mubr.bf16.gmra.mrb[68].mxu0 %v7768_v35  ;;  %v5399_v35 = vrot.slane %v5397_v60, 4  ;;  %v5506_v32 = vshrl.u32 %v11378_v14, 16 }
 0x389   : > { %8566 = vmatprep.mubr.bf16.mxu0 %v7769_v8  ;;  %v5402_v8 = vrot.slane %v5400_v57, 5  ;;  %v5502_v57 = vshll.u32 %v11378_v14, 16  ;;  %v5498_v25 = vrot.slane %v5496_v9, 5  ;;  %v9397_v9 = vld [vmem:[#allocation2 + $0x90] sm:$0xff]  }
 0x38b   : > { %8751 = vmatmul.mubr.bf16.vlgmr.msra.gmra.mrb[16].mxu1 %v9383_v26  ;;  %v11368_v26 = vld [vmem:[#allocation2 + $0x38] sm:$0x1] }
 0x38c   : > { %8783 = vmatpush3.bf16.msra.mxu1 %v11272_v58  ;;  %8754 = vmatprep.mubr.bf16.mxu1 %v9385_v37  ;;  %v2941_v58 = vsel %vm10505_vm10, %v7740_v63, %v2940_v13  ;;  %v5447_v37 = vrot.slane %v5445_v51, 4  ;;  %v11372_v13 = vld [vmem:[#allocation2 + $0x44] sm:$0x1]  ;;  %v5416_v63 = vshll.u32 %v11358_v0, 16  ;;  %v5464_v6 = vshll.u32 %v11368_v26, 16 }
 0x38d   : > { %8784 = vmatprep.subr.bf16.mxu1 %v9387_v10  ;;  %v7772_v48 = vcombine.low %v2941_v58, %v2944_v47  ;;  %v5437_v58 = vor.u32 %v5436_v45, %v11366_v40  ;;  %v5440_v47 = vshll.u32 %v11364_v24, 16  ;;  %v5499_v45 = vor.u32 %v5498_v25, %v5495_v17  ;;  %v11565_v25 = vld [vmem:[#allocation2 + $0xa0] sm:$0xf] }
 0x38e   : > { %v5418_v53 = vrot.slane %v5416_v63, 5  ;;  %v5466_v41 = vrot.slane %v5464_v6, 5  ;;  %v11434_v6 = vrot.slane %v5526_v52, 5  ;;  %v9400_v52 = vld [vmem:[#allocation2 + $0xa8] sm:$0xff]  }
 0x38f   : > { %v5438_v51 = vrot.slane %v5437_v58, 4 }
 0x390   : > { %8785 = vmatpush3.bf16.msra.mxu1 %v9387_v10  ;;  %8567 = vmatmul.mubr.bf16.gmra.mrb[72].mxu0 %v7770_v54  ;;  %v5450_v10 = vrot.slane %v5448_v7, 5  ;;  %v5484_v54 = vrot.slane %v5482_v1, 4  ;;  %v5442_v7 = vrot.slane %v5440_v47, 5  ;;  %v5476_v1 = vrot.slane %v5475_v28, 4  ;;  %v11423_v47 = vld [vmem:[#allocation2 + $0x64] sm:$0xf] }
 0x391   : > { %8786 = vmatprep.subr.bf16.mxu1 %v9390_v46  ;;  %8570 = vmatprep.mubr.bf16.mxu0 %v7771_v12  ;;  %v5403_v12 = vor.u32 %v5402_v8, %v5399_v35  ;;  %v11392_v8 = vrot.slane %v5502_v57, 5  ;;  %v6104_v28 = vld [vmem:[#allocation2 + $0x30] sm:$0xe] }
 0x392   : > { %v5451_v34 = vor.u32 %v5450_v10, %v5447_v37  ;;  %v5485_v60 = vor.u32 %v5484_v54, %v11374_v62  ;;  %v5520_v37 = vshll.u32 %v5363_v22, 16  ;;  %v5366_v54 = vld [vmem:[#allocation2 + $0x60] sm:$0xf]  ;;  %v5443_v63 = vsel %vm10776_vm13, %v5438_v51, %v5442_v7  ;;  %v11460_v22 = vld [vmem:[#allocation2 + $0x6c] sm:$0xf] }
 0x393   : > { %8755 = vmatmul.mubr.bf16.gmra.mrb[20].mxu1 %v9386_v19  ;;  %v5413_v19 = vor.u32 %v5412_v11, %v11362_v18  ;;  %v5508_v11 = vrot.slane %v5506_v32, 4  ;;  %v6245_v51 = vrot.slane %v11565_v25, 5 }
 0x394   : > { %8758 = vmatprep.mubr.bf16.mxu1 %v9388_v38  ;;  %8787 = vmatpush3.bf16.msra.mxu1 %v9390_v46  ;;  %v9402_v46 = vld [vmem:[%s9979_s12 + $0x1f0] sm:$0xff]   ;;  %v5427_v38 = vor.u32 %v5426_v5, %v5423_v16  ;;  %v5486_v35 = vrot.slane %v5485_v60, 4  ;;  %v11395_v16 = vld [vmem:[%s9979_s12 + $0x200] sm:$0xff]   ;;  %v11397_v5 = vld [vmem:[#allocation2 + $0x50] sm:$0x1] }
 0x395   : > { %8788 = vmatprep.subr.bf16.mxu1 %v9393_v30  ;;  %v5414_v61 = vrot.slane %v5413_v19, 4  ;;  %v5481_v19 = vsel %vm10776_vm13, %v5476_v1, %v11374_v62  ;;  %v5512_v58 = vshll.u32 %v11397_v5, 16  ;;  %v5541_v62 = vshrl.u32 %v5366_v54, 16 }
 0x396   : > { %v6182_v1 = vrot.slane %v11347_v36, 5  ;;  %v6192_v36 = vrot.slane %v11372_v13, 5 }
 0x397   : > { %v11449_v17 = vrot.slane %v5512_v58, 5  ;;  %v11458_v7 = vrot.slane %v5541_v62, 4 }
 0x398   : > { %8571 = vmatmul.mubr.bf16.gmra.mrb[76].mxu0 %v7772_v48  ;;  %8789 = vmatpush3.bf16.msra.mxu1 %v9393_v30  ;;  %v9392_v30 = vld [vmem:[#allocation2 + $0x6c] sm:$0xff]   ;;  %v5488_v48 = vshll.u32 %v11372_v13, 16 }
 0x399   : > { %8790 = vmatprep.subr.bf16.mxu1 %v9396_v31  ;;  %v11489_v13 = vld [vmem:[#allocation2 + $0x70] sm:$0xf] }
 0x39a   : > { %v5490_v50 = vrot.slane %v5488_v48, 5  ;;  %v11436_v48 = vrot.slane %v5530_v55, 4  ;;  %v11551_v55 = vld [vmem:[#allocation2 + $0x94] sm:$0xf] }
 0x39b   : > { %8759 = vmatmul.mubr.bf16.gmra.mrb[24].mxu1 %v9389_v27  ;;  %v5404_v27 = vrot.slane %v5403_v12, 4 }
 0x39c   : > { %8762 = vmatprep.mubr.bf16.mxu1 %v9391_v49  ;;  %8791 = vmatpush3.bf16.msra.mxu1 %v9396_v31  ;;  %v5461_v31 = vor.u32 %v5460_v20, %v11370_v21  ;;  %v5428_v49 = vrot.slane %v5427_v38, 4  ;;  %v5419_v20 = vsel %vm10776_vm13, %v5414_v61, %v5418_v53  ;;  %v5491_v38 = vsel %vm10776_vm13, %v5486_v35, %v5490_v50  ;;  %v6105_v61 = vld [vmem:[#allocation2 + $0x3c] sm:$0xe] }
 0x39d   : > { %8792 = vmatprep.subr.bf16.mxu1 %v9399_v59  ;;  %v5409_v10 = vsel %vm10776_vm13, %v5404_v27, %v11362_v18  ;;  %v11445_v27 = vcombine.low %v5481_v19, %v5491_v38  ;;  %v6185_v35 = vrot.slane %v11368_v26, 5  ;;  %v6203_v19 = vrot.slane %v11390_v39, 5  ;;  %v6108_v38 = vld [vmem:[#allocation2 + $0x60] sm:$0xe]  ;;  %v11503_v39 = vld [vmem:[#allocation2 + $0x74] sm:$0x1] }
 0x39e   : > { %v5462_v4 = vrot.slane %v5461_v31, 4  ;;  %v5433_v12 = vsel %vm10776_vm13, %v5428_v49, %v11366_v40  ;;  %v5509_v40 = vor.u32 %v5508_v11, %v11392_v8  ;;  %v11432_v31 = vrot.slane %v5520_v37, 5  ;;  %v6106_v11 = vld [vmem:[#allocation2 + $0x48] sm:$0xe] }
 0x39f   : > { %v11438_v60 = vcombine.low %v5409_v10, %v5419_v20  ;;  %v11440_v57 = vcombine.low %v5433_v12, %v5443_v63  ;;  %v8008_v37 = vrot.slane %v6105_v61, 9  ;;  %v6189_v10 = vrot.slane %v11351_v2, 5  ;;  %v6107_v20 = vld [vmem:[#allocation2 + $0x54] sm:$0xe] }
 0x3a0   : > { %8793 = vmatpush3.bf16.msra.mxu1 %v9399_v59  ;;  %v5452_v59 = vrot.slane %v5451_v34, 4  ;;  %v5467_v3 = vsel %vm10776_vm13, %v5462_v4, %v5466_v41  ;;  %v11430_v34 = vrot.slane %v5517_v56, 4  ;;  %v11447_v53 = vrot.slane %v5509_v40, 4  ;;  %v9398_v4 = vld [vmem:[#allocation2 + $0x9c] sm:$0xff]   ;;  %v6112_v41 = vld [vmem:[#allocation2 + $0x90] sm:$0xe] }
 0x3a1   : > { %8794 = vmatprep.subr.bf16.mxu1 %v9402_v46  ;;  %v11480_v26 = vsel %vm10505_vm10, %v8008_v37, %v6189_v10  ;;  %v6191_v12 = vrot.slane %v6189_v10, 4  ;;  %v8009_v63 = vrot.slane %v6106_v11, 9  ;;  %v6205_v61 = vrot.slane %v6203_v19, 4  ;;  %v6110_v10 = vld [vmem:[#allocation2 + $0x78] sm:$0xe] }
 0x3a2   : > { %v5457_v18 = vsel %vm10776_vm13, %v5452_v59, %v11370_v21  ;;  %v11426_v21 = vrot.slane %v5499_v45, 4  ;;  %v8007_v59 = vrot.slane %v6104_v28, 9  ;;  %v6210_v11 = vrot.slane %v11423_v47, 5 }
 0x3a3   : > { %8763 = vmatmul.mubr.bf16.gmra.mrb[28].mxu1 %v9392_v30  ;;  %v11428_v30 = vld [vmem:[#allocation2 + $0x5c] sm:$0x1]  ;;  %v11442_v32 = vcombine.low %v5457_v18, %v5467_v3  ;;  %v6196_v18 = vrot.slane %v11378_v14, 5  ;;  %v6199_v3 = vrot.slane %v11397_v5, 5  ;;  %v11495_v58 = vsel %vm10505_vm10, %v6191_v12, %v6192_v36  ;;  %v6109_v5 = vld [vmem:[#allocation2 + $0x6c] sm:$0xe] }
 0x3a4   : > { %8766 = vmatprep.mubr.bf16.mxu1 %v9394_v23  ;;  %8795 = vmatpush3.bf16.msra.mxu1 %v9402_v46  ;;  %v9395_v46 = vld [vmem:[#allocation2 + $0x84] sm:$0xff]   ;;  %v5544_v23 = vshll.u32 %v5366_v54, 16  ;;  %v11475_v54 = vsel %vm10505_vm10, %v8007_v59, %v6182_v1  ;;  %12692 = vst [vmem:[#allocation20_spill] sm:$0xff] %v11495_v58  ;;  %v6206_v59 = vrot.slane %v11428_v30, 5  ;;  %v8012_v36 = vrot.slane %v6109_v5, 9 }
 0x3a5   : > { %8796 = vmatprep.subr.bf16.mxu1 %v9405_v33  ;;  %v11499_v14 = vsel %vm10505_vm10, %v8009_v63, %v6196_v18  ;;  %v6198_v62 = vrot.slane %v6196_v18, 4  ;;  %v6217_v12 = vrot.slane %v11489_v13, 5  ;;  %v6111_v63 = vld [vmem:[#allocation2 + $0x84] sm:$0xe]  ;;  %v11527_v18 = vld [vmem:[#allocation2 + $0x80] sm:$0x1] }
 0x3a6   : > { %v11464_v50 = vrot.slane %v5544_v23, 5  ;;  %12693 = vst [vmem:[#allocation21_spill] sm:$0xff] %v11499_v14  ;;  %v11501_v23 = vld [vmem:[#allocation2 + $0x68] sm:$0x1]  ;;  %v8013_v28 = vrot.slane %v6110_v10, 9 }
 0x3a7   : > { %v6213_v37 = vrot.slane %v11501_v23, 5  ;;  %v11542_v5 = vsel %vm10505_vm10, %v8012_v36, %v6217_v12  ;;  %v11645_v14 = vld [vmem:[#allocation2 + $0xd4] sm:$0x1] }
 0x3a8   : > { %8797 = vmatpush3.bf16.msra.mxu1 %v9405_v33  ;;  %v5550_v33 = vshll.u32 %v11423_v47, 16  ;;  %12698 = vst [vmem:[#allocation26_spill] sm:$0xff] %v11542_v5 }
 0x3a9   : > { %8830 = vmatprep.subr.bf16.mxu1 %v11395_v16 }
 0x3aa   : > { %v11468_v45 = vrot.slane %v5550_v33, 5 }
 0x3ab   : > { %8767 = vmatmul.mubr.bf16.gmra.mrb[0].mxu1 %v9395_v46  ;;  %v6184_v46 = vrot.slane %v6182_v1, 4  ;;  %v11514_v1 = vsel %vm10505_vm10, %v6198_v62, %v6199_v3  ;;  %v11529_v3 = vld [vmem:[#allocation2 + $0x88] sm:$0xf]  ;;  %v6220_v62 = vrot.slane %v11503_v39, 5 }
 0x3ac   : > { %8770 = vmatprep.mubr.bf16.mxu1 %v9397_v9  ;;  %v8010_v9 = vrot.slane %v6107_v20, 9  ;;  %12695 = vst [vmem:[#allocation23_spill] sm:$0xff] %v11514_v1  ;;  %v11518_v20 = vld [vmem:[#allocation2 + $0x7c] sm:$0xf]  ;;  %v6231_v49 = vrot.slane %v11529_v3, 5 }
 0x3ad   : > { %v11485_v2 = vsel %vm10505_vm10, %v6184_v46, %v6185_v35  ;;  %v8011_v35 = vrot.slane %v6108_v38, 9  ;;  %v11524_v46 = vsel %vm10505_vm10, %v6205_v61, %v6206_v59  ;;  %v6212_v38 = vrot.slane %v6210_v11, 4  ;;  %v9403_v61 = vld [vmem:[#allocation2 + $0xc0] sm:$0xff]   ;;  %v11538_v59 = vld [vmem:[#allocation2 + $0x8c] sm:$0x1] }
 0x3ae   : > { %v11509_v33 = vsel %vm10505_vm10, %v8010_v9, %v6203_v19  ;;  %12696 = vst [vmem:[#allocation24_spill] sm:$0xff] %v11524_v46  ;;  %v6224_v40 = vrot.slane %v11518_v20, 5  ;;  %v11625_v1 = vld [vmem:[#allocation2 + $0xc4] sm:$0xf] }
 0x3af   : > { %12694 = vst [vmem:[#allocation22_spill] sm:$0xff] %v11509_v33  ;;  %v11535_v19 = vsel %vm10505_vm10, %v8011_v35, %v6210_v11  ;;  %v11547_v9 = vsel %vm10505_vm10, %v6212_v38, %v6213_v37  ;;  %v6227_v35 = vrot.slane %v11527_v18, 5  ;;  %v8014_v11 = vrot.slane %v6111_v63, 9  ;;  %v6113_v38 = vld [vmem:[#allocation2 + $0x9c] sm:$0xe] }
 0x3b0   : > { %12697 = vst [vmem:[#allocation25_spill] sm:$0xff] %v11535_v19  ;;  %12699 = vst [vmem:[#allocation27_spill] sm:$0xff] %v11547_v9  ;;  %v6226_v37 = vrot.slane %v6224_v40, 4  ;;  %v11563_v63 = vld [vmem:[#allocation2 + $0x98] sm:$0x1]  ;;  %v8017_v19 = vrot.slane %v6114_v43, 9 }
 0x3b1   : > { %v11571_v36 = vsel %vm10505_vm10, %v8014_v11, %v6231_v49  ;;  %v6241_v56 = vrot.slane %v11563_v63, 5  ;;  %v11580_v9 = vld [vmem:[#allocation2 + $0xa4] sm:$0x1]  ;;  %v11613_v33 = vld [vmem:[#allocation2 + $0xbc] sm:$0x1] }
 0x3b2   : > { %12702 = vst [vmem:[#allocation30_spill] sm:$0xff] %v11571_v36  ;;  %v6116_v36 = vld [vmem:[#allocation2 + $0xc0] sm:$0xe] }
 0x3b3   : > { %8771 = vmatmul.mubr.bf16.gmra.mrb[4].mxu1 %v9398_v4  ;;  %v9401_v4 = vld [vmem:[#allocation2 + $0xb4] sm:$0xff]  }
 0x3b4   : > { %8774 = vmatprep.mubr.bf16.mxu1 %v9400_v52  ;;  %v6219_v52 = vrot.slane %v6217_v12, 4  ;;  %v11561_v12 = vsel %vm10505_vm10, %v8013_v28, %v6224_v40  ;;  %v11576_v40 = vsel %vm10505_vm10, %v6226_v37, %v6227_v35  ;;  %v8015_v28 = vrot.slane %v6112_v41, 9  ;;  %v6115_v35 = vld [vmem:[#allocation2 + $0xb4] sm:$0xe]  ;;  %v11589_v37 = vld [vmem:[#allocation2 + $0xac] sm:$0xf] }
 0x3b5   : > { %12701 = vst [vmem:[#allocation29_spill] sm:$0xff] %v11561_v12  ;;  %12703 = vst [vmem:[#allocation31_spill] sm:$0xff] %v11576_v40  ;;  %v11591_v41 = vld [vmem:[#allocation2 + $0xb8] sm:$0xf]  ;;  %v6248_v40 = vrot.slane %v11580_v9, 5  ;;  %v6247_v12 = vrot.slane %v6245_v51, 4 }
 0x3b6   : > { %v11557_v10 = vsel %vm10505_vm10, %v6219_v52, %v6220_v62  ;;  %v6233_v52 = vrot.slane %v6231_v49, 4  ;;  %v6234_v62 = vrot.slane %v11538_v59, 5  ;;  %v6252_v46 = vrot.slane %v11589_v37, 5 }
 0x3b7   : > { %12700 = vst [vmem:[#allocation28_spill] sm:$0xff] %v11557_v10  ;;  %v11619_v43 = vsel %vm10505_vm10, %v6247_v12, %v6248_v40  ;;  %v6262_v12 = vrot.slane %v11613_v33, 5  ;;  %v11636_v40 = vld [vmem:[#allocation2 + $0xd0] sm:$0xf]  ;;  %v12729_v15 = vld [vmem:[#allocation25_spill] sm:$0xff] }
 0x3b8   : > { %v11586_v49 = vsel %vm10505_vm10, %v6233_v52, %v6234_v62  ;;  %v9404_v52 = vld [vmem:[#allocation2 + $0xcc] sm:$0xff]   ;;  %12708 = vst [vmem:[#allocation36_spill] sm:$0xff] %v11619_v43 }
 0x3b9   : > { %12704 = vst [vmem:[#allocation32_spill] sm:$0xff] %v11586_v49  ;;  %v11600_v62 = vld [vmem:[#allocation2 + $0xb0] sm:$0x1]  ;;  %v6259_v49 = vrot.slane %v11591_v41, 5 }
 0x3bb   : > { %8775 = vmatmul.mubr.bf16.gmra.mrb[8].mxu1 %v9401_v4  ;;  %v6238_v4 = vrot.slane %v11551_v55, 5 }
 0x3bc   : > { %8778 = vmatprep.mubr.bf16.mxu1 %v9403_v61  ;;  %v8016_v61 = vrot.slane %v6113_v38, 9 }
 0x3bd   : > { %v11597_v5 = vsel %vm10505_vm10, %v8015_v28, %v6238_v4  ;;  %v6240_v11 = vrot.slane %v6238_v4, 4  ;;  %v6255_v28 = vrot.slane %v11600_v62, 5  ;;  %v8018_v4 = vrot.slane %v6115_v35, 9  ;;  %v11627_v35 = vld [vmem:[#allocation2 + $0xc8] sm:$0x1] }
 0x3be   : > { %12705 = vst [vmem:[#allocation33_spill] sm:$0xff] %v11597_v5  ;;  %v11604_v38 = vsel %vm10505_vm10, %v8016_v61, %v6245_v51  ;;  %v11623_v51 = vsel %vm10505_vm10, %v8017_v19, %v6252_v46  ;;  %v8019_v19 = vrot.slane %v6116_v36, 9  ;;  %v6266_v5 = vrot.slane %v11625_v1, 5 }
 0x3bf   : > { %12706 = vst [vmem:[#allocation34_spill] sm:$0xff] %v11604_v38  ;;  %v11609_v10 = vsel %vm10505_vm10, %v6240_v11, %v6241_v56  ;;  %v6254_v56 = vrot.slane %v6252_v46, 4  ;;  %v6117_v11 = vld [vmem:[#allocation2 + $0xcc] sm:$0xe]  ;;  %v11633_v61 = vsel %vm10505_vm10, %v8018_v4, %v6259_v49  ;;  %v6269_v58 = vrot.slane %v11627_v35, 5 }
 0x3c0   : > { %12707 = vst [vmem:[#allocation35_spill] sm:$0xff] %v11609_v10  ;;  %12709 = vst [vmem:[#allocation37_spill] sm:$0xff] %v11633_v61  ;;  %v6261_v10 = vrot.slane %v6259_v49, 4  ;;  %v8020_v4 = vrot.slane %v6117_v11, 9  ;;  %v6268_v43 = vrot.slane %v6266_v5, 4  ;;  %v6276_v38 = vrot.slane %v11645_v14, 5 }
 0x3c1   : > { %v11640_v46 = vsel %vm10505_vm10, %v6254_v56, %v6255_v28  ;;  %v6273_v28 = vrot.slane %v11636_v40, 5  ;;  %v5372_v56 = vld [vmem:[#allocation2 + $0x78] sm:$0xf]  ;;  %v12712_v49 = vshrl.u32 %v11423_v47, 16  ;;  %v5547_v36 = vor.u32 %v11464_v50, %v11458_v7 }
 0x3c2   : > { %12710 = vst [vmem:[#allocation38_spill] sm:$0xff] %v11640_v46  ;;  %v5589_v47 = vshrl.u32 %v5372_v56, 16  ;;  %v5515_v7 = vsel %vm10776_vm13, %v11447_v53, %v11449_v17  ;;  %v12715_v50 = vor.u32 %v11432_v31, %v11430_v34  ;;  %v12717_v61 = vshrl.u32 %v11460_v22, 16 }
 0x3c3   : > { %8779 = vmatmul.mubr.bf16.gmra.mrb[12].mxu1 %v9404_v52  ;;  %v11651_v52 = vsel %vm10505_vm10, %v6261_v10, %v6262_v12  ;;  %v5556_v46 = vrot.slane %v12712_v49, 4  ;;  %v5568_v10 = vshll.u32 %v11460_v22, 16  ;;  %v11666_v11 = vsel %vm10505_vm10, %v8020_v4, %v6273_v28 }
 0x3c4   : > { %8798 = vmatprep.mubr.bf16.mxu1 %v11438_v60  ;;  %12711 = vst [vmem:[#allocation39_spill] sm:$0xff] %v11651_v52  ;;  %v11658_v60 = vsel %vm10505_vm10, %v8019_v19, %v6266_v5  ;;  %v6275_v12 = vrot.slane %v6273_v28, 4  ;;  %v5574_v52 = vshll.u32 %v11489_v13, 16  ;;  %v5578_v19 = vshrl.u32 %v11489_v13, 16  ;;  %v9407_v28 = vld [vmem:[%s9979_s12 + $0x208] sm:$0xff]  }
 0x3c5   : > { %v11674_v5 = vsel %vm10505_vm10, %v6268_v43, %v6269_v58  ;;  %v5592_v49 = vshll.u32 %v5372_v56, 16  ;;  %v11690_v13 = vrot.slane %v12715_v50, 4  ;;  %v12716_v58 = vshll.u32 %v11428_v30, 16 }
 0x3c6   : > { %12713 = vst [vmem:[#allocation40_spill] sm:$0xff] %v11674_v5  ;;  %v11680_v4 = vsel %vm10505_vm10, %v6275_v12, %v6276_v38  ;;  %v5557_v38 = vor.u32 %v5556_v46, %v11468_v45  ;;  %v5560_v12 = vshll.u32 %v11501_v23, 16  ;;  %v5567_v53 = vrot.slane %v12717_v61, 4  ;;  %v5375_v5 = vld [vmem:[#allocation2 + $0x84] sm:$0xf] }
 0x3c7   : > { %12714 = vst [vmem:[#allocation41_spill] sm:$0xff] %v11680_v4  ;;  %v11694_v43 = vrot.slane %v12716_v58, 5  ;;  %v5570_v17 = vrot.slane %v5568_v10, 5  ;;  %v11703_v34 = vrot.slane %v5574_v52, 5  ;;  %v5580_v30 = vrot.slane %v5578_v19, 4 }
 0x3c8   : > { %v5598_v31 = vshll.u32 %v11518_v20, 16  ;;  %v5602_v50 = vshrl.u32 %v11518_v20, 16  ;;  %v12718_v22 = vor.u32 %v11436_v48, %v11434_v6  ;;  %v5548_v61 = vrot.slane %v5547_v36, 4 }
 0x3c9   : > { %v5591_v46 = vrot.slane %v5589_v47, 4  ;;  %v5594_v10 = vrot.slane %v5592_v49, 5  ;;  %v5613_v52 = vshrl.u32 %v5375_v5, 16  ;;  %v5616_v58 = vshll.u32 %v5375_v5, 16 }
 0x3ca   : > { %v5534_v23 = vrot.slane %v12718_v22, 4  ;;  %v5622_v19 = vshll.u32 %v11529_v3, 16  ;;  %v5626_v56 = vshrl.u32 %v11529_v3, 16  ;;  %v5558_v20 = vrot.slane %v5557_v38, 4  ;;  %v9409_v38 = vld [vmem:[%s9979_s12 + $0x218] sm:$0xff]  }
 0x3cb   : > { %8799 = vmatmul.mubr.bf16.vlgmr.msra.gmra.mrb[16].mxu1 %v11440_v57  ;;  %v9408_v57 = vld [vmem:[%s9979_s12 + $0x210] sm:$0xff]   ;;  %v5571_v4 = vor.u32 %v5570_v17, %v5567_v53  ;;  %v12719_v48 = vsel %vm10776_vm13, %v11426_v21, %v11392_v8  ;;  %v5581_v47 = vor.u32 %v5580_v30, %v11703_v34  ;;  %v11722_v49 = vrot.slane %v5598_v31, 5 }
 0x3cc   : > { %8831 = vmatpush3.bf16.msra.mxu1 %v11395_v16  ;;  %8802 = vmatprep.mubr.bf16.mxu1 %v11442_v32  ;;  %v5562_v16 = vrot.slane %v5560_v12, 5  ;;  %v5584_v32 = vshll.u32 %v11503_v39, 16  ;;  %v7985_v36 = vcombine.low %v12719_v48, %v5515_v7  ;;  %v5604_v5 = vrot.slane %v5602_v50, 4  ;;  %v5378_v7 = vld [vmem:[#allocation2 + $0x90] sm:$0xf] }
 0x3cd   : > { %8832 = vmatprep.subr.bf16.mxu1 %v9407_v28  ;;  %v5529_v3 = vsel %vm10776_vm13, %v11690_v13, %v11434_v6  ;;  %v5539_v39 = vsel %vm10776_vm13, %v5534_v23, %v11694_v43  ;;  %v5553_v8 = vsel %vm10776_vm13, %v5548_v61, %v11468_v45  ;;  %v5595_v21 = vor.u32 %v5594_v10, %v5591_v46  ;;  %v9410_v10 = vld [vmem:[%s9979_s12 + $0x220] sm:$0xff]   ;;  %v5384_v48 = vld [vmem:[#allocation2 + $0xa8] sm:$0xf] }
 0x3ce   : > { %v5615_v12 = vrot.slane %v5613_v52, 4  ;;  %v5618_v53 = vrot.slane %v5616_v58, 5  ;;  %v5628_v17 = vrot.slane %v5626_v56, 4  ;;  %v5563_v6 = vsel %vm10776_vm13, %v5558_v20, %v5562_v16 }
 0x3cf   : > { %v5572_v13 = vrot.slane %v5571_v4, 4  ;;  %v5586_v30 = vrot.slane %v5584_v32, 5  ;;  %v5608_v43 = vshll.u32 %v11527_v18, 16  ;;  %v5582_v45 = vrot.slane %v5581_v47, 4 }
 0x3d0   : > { %8833 = vmatpush3.bf16.msra.mxu1 %v9407_v28  ;;  %v11735_v28 = vrot.slane %v5622_v19, 5  ;;  %v5605_v31 = vor.u32 %v5604_v5, %v11722_v49  ;;  %v5637_v50 = vshrl.u32 %v5378_v7, 16  ;;  %v5640_v22 = vshll.u32 %v5378_v7, 16 }
 0x3d1   : > { %8834 = vmatprep.subr.bf16.mxu1 %v9408_v57  ;;  %v5646_v23 = vshll.u32 %v11551_v55, 16  ;;  %v5650_v56 = vshrl.u32 %v11551_v55, 16  ;;  %v5596_v61 = vrot.slane %v5595_v21, 4  ;;  %v5619_v4 = vor.u32 %v5618_v53, %v5615_v12  ;;  %v9411_v21 = vld [vmem:[%s9979_s12 + $0x228] sm:$0xff]  }
 0x3d2   : > { %v5629_v46 = vor.u32 %v5628_v17, %v11735_v28  ;;  %v5632_v18 = vshll.u32 %v11538_v59, 16  ;;  %v7986_v52 = vcombine.low %v5529_v3, %v5539_v39  ;;  %v7987_v58 = vcombine.low %v5553_v8, %v5563_v6 }
 0x3d3   : > { %8803 = vmatmul.mubr.bf16.gmra.mrb[20].mxu1 %v11445_v27  ;;  %v5381_v27 = vld [vmem:[#allocation2 + $0x9c] sm:$0xf]  ;;  %v5577_v19 = vsel %vm10776_vm13, %v5572_v13, %v11703_v34  ;;  %v5587_v55 = vsel %vm10776_vm13, %v5582_v45, %v5586_v30  ;;  %v5606_v20 = vrot.slane %v5605_v31, 4  ;;  %v5639_v16 = vrot.slane %v5637_v50, 4 }
 0x3d4   : > { %8806 = vmatprep.mubr.bf16.mxu1 %v7985_v36  ;;  %8835 = vmatpush3.bf16.msra.mxu1 %v9408_v57  ;;  %v5610_v57 = vrot.slane %v5608_v43, 5  ;;  %v5642_v32 = vrot.slane %v5640_v22, 5  ;;  %v11752_v36 = vrot.slane %v5646_v23, 5  ;;  %v5652_v59 = vrot.slane %v5650_v56, 4  ;;  %v9412_v23 = vld [vmem:[%s9979_s12 + $0x230] sm:$0xff]  }
 0x3d5   : > { %8836 = vmatprep.subr.bf16.mxu1 %v9409_v38  ;;  %v5661_v47 = vshrl.u32 %v5381_v27, 16  ;;  %v5664_v5 = vshll.u32 %v5381_v27, 16  ;;  %v5601_v3 = vsel %vm10776_vm13, %v5596_v61, %v11722_v49  ;;  %v5620_v34 = vrot.slane %v5619_v4, 4  ;;  %v5387_v27 = vld [vmem:[#allocation2 + $0xb4] sm:$0xf] }
 0x3d6   : > { %v5630_v39 = vrot.slane %v5629_v46, 4  ;;  %v5634_v8 = vrot.slane %v5632_v18, 5  ;;  %v5670_v7 = vshll.u32 %v11565_v25, 16  ;;  %v5674_v12 = vshrl.u32 %v11565_v25, 16 }
 0x3d7   : > { %v5685_v53 = vshrl.u32 %v5384_v48, 16  ;;  %v5611_v17 = vsel %vm10776_vm13, %v5606_v20, %v5610_v57  ;;  %v5643_v6 = vor.u32 %v5642_v32, %v5639_v16  ;;  %v5694_v13 = vshll.u32 %v11589_v37, 16 }
 0x3d8   : > { %8837 = vmatpush3.bf16.msra.mxu1 %v9409_v38  ;;  %v5688_v38 = vshll.u32 %v5384_v48, 16  ;;  %v5698_v49 = vshrl.u32 %v11589_v37, 16  ;;  %v5653_v30 = vor.u32 %v5652_v59, %v11752_v36  ;;  %v5656_v43 = vshll.u32 %v11563_v63, 16  ;;  %v5390_v59 = vld [vmem:[#allocation2 + $0xc0] sm:$0xf] }
 0x3d9   : > { %8838 = vmatprep.subr.bf16.mxu1 %v9410_v10  ;;  %v5663_v45 = vrot.slane %v5661_v47, 4  ;;  %v5666_v25 = vrot.slane %v5664_v5, 5  ;;  %v7988_v31 = vcombine.low %v5577_v19, %v5587_v55  ;;  %v5625_v50 = vsel %vm10776_vm13, %v5620_v34, %v11735_v28  ;;  %v9413_v55 = vld [vmem:[%s9979_s12 + $0x238] sm:$0xff]  }
 0x3da   : > { %v5635_v22 = vsel %vm10776_vm13, %v5630_v39, %v5634_v8  ;;  %v11772_v56 = vrot.slane %v5670_v7, 5  ;;  %v5676_v37 = vrot.slane %v5674_v12, 4  ;;  %v5687_v61 = vrot.slane %v5685_v53, 4 }
 0x3db   : > { %8807 = vmatmul.mubr.bf16.gmra.mrb[24].mxu1 %v7986_v52  ;;  %v5690_v4 = vrot.slane %v5688_v38, 5  ;;  %v7989_v46 = vcombine.low %v5601_v3, %v5611_v17  ;;  %v5644_v63 = vrot.slane %v5643_v6, 4  ;;  %v11774_v18 = vrot.slane %v5694_v13, 5 }
 0x3dc   : > { %8810 = vmatprep.mubr.bf16.mxu1 %v7987_v58  ;;  %8839 = vmatpush3.bf16.msra.mxu1 %v9410_v10  ;;  %v5700_v10 = vrot.slane %v5698_v49, 4  ;;  %v5654_v52 = vrot.slane %v5653_v30, 4  ;;  %v5658_v58 = vrot.slane %v5656_v43, 5  ;;  %v5667_v28 = vor.u32 %v5666_v25, %v5663_v45 }
 0x3dd   : > { %8840 = vmatprep.subr.bf16.mxu1 %v9411_v21  ;;  %v5680_v19 = vshll.u32 %v11580_v9, 16  ;;  %v7990_v57 = vcombine.low %v5625_v50, %v5635_v22  ;;  %v5677_v20 = vor.u32 %v5676_v37, %v11772_v56  ;;  %v5691_v16 = vor.u32 %v5690_v4, %v5687_v61  ;;  %v5393_v22 = vld [vmem:[#allocation2 + $0xcc] sm:$0xf] }
 0x3de   : > { %v5704_v32 = vshll.u32 %v11600_v62, 16  ;;  %v5709_v48 = vshrl.u32 %v5387_v27, 16  ;;  %v5701_v47 = vor.u32 %v5700_v10, %v11774_v18  ;;  %v5712_v5 = vshll.u32 %v5387_v27, 16 }
 0x3df   : > { %v5718_v3 = vshll.u32 %v11591_v41, 16  ;;  %v5722_v34 = vshrl.u32 %v11591_v41, 16  ;;  %v5649_v9 = vsel %vm10776_vm13, %v5644_v63, %v11752_v36  ;;  %v5659_v39 = vsel %vm10776_vm13, %v5654_v52, %v5658_v58 }
 0x3e0   : > { %8841 = vmatpush3.bf16.msra.mxu1 %v9411_v21  ;;  %v5668_v8 = vrot.slane %v5667_v28, 4  ;;  %v5682_v62 = vrot.slane %v5680_v19, 5  ;;  %v5733_v21 = vshrl.u32 %v5390_v59, 16  ;;  %v5736_v7 = vshll.u32 %v5390_v59, 16 }
 0x3e1   : > { %8842 = vmatprep.subr.bf16.mxu1 %v9412_v23  ;;  %v5742_v12 = vshll.u32 %v11625_v1, 16  ;;  %v5746_v53 = vshrl.u32 %v11625_v1, 16  ;;  %v5678_v38 = vrot.slane %v5677_v20, 4  ;;  %v5692_v41 = vrot.slane %v5691_v16, 4 }
 0x3e2   : > { %v5706_v17 = vrot.slane %v5704_v32, 5  ;;  %v5711_v6 = vrot.slane %v5709_v48, 4  ;;  %v5702_v13 = vrot.slane %v5701_v47, 4  ;;  %v5714_v49 = vrot.slane %v5712_v5, 5 }
 0x3e3   : > { %8811 = vmatmul.mubr.bf16.gmra.mrb[28].mxu1 %v7988_v31  ;;  %v5720_v36 = vrot.slane %v5718_v3, 5  ;;  %v5724_v30 = vrot.slane %v5722_v34, 4  ;;  %v7991_v43 = vcombine.low %v5649_v9, %v5659_v39  ;;  %v5735_v45 = vrot.slane %v5733_v21, 4 }
 0x3e4   : > { %8814 = vmatprep.mubr.bf16.mxu1 %v7989_v46  ;;  %8843 = vmatpush3.bf16.msra.mxu1 %v9412_v23  ;;  %v5738_v25 = vrot.slane %v5736_v7, 5  ;;  %v5744_v31 = vrot.slane %v5742_v12, 5  ;;  %v5748_v50 = vrot.slane %v5746_v53, 4  ;;  %v5673_v1 = vsel %vm10776_vm13, %v5668_v8, %v11772_v56  ;;  %v6102_v7 = vld [vmem:[#allocation2 + $0x18] sm:$0xe] }
 0x3e5   : > { %8844 = vmatprep.subr.bf16.mxu1 %v9413_v55  ;;  %v5683_v23 = vsel %vm10776_vm13, %v5678_v38, %v5682_v62  ;;  %v5728_v37 = vshll.u32 %v11613_v33, 16  ;;  %v5697_v61 = vsel %vm10776_vm13, %v5692_v41, %v11774_v18  ;;  %v5707_v4 = vsel %vm10776_vm13, %v5702_v13, %v5706_v17 }
 0x3e6   : > { %v5715_v46 = vor.u32 %v5714_v49, %v5711_v6  ;;  %v5725_v63 = vor.u32 %v5724_v30, %v5720_v36  ;;  %v5757_v10 = vshrl.u32 %v5393_v22, 16  ;;  %v5760_v27 = vshll.u32 %v5393_v22, 16 }
 0x3e7   : > { %v5766_v56 = vshll.u32 %v11636_v40, 16  ;;  %v5770_v52 = vshrl.u32 %v11636_v40, 16  ;;  %v5739_v58 = vor.u32 %v5738_v25, %v5735_v45  ;;  %v5749_v28 = vor.u32 %v5748_v50, %v5744_v31  ;;  %v6103_v45 = vld [vmem:[#allocation2 + $0x24] sm:$0xe] }
 0x3e8   : > { %8845 = vmatpush3.bf16.msra.mxu1 %v9413_v55  ;;  %v5752_v33 = vshll.u32 %v11627_v35, 16  ;;  %v7992_v19 = vcombine.low %v5673_v1, %v5683_v23  ;;  %v5716_v55 = vrot.slane %v5715_v46, 4  ;;  %v5726_v18 = vrot.slane %v5725_v63, 4  ;;  %v12726_v63 = vld [vmem:[#allocation22_spill] sm:$0xff] }
 0x3e9   : > { %v5730_v20 = vrot.slane %v5728_v37, 5  ;;  %v5759_v16 = vrot.slane %v5757_v10, 4  ;;  %v5762_v32 = vrot.slane %v5760_v27, 5  ;;  %v5768_v48 = vrot.slane %v5766_v56, 5  ;;  %v12721_v37 = vld [vmem:[#allocation20_spill] sm:$0xff]  ;;  %v12730_v56 = vld [vmem:[#allocation27_spill] sm:$0xff] }
 0x3ea   : > { %v5772_v59 = vrot.slane %v5770_v52, 4  ;;  %v5740_v47 = vrot.slane %v5739_v58, 4  ;;  %v5750_v5 = vrot.slane %v5749_v28, 4  ;;  %v5754_v3 = vrot.slane %v5752_v33, 5  ;;  %v12727_v10 = vld [vmem:[#allocation24_spill] sm:$0xff]  ;;  %v12732_v58 = vld [vmem:[#allocation26_spill] sm:$0xff] }
 0x3eb   : > { %8815 = vmatmul.mubr.bf16.gmra.mrb[0].mxu1 %v7990_v57  ;;  %v7993_v57 = vcombine.low %v5697_v61, %v5707_v4  ;;  %v5721_v40 = vsel %vm10776_vm13, %v5716_v55, %v5720_v36  ;;  %v5731_v35 = vsel %vm10776_vm13, %v5726_v18, %v5730_v20  ;;  %v5763_v34 = vor.u32 %v5762_v32, %v5759_v16  ;;  %v12723_v4 = vld [vmem:[#allocation21_spill] sm:$0xff]  ;;  %v12733_v28 = vld [vmem:[#allocation28_spill] sm:$0xff]  ;;  %v12736_v33 = vld [vmem:[#allocation31_spill] sm:$0xff] }
 0x3ec   : > { %8818 = vmatprep.mubr.bf16.mxu1 %v7991_v43  ;;  %v5773_v9 = vor.u32 %v5772_v59, %v5768_v48  ;;  %v5776_v39 = vshll.u32 %v11645_v14, 16  ;;  %v5745_v8 = vsel %vm10776_vm13, %v5740_v47, %v5744_v31  ;;  %v5755_v62 = vsel %vm10776_vm13, %v5750_v5, %v5754_v3  ;;  %v12741_v18 = vld [vmem:[#allocation33_spill] sm:$0xff]  ;;  %v12742_v20 = vld [vmem:[#allocation35_spill] sm:$0xff]  ;;  %v12744_v32 = vld [vmem:[#allocation34_spill] sm:$0xff] }
 0x3ed   : > { %v6168_v21 = vrot.slane %v11342_v44, 5  ;;  %v7994_v12 = vcombine.low %v5721_v40, %v5731_v35  ;;  %v7995_v53 = vcombine.low %v5745_v8, %v5755_v62  ;;  %v5764_v38 = vrot.slane %v5763_v34, 4  ;;  %v12747_v5 = vld [vmem:[#allocation38_spill] sm:$0xff] }
 0x3ee   : > { %v5774_v41 = vrot.slane %v5773_v9, 4  ;;  %v5778_v17 = vrot.slane %v5776_v39, 5  ;;  %v8005_v6 = vrot.slane %v6102_v7, 9  ;;  %v6171_v49 = vrot.slane %v11358_v0, 5  ;;  %v12749_v9 = vld [vmem:[#allocation37_spill] sm:$0xff]  ;;  %v12750_v39 = vld [vmem:[#allocation39_spill] sm:$0xff] }
 0x3ef   : > { %v6170_v13 = vrot.slane %v6168_v21, 4  ;;  %v5769_v14 = vsel %vm10776_vm13, %v5764_v38, %v5768_v48  ;;  %v6175_v44 = vrot.slane %v11345_v29, 5  ;;  %v8006_v0 = vrot.slane %v6103_v45, 9  ;;  %v12745_v48 = vld [vmem:[#allocation36_spill] sm:$0xff]  ;;  %v12754_v38 = vld [vmem:[#allocation41_spill] sm:$0xff] }
 0x3f0   : > { %v5779_v36 = vsel %vm10776_vm13, %v5774_v41, %v5778_v17  ;;  %v6169_v30 = vsel %vm10505_vm10, %v8005_v6, %v6168_v21  ;;  %v6178_v22 = vrot.slane %v11364_v24, 5  ;;  %v12720_v23 = vcombine.low %v11475_v54, %v11485_v2  ;;  %v12724_v24 = vld [vmem:[#allocation23_spill] sm:$0xff]  ;;  %v12735_v2 = vld [vmem:[#allocation29_spill] sm:$0xff]  ;;  %v12752_v21 = vld [vmem:[#allocation40_spill] sm:$0xff] }
 0x3f1   : > { %v6172_v43 = vsel %vm10505_vm10, %v6170_v13, %v6171_v49  ;;  %v7996_v25 = vcombine.low %v5769_v14, %v5779_v36  ;;  %v6177_v50 = vrot.slane %v6175_v44, 4  ;;  %v6176_v42 = vsel %vm10505_vm10, %v8006_v0, %v6175_v44 }
 0x3f2   : > { %v8037_v31 = vcombine.low %v6169_v30, %v6172_v43  ;;  %v12722_v61 = vcombine.low %v11480_v26, %v12721_v37  ;;  %v12725_v46 = vcombine.low %v12723_v4, %v12724_v24  ;;  %v12728_v27 = vcombine.low %v12726_v63, %v12727_v10  ;;  %v9416_v24 = vld [vmem:[%s9981_s24 + $0x4] ss:$8 sps:$4 sm:$0xff]   ;;  %v9419_v63 = vld [vmem:[%s9981_s24 + $0x14] ss:$8 sps:$4 sm:$0xff]   ;;  %v9417_v10 = vld [vmem:[%s9981_s24 + $0x10] ss:$8 sps:$4 sm:$0xff]  }
 0x3f3   : > { %8819 = vmatmul.mubr.bf16.gmra.mrb[4].mxu1 %v7992_v19  ;;  %v6179_v29 = vsel %vm10505_vm10, %v6177_v50, %v6178_v22  ;;  %v12731_v52 = vcombine.low %v12729_v15, %v12730_v56  ;;  %v12734_v54 = vcombine.low %v12732_v58, %v12733_v28  ;;  %v12737_v26 = vcombine.low %v12735_v2, %v12736_v33  ;;  %v12738_v19 = vld [vmem:[#allocation30_spill] sm:$0xff]  ;;  %v9420_v15 = vld [vmem:[%s9981_s24 + $0x20] ss:$8 sps:$4 sm:$0xff]   ;;  %v9428_v58 = vld [vmem:[%s9981_s24 + $0x44] ss:$8 sps:$4 sm:$0xff]  }
 0x3f4   : > { %8822 = vmatprep.mubr.bf16.mxu1 %v7993_v57  ;;  %v8038_v1 = vcombine.low %v6176_v42, %v6179_v29  ;;  %v12739_v57 = vld [vmem:[#allocation32_spill] sm:$0xff]  ;;  %v12743_v16 = vcombine.low %v12741_v18, %v12742_v20  ;;  %v12746_v59 = vcombine.low %v12744_v32, %v12745_v48  ;;  %v12748_v3 = vcombine.low %v11623_v51, %v12747_v5  ;;  %v9425_v56 = vld [vmem:[%s9981_s24 + $0x34] ss:$8 sps:$4 sm:$0xff]   ;;  %v9429_v2 = vld [vmem:[%s9981_s24 + $0x50] ss:$8 sps:$4 sm:$0xff]  }
 0x3f5   : > { %v12740_v55 = vcombine.low %v12738_v19, %v12739_v57  ;;  %v12751_v8 = vcombine.low %v12749_v9, %v12750_v39  ;;  %v12753_v7 = vcombine.low %v11658_v60, %v12752_v21  ;;  %v12755_v41 = vcombine.low %v11666_v11, %v12754_v38  ;;  %6966 = vmatprep.subr.bf16.mxu0 %v9416_v24  ;;  %v9426_v28 = vld [vmem:[%s9981_s24 + $0x40] ss:$8 sps:$4 sm:$0xff]   ;;  %v9434_v33 = vld [vmem:[%s9981_s24 + $0x64] ss:$8 sps:$4 sm:$0xff]   ;;  %v9437_v19 = vld [vmem:[%s9981_s24 + $0x74] ss:$8 sps:$4 sm:$0xff]  }
 0x3f6   : > { %v9435_v57 = vld [vmem:[%s9981_s24 + $0x70] ss:$8 sps:$4 sm:$0xff]  }
 0x3fb   : > { %8823 = vmatmul.mubr.bf16.gmra.mrb[8].mxu1 %v7994_v12 }
 0x3fc   : > { %8826 = vmatprep.mubr.bf16.mxu1 %v7995_v53 }
 0x403   : > { %8827 = vmatmul.mubr.bf16.gmra.mrb[12].mxu1 %v7996_v25 }
 0x404   : > { %8846 = vmatprep.mubr.bf16.mxu1 %v8037_v31 }
 0x40b   : > { %8847 = vmatmul.mubr.bf16.vlgmr.msra.gmra.mrb[16].mxu1 %v8038_v1 }
 0x40c   : > { %8850 = vmatprep.mubr.bf16.mxu1 %v12720_v23 }
 0x413   : > { %8851 = vmatmul.mubr.bf16.gmra.mrb[20].mxu1 %v12722_v61 }
 0x414   : > { %8854 = vmatprep.mubr.bf16.mxu1 %v12725_v46  ;;  %v9414_v46 = vld [vmem:[%s9981_s24] ss:$8 sps:$4 sm:$0xff]  }
 0x415   : > { %6967 = vmatpush1.bf16.msra.mxu0 %v9414_v46 }
 0x416   : > { %6968 = vmatprep.subr.bf16.mxu0 %v9419_v63 }
 0x419   : > { %6969 = vmatpush1.bf16.msra.mxu0 %v9417_v10 }
 0x41b   : > { %8855 = vmatmul.mubr.bf16.gmra.mrb[24].mxu1 %v12728_v27  ;;  %v9422_v27 = vld [vmem:[%s9981_s24 + $0x24] ss:$8 sps:$4 sm:$0xff]  }
 0x41c   : > { %8858 = vmatprep.mubr.bf16.mxu1 %v12731_v52  ;;  %6970 = vmatprep.subr.bf16.mxu0 %v9422_v27  ;;  %v9423_v52 = vld [vmem:[%s9981_s24 + $0x30] ss:$8 sps:$4 sm:$0xff]  }
 0x41d   : > { %6971 = vmatpush1.bf16.msra.mxu0 %v9420_v15 }
 0x41e   : > { %6972 = vmatprep.subr.bf16.mxu0 %v9425_v56 }
 0x421   : > { %6973 = vmatpush1.bf16.msra.mxu0 %v9423_v52 }
 0x422   : > { %6974 = vmatprep.subr.bf16.mxu0 %v9428_v58 }
 0x423   : > { %8859 = vmatmul.mubr.bf16.gmra.mrb[28].mxu1 %v12734_v54  ;;  %v9431_v54 = vld [vmem:[%s9981_s24 + $0x54] ss:$8 sps:$4 sm:$0xff]  }
 0x424   : > { %8862 = vmatprep.mubr.bf16.mxu1 %v12737_v26  ;;  %v9432_v26 = vld [vmem:[%s9981_s24 + $0x60] ss:$8 sps:$4 sm:$0xff]  }
 0x425   : > { %6975 = vmatpush1.bf16.msra.mxu0 %v9426_v28 }
 0x426   : > { %6976 = vmatprep.subr.bf16.mxu0 %v9431_v54 }
 0x429   : > { %6977 = vmatpush1.bf16.msra.mxu0 %v9429_v2 }
 0x42a   : > { %6978 = vmatprep.subr.bf16.mxu0 %v9434_v33 }
 0x42b   : > { %8863 = vmatmul.mubr.bf16.gmra.mrb[0].mxu1 %v12740_v55  ;;  %v9714_v55 = vmov 0  }
 0x42c   : > { %8866 = vmatprep.mubr.bf16.mxu1 %v12743_v16  ;;  %6998 = vmatprep.mubr.bf16.mxu0 %v9714_v55 }
 0x42d   : > { %6979 = vmatpush1.bf16.msra.mxu0 %v9432_v26 }
 0x42e   : > { %6980 = vmatprep.subr.bf16.mxu0 %v9437_v19 }
 0x431   : > { %6981 = vmatpush1.bf16.msra.mxu0 %v9435_v57 }
 0x433   : > { %8867 = vmatmul.mubr.bf16.gmra.mrb[4].mxu1 %v12746_v59  ;;  %v11859_v47 = vpop.f32.mrb[80].mxu0 }
 0x434   : > { %8870 = vmatprep.mubr.bf16.mxu1 %v12748_v3  ;;  %v11864_v40 = vpop.f32.mrb[81].mxu0 }
 0x435   : > { %v11866_v35 = vpop.f32.mrb[82].mxu0 }
 0x436   : > { %v11868_v34 = vpop.f32.mrb[83].mxu0 }
 0x43b   : > { %8871 = vmatmul.mubr.bf16.gmra.mrb[8].mxu1 %v12751_v8  ;;  %v11873_v62 = vpop.f32.mrb[84].mxu0 }
 0x43c   : > { %8874 = vmatprep.mubr.bf16.mxu1 %v12753_v7  ;;  %v11878_v12 = vpop.f32.mrb[85].mxu0 }
 0x43d   : > { %v11880_v51 = vpop.f32.mrb[86].mxu0 }
 0x43e   : > { %v11882_v53 = vpop.f32.mrb[87].mxu0 }
 0x443   : > { %8875 = vmatmul.mubr.bf16.gmra.mrb[12].mxu1 %v12755_v41  ;;  %v11887_v17 = vpop.f32.mrb[88].mxu0 }
 0x444   : > { %v11889_v6 = vpop.f32.mrb[89].mxu0 }
 0x445   : > { %v11891_v13 = vpop.f32.mrb[90].mxu0 }
 0x446   : > { %v11893_v49 = vpop.f32.mrb[91].mxu0 }
 0x44b   : > { %v11895_v60 = vpop.f32.mrb[92].mxu0 }
 0x44c   : > { %v11897_v14 = vpop.f32.mrb[93].mxu0 }
 0x44d   : > { %v11899_v36 = vpop.f32.mrb[94].mxu0 }
 0x44e   : > { %v11901_v44 = vpop.f32.mrb[95].mxu0 }
 0x453   : > { %v8560_v30 = vpop.f32.mrb[64].mxu0 }
 0x454   : > { %v3164_v11 = vpop.f32.mrb[65].mxu0 }
 0x455   : > { %v8561_v43 = vpop.f32.mrb[66].mxu0 }
 0x456   : > { %v3167_v45 = vpop.f32.mrb[67].mxu0 }
 0x45b   : > { %v8564_v25 = vpop.f32.mrb[68].mxu0 }
 0x45c   : > { %v11903_v31 = vpop.f32.mrb[69].mxu0 }
 0x45d   : > { %v11905_v0 = vpop.f32.mrb[70].mxu0 }
 0x45e   : > { %v11907_v50 = vpop.f32.mrb[71].mxu0 }
 0x463   : > { %v11909_v22 = vpop.f32.mrb[72].mxu0 }
 0x464   : > { %v11911_v42 = vpop.f32.mrb[73].mxu0 }
 0x465   : > { %v11913_v29 = vpop.f32.mrb[74].mxu0 }
 0x466   : > { %v11915_v1 = vpop.f32.mrb[75].mxu0 }
 0x46b   : > { %v11917_v23 = vpop.f32.mrb[76].mxu0 }
 0x46c   : > { %v11919_v37 = vpop.f32.mrb[77].mxu0 }
 0x46d   : > { %v11921_v61 = vpop.f32.mrb[78].mxu0 }
 0x46e   : > { %v11923_v4 = vpop.f32.mrb[79].mxu0 }
 0x4de   : > { %v8848_v18 = vpop.f32.mrb[16].mxu1 }
 0x4df   : > { %v11942_v20 = vadd.f32 %v8848_v18, %v8560_v30  ;;  %v6441_v16 = vpop.f32.mrb[17].mxu1 }
 0x4e0   : > { %v11944_v32 = vadd.f32 %v6441_v16, %v3164_v11  ;;  %v8849_v48 = vpop.f32.mrb[18].mxu1 }
 0x4e1   : > { %v11946_v59 = vadd.f32 %v8849_v48, %v8561_v43  ;;  %v6444_v5 = vpop.f32.mrb[19].mxu1  ;;  %v6641_v21 = vmul.f32 %v11942_v20, %v11942_v20 }
 0x4e2   : > { %v11948_v3 = vadd.f32 %v6444_v5, %v3167_v45  ;;  %v6639_v9 = vmul.f32 %v11944_v32, %v11944_v32 }
 0x4e3   : > { %v6642_v43 = vmul.f32 %v11946_v59, %v11946_v59 }
 0x4e4   : > { %v6602_v39 = vadd.f32 %v11948_v3, %v11944_v32  ;;  %v6640_v8 = vmul.f32 %v11948_v3, %v11948_v3 }
 0x4e6   : > { %v6603_v7 = vadd.f32 %v11942_v20, %v6602_v39  ;;  %v6671_v38 = vadd.f32 %v6640_v8, %v6639_v9  ;;  %v8852_v41 = vpop.f32.mrb[20].mxu1 }
 0x4e7   : > { %v11959_v30 = vadd.f32 %v8852_v41, %v8564_v25  ;;  %v6457_v11 = vpop.f32.mrb[21].mxu1 }
 0x4e8   : > { %v6672_v45 = vadd.f32 %v6671_v38, %v6641_v21  ;;  %v11964_v24 = vadd.f32 %v6457_v11, %v11903_v31  ;;  %v6604_v46 = vadd.f32 %v11946_v59, %v6603_v7  ;;  %v8853_v63 = vpop.f32.mrb[22].mxu1 }
 0x4e9   : > { %v11968_v10 = vadd.f32 %v8853_v63, %v11905_v0  ;;  %v6460_v27 = vpop.f32.mrb[23].mxu1  ;;  %v6645_v0 = vmul.f32 %v11959_v30, %v11959_v30 }
 0x4ea   : > { %v6605_v15 = vadd.f32 %v11964_v24, %v6604_v46  ;;  %v6643_v25 = vmul.f32 %v11964_v24, %v11964_v24  ;;  %v6673_v56 = vadd.f32 %v6672_v45, %v6642_v43  ;;  %v11974_v52 = vadd.f32 %v6460_v27, %v11907_v50 }
 0x4eb   : > { %v6646_v50 = vmul.f32 %v11968_v10, %v11968_v10 }
 0x4ec   : > { %v6674_v58 = vadd.f32 %v6673_v56, %v6643_v25  ;;  %v6606_v31 = vadd.f32 %v11974_v52, %v6605_v15  ;;  %v6644_v28 = vmul.f32 %v11974_v52, %v11974_v52 }
 0x4ee   : > { %v6607_v54 = vadd.f32 %v11959_v30, %v6606_v31  ;;  %v6675_v2 = vadd.f32 %v6674_v58, %v6644_v28  ;;  %v8856_v33 = vpop.f32.mrb[24].mxu1 }
 0x4ef   : > { %v11983_v26 = vadd.f32 %v8856_v33, %v11909_v22  ;;  %v6473_v19 = vpop.f32.mrb[25].mxu1 }
 0x4f0   : > { %v6676_v57 = vadd.f32 %v6675_v2, %v6645_v0  ;;  %v11988_v18 = vadd.f32 %v6473_v19, %v11911_v42  ;;  %v6608_v16 = vadd.f32 %v11968_v10, %v6607_v54  ;;  %v8857_v48 = vpop.f32.mrb[26].mxu1 }
 0x4f1   : > { %v11992_v5 = vadd.f32 %v8857_v48, %v11913_v29  ;;  %v6476_v9 = vpop.f32.mrb[27].mxu1  ;;  %v6649_v29 = vmul.f32 %v11983_v26, %v11983_v26 }
 0x4f2   : > { %v6609_v39 = vadd.f32 %v11988_v18, %v6608_v16  ;;  %v6647_v22 = vmul.f32 %v11988_v18, %v11988_v18  ;;  %v6677_v8 = vadd.f32 %v6676_v57, %v6646_v50  ;;  %v11998_v21 = vadd.f32 %v6476_v9, %v11915_v1 }
 0x4f3   : > { %v6650_v1 = vmul.f32 %v11992_v5, %v11992_v5 }
 0x4f4   : > { %v6678_v7 = vadd.f32 %v6677_v8, %v6647_v22  ;;  %v6610_v42 = vadd.f32 %v11998_v21, %v6609_v39  ;;  %v6648_v38 = vmul.f32 %v11998_v21, %v11998_v21 }
 0x4f6   : > { %v6611_v41 = vadd.f32 %v11983_v26, %v6610_v42  ;;  %v6679_v11 = vadd.f32 %v6678_v7, %v6648_v38  ;;  %v8860_v43 = vpop.f32.mrb[28].mxu1 }
 0x4f7   : > { %v12007_v45 = vadd.f32 %v8860_v43, %v11917_v23  ;;  %v6489_v46 = vpop.f32.mrb[29].mxu1 }
 0x4f8   : > { %v6680_v63 = vadd.f32 %v6679_v11, %v6649_v29  ;;  %v12012_v27 = vadd.f32 %v6489_v46, %v11919_v37  ;;  %v6612_v15 = vadd.f32 %v11992_v5, %v6611_v41  ;;  %v8861_v25 = vpop.f32.mrb[30].mxu1 }
 0x4f9   : > { %v12016_v56 = vadd.f32 %v8861_v25, %v11921_v61  ;;  %v6492_v58 = vpop.f32.mrb[31].mxu1  ;;  %v6653_v61 = vmul.f32 %v12007_v45, %v12007_v45 }
 0x4fa   : > { %v6613_v31 = vadd.f32 %v12012_v27, %v6612_v15  ;;  %v6651_v23 = vmul.f32 %v12012_v27, %v12012_v27  ;;  %v6681_v28 = vadd.f32 %v6680_v63, %v6650_v1  ;;  %v12022_v0 = vadd.f32 %v6492_v58, %v11923_v4 }
 0x4fb   : > { %v6654_v4 = vmul.f32 %v12016_v56, %v12016_v56 }
 0x4fc   : > { %v6682_v54 = vadd.f32 %v6681_v28, %v6651_v23  ;;  %v6614_v37 = vadd.f32 %v12022_v0, %v6613_v31  ;;  %v6652_v2 = vmul.f32 %v12022_v0, %v12022_v0 }
 0x4fe   : > { %v6615_v33 = vadd.f32 %v12007_v45, %v6614_v37  ;;  %v6683_v19 = vadd.f32 %v6682_v54, %v6652_v2  ;;  %v8864_v50 = vpop.f32.mrb[0].mxu1 }
 0x4ff   : > { %v12031_v57 = vadd.f32 %v8864_v50, %v11859_v47  ;;  %v6505_v16 = vpop.f32.mrb[1].mxu1 }
 0x500   : > { %v6684_v48 = vadd.f32 %v6683_v19, %v6653_v61  ;;  %v12036_v9 = vadd.f32 %v6505_v16, %v11864_v40  ;;  %v6616_v39 = vadd.f32 %v12016_v56, %v6615_v33  ;;  %v8865_v22 = vpop.f32.mrb[2].mxu1 }
 0x501   : > { %v12040_v8 = vadd.f32 %v8865_v22, %v11866_v35  ;;  %v6508_v7 = vpop.f32.mrb[3].mxu1  ;;  %v6657_v35 = vmul.f32 %v12031_v57, %v12031_v57 }
 0x502   : > { %v6617_v42 = vadd.f32 %v12036_v9, %v6616_v39  ;;  %v6655_v47 = vmul.f32 %v12036_v9, %v12036_v9  ;;  %v6685_v38 = vadd.f32 %v6684_v48, %v6654_v4  ;;  %v12046_v29 = vadd.f32 %v6508_v7, %v11868_v34 }
 0x503   : > { %v6658_v34 = vmul.f32 %v12040_v8, %v12040_v8 }
 0x504   : > { %v6686_v41 = vadd.f32 %v6685_v38, %v6655_v47  ;;  %v6618_v40 = vadd.f32 %v12046_v29, %v6617_v42  ;;  %v6656_v11 = vmul.f32 %v12046_v29, %v12046_v29 }
 0x506   : > { %v6619_v43 = vadd.f32 %v12031_v57, %v6618_v40  ;;  %v6687_v46 = vadd.f32 %v6686_v41, %v6656_v11  ;;  %v8868_v1 = vpop.f32.mrb[4].mxu1 }
 0x507   : > { %v12055_v63 = vadd.f32 %v8868_v1, %v11873_v62  ;;  %v6521_v15 = vpop.f32.mrb[5].mxu1 }
 0x508   : > { %v6688_v25 = vadd.f32 %v6687_v46, %v6657_v35  ;;  %v12060_v58 = vadd.f32 %v6521_v15, %v11878_v12  ;;  %v6620_v31 = vadd.f32 %v12040_v8, %v6619_v43  ;;  %v8869_v23 = vpop.f32.mrb[6].mxu1 }
 0x509   : > { %v12064_v28 = vadd.f32 %v8869_v23, %v11880_v51  ;;  %v6524_v54 = vpop.f32.mrb[7].mxu1  ;;  %v6661_v51 = vmul.f32 %v12055_v63, %v12055_v63 }
 0x50a   : > { %v6621_v37 = vadd.f32 %v12060_v58, %v6620_v31  ;;  %v6659_v62 = vmul.f32 %v12060_v58, %v12060_v58  ;;  %v6689_v2 = vadd.f32 %v6688_v25, %v6658_v34  ;;  %v12070_v61 = vadd.f32 %v6524_v54, %v11882_v53 }
 0x50b   : > { %v6662_v53 = vmul.f32 %v12064_v28, %v12064_v28 }
 0x50c   : > { %v6690_v33 = vadd.f32 %v6689_v2, %v6659_v62  ;;  %v6622_v12 = vadd.f32 %v12070_v61, %v6621_v37  ;;  %v6660_v19 = vmul.f32 %v12070_v61, %v12070_v61 }
 0x50e   : > { %v6623_v50 = vadd.f32 %v12055_v63, %v6622_v12  ;;  %v6691_v16 = vadd.f32 %v6690_v33, %v6660_v19  ;;  %v8872_v4 = vpop.f32.mrb[8].mxu1 }
 0x50f   : > { %v12079_v48 = vadd.f32 %v8872_v4, %v11887_v17  ;;  %v6537_v39 = vpop.f32.mrb[9].mxu1 }
 0x510   : > { %v6692_v22 = vadd.f32 %v6691_v16, %v6661_v51  ;;  %v12084_v7 = vadd.f32 %v6537_v39, %v11889_v6  ;;  %v6624_v42 = vadd.f32 %v12064_v28, %v6623_v50  ;;  %v8873_v47 = vpop.f32.mrb[10].mxu1 }
 0x511   : > { %v12088_v38 = vadd.f32 %v8873_v47, %v11891_v13  ;;  %v6540_v41 = vpop.f32.mrb[11].mxu1  ;;  %v6665_v13 = vmul.f32 %v12079_v48, %v12079_v48 }
 0x512   : > { %v6625_v40 = vadd.f32 %v12084_v7, %v6624_v42  ;;  %v6663_v17 = vmul.f32 %v12084_v7, %v12084_v7  ;;  %v6693_v11 = vadd.f32 %v6692_v22, %v6662_v53  ;;  %v12094_v35 = vadd.f32 %v6540_v41, %v11893_v49 }
 0x513   : > { %v6666_v49 = vmul.f32 %v12088_v38, %v12088_v38 }
 0x514   : > { %v6694_v43 = vadd.f32 %v6693_v11, %v6663_v17  ;;  %v6626_v6 = vadd.f32 %v12094_v35, %v6625_v40  ;;  %v6664_v46 = vmul.f32 %v12094_v35, %v12094_v35 }
 0x516   : > { %v6627_v1 = vadd.f32 %v12079_v48, %v6626_v6  ;;  %v6695_v15 = vadd.f32 %v6694_v43, %v6664_v46  ;;  %v8876_v34 = vpop.f32.mrb[12].mxu1 }
 0x517   : > { %v12103_v25 = vadd.f32 %v8876_v34, %v11895_v60  ;;  %v6553_v31 = vpop.f32.mrb[13].mxu1 }
 0x518   : > { %v6696_v23 = vadd.f32 %v6695_v15, %v6665_v13  ;;  %v12108_v54 = vadd.f32 %v6553_v31, %v11897_v14  ;;  %v6628_v37 = vadd.f32 %v12088_v38, %v6627_v1  ;;  %v8877_v62 = vpop.f32.mrb[14].mxu1 }
 0x519   : > { %v12112_v2 = vadd.f32 %v8877_v62, %v11899_v36  ;;  %v6556_v33 = vpop.f32.mrb[15].mxu1  ;;  %v6669_v36 = vmul.f32 %v12103_v25, %v12103_v25 }
 0x51a   : > { %v6629_v12 = vadd.f32 %v12108_v54, %v6628_v37  ;;  %v6667_v60 = vmul.f32 %v12108_v54, %v12108_v54  ;;  %v6697_v19 = vadd.f32 %v6696_v23, %v6666_v49  ;;  %v12118_v51 = vadd.f32 %v6556_v33, %v11901_v44 }
 0x51b   : > { %v6670_v53 = vmul.f32 %v12112_v2, %v12112_v2 }
 0x51c   : > { %v6698_v50 = vadd.f32 %v6697_v19, %v6667_v60  ;;  %v6630_v14 = vadd.f32 %v12118_v51, %v6629_v12  ;;  %v6668_v16 = vmul.f32 %v12118_v51, %v12118_v51 }
 0x51e   : > { %v6631_v4 = vadd.f32 %v12103_v25, %v6630_v14  ;;  %v6699_v39 = vadd.f32 %v6698_v50, %v6668_v16 }
 0x520   : > { %v6632_v22 = vadd.f32 %v12112_v2, %v6631_v4  ;;  %v6700_v42 = vadd.f32 %v6699_v39, %v6669_v36 }
 0x522   : > { %v6633_v44 = vrot.slane %v6632_v22, 4  ;;  %v6701_v47 = vadd.f32 %v6700_v42, %v6670_v53 }
 0x524   : > { %v6634_v41 = vadd.f32 %v6633_v44, %v6632_v22  ;;  %v6702_v40 = vrot.slane %v6701_v47, 4 }
 0x526   : > { %v6635_v17 = vrot.slane %v6634_v41, 2  ;;  %v6703_v11 = vadd.f32 %v6702_v40, %v6701_v47 }
 0x528   : > { %v6636_v43 = vadd.f32 %v6635_v17, %v6634_v41  ;;  %v6704_v6 = vrot.slane %v6703_v11, 2 }
 0x52a   : > { %v6637_v46 = vrot.slane %v6636_v43, 1  ;;  %v6705_v13 = vadd.f32 %v6704_v6, %v6703_v11 }
 0x52c   : > { %v6638_v1 = vadd.f32 %v6637_v46, %v6636_v43  ;;  %v6706_v15 = vrot.slane %v6705_v13, 1 }
 0x52e   : > { %v6707_v34 = vadd.f32 %v6706_v15, %v6705_v13  ;;  %v12129_v31 = vmul.f32 0.00390625, %v6638_v1 }
 0x530   : > { %v6709_v49 = vmul.f32 0.00390625, %v6707_v34  ;;  %v6710_v23 = vmul.f32 %v12129_v31, %v12129_v31  ;;  %v6745_v37 = vsub.f32 %v12118_v51, %v12129_v31  ;;  %v6725_v33 = vsub.f32 %v11998_v21, %v12129_v31 }
 0x531   : > { %v6727_v12 = vsub.f32 %v11992_v5, %v12129_v31  ;;  %v6728_v19 = vsub.f32 %v12012_v27, %v12129_v31  ;;  %v6729_v50 = vsub.f32 %v12022_v0, %v12129_v31  ;;  %v6730_v14 = vsub.f32 %v12007_v45, %v12129_v31 }
 0x532   : > { %v6711_v62 = vsub.f32 %v6709_v49, %v6710_v23  ;;  %v6731_v51 = vsub.f32 %v12016_v56, %v12129_v31  ;;  %v6732_v16 = vsub.f32 %v12036_v9, %v12129_v31  ;;  %v6733_v21 = vsub.f32 %v12046_v29, %v12129_v31  ;;  %v12211_v49 = vld [vmem:[%s459_s20] ss:$0 sm:$0xff] }
 0x533   : > { %v6734_v5 = vsub.f32 %v12031_v57, %v12129_v31  ;;  %v6735_v0 = vsub.f32 %v12040_v8, %v12129_v31  ;;  %v6736_v45 = vsub.f32 %v12060_v58, %v12129_v31  ;;  %v6737_v56 = vsub.f32 %v12070_v61, %v12129_v31 }
 0x534   : > { %v6712_v60 = vmax.f32 %v6711_v62, 0.0  ;;  %v6738_v9 = vsub.f32 %v12055_v63, %v12129_v31  ;;  %v6739_v29 = vsub.f32 %v12064_v28, %v12129_v31  ;;  %v6740_v36 = vsub.f32 %v12084_v7, %v12129_v31  ;;  %v6600_v7 = vld [vmem:[%s456_s27] sm:$0x1] }
 0x535   : > { %v6741_v57 = vsub.f32 %v12094_v35, %v12129_v31  ;;  %v6742_v8 = vsub.f32 %v12079_v48, %v12129_v31  ;;  %v6743_v58 = vsub.f32 %v12088_v38, %v12129_v31  ;;  %v6744_v61 = vsub.f32 %v12108_v54, %v12129_v31 }
 0x536   : > { %v6713_v27 = vadd.f32 1e-05, %v6712_v60  ;;  %v6746_v63 = vsub.f32 %v12103_v25, %v12129_v31  ;;  %v6747_v28 = vsub.f32 %v12112_v2, %v12129_v31  ;;  %v6716_v48 = vsub.f32 %v11944_v32, %v12129_v31  ;;  %v12756_v25 = vld [vmem:[#allocation19_spill] sm:$0xff] }
 0x537   : > { %v6717_v38 = vsub.f32 %v11948_v3, %v12129_v31  ;;  %v6718_v54 = vsub.f32 %v11942_v20, %v12129_v31  ;;  %v12757_v39 = vsub.s32 0, %v12756_v25  ;;  %v6719_v2 = vsub.f32 %v11946_v59, %v12129_v31 }
 0x538   : > { %9438 = vrsqrt.f32 %v6713_v27  ;;  %v6720_v22 = vsub.f32 %v11964_v24, %v12129_v31  ;;  %v6721_v42 = vsub.f32 %v11974_v52, %v12129_v31  ;;  %v6722_v32 = vsub.f32 %v11959_v30, %v12129_v31 }
 0x539   : > { %v6723_v3 = vsub.f32 %v11968_v10, %v12129_v31  ;;  %v6724_v20 = vsub.f32 %v11988_v18, %v12129_v31  ;;  %v6726_v44 = vsub.f32 %v11983_v26, %v12129_v31 }
 0x542   : > { %v9439_v35 = vpop.eup %9438 }
 0x543   : > { %v6715_v4 = vmul.f32 %v9439_v35, %v6600_v7 }
 0x545   : > { %v6751_v53 = vrot.slane %v6715_v4, %v12757_v39 }
 0x547   : > { %v12204_v47 = vmul.f32 %v6751_v53, %v6745_v37  ;;  %v6752_v59 = vmul.f32 %v6751_v53, %v6716_v48  ;;  %v6753_v41 = vmul.f32 %v6751_v53, %v6717_v38  ;;  %v6754_v24 = vmul.f32 %v6751_v53, %v6718_v54 }
 0x548   : > { %v6755_v40 = vmul.f32 %v6751_v53, %v6719_v2  ;;  %v6756_v52 = vmul.f32 %v6751_v53, %v6720_v22  ;;  %v6757_v17 = vmul.f32 %v6751_v53, %v6721_v42  ;;  %v6758_v11 = vmul.f32 %v6751_v53, %v6722_v32 }
 0x549   : > { %v6759_v30 = vmul.f32 %v6751_v53, %v6723_v3  ;;  %v6760_v43 = vmul.f32 %v6751_v53, %v6724_v20  ;;  %v6761_v6 = vmul.f32 %v6751_v53, %v6725_v33  ;;  %v6762_v10 = vmul.f32 %v6751_v53, %v6726_v44 }
 0x54a   : > { %v6763_v46 = vmul.f32 %v6751_v53, %v6727_v12  ;;  %v6764_v13 = vmul.f32 %v6751_v53, %v6728_v19  ;;  %v6765_v18 = vmul.f32 %v6751_v53, %v6729_v50  ;;  %v6766_v1 = vmul.f32 %v6751_v53, %v6730_v14 }
 0x54b   : > { %v6767_v15 = vmul.f32 %v6751_v53, %v6731_v51  ;;  %v6768_v26 = vmul.f32 %v6751_v53, %v6732_v16  ;;  %v6769_v34 = vmul.f32 %v6751_v53, %v6733_v21  ;;  %v6770_v31 = vmul.f32 %v6751_v53, %v6734_v5 }
 0x54c   : > { %v6771_v23 = vmul.f32 %v6751_v53, %v6735_v0  ;;  %v6772_v37 = vmul.f32 %v6751_v53, %v6736_v45  ;;  %v6773_v62 = vmul.f32 %v6751_v53, %v6737_v56  ;;  %v6774_v60 = vmul.f32 %v6751_v53, %v6738_v9 }
 0x54d   : > { %v6775_v33 = vmul.f32 %v6751_v53, %v6739_v29  ;;  %v12213_v27 = vmul.f32 %v6751_v53, %v6740_v36  ;;  %v12215_v12 = vmul.f32 %v6751_v53, %v6741_v57  ;;  %v12217_v19 = vmul.f32 %v6751_v53, %v6742_v8 }
 0x54e   : > { %v12219_v50 = vmul.f32 %v6751_v53, %v6743_v58  ;;  %v12221_v14 = vmul.f32 %v6751_v53, %v6744_v61  ;;  %v12223_v51 = vmul.f32 %v6751_v53, %v6746_v63  ;;  %v12225_v16 = vmul.f32 %v6751_v53, %v6747_v28 }
 0x54f   : > { %v6790_v21 = vadd.f32 %v12211_v49, %v6752_v59  ;;  %v6791_v5 = vadd.f32 %v12211_v49, %v6753_v41  ;;  %v6792_v0 = vadd.f32 %v12211_v49, %v6754_v24  ;;  %v6793_v45 = vadd.f32 %v12211_v49, %v6755_v40 }
 0x550   : > { %v6794_v56 = vadd.f32 %v12211_v49, %v6756_v52  ;;  %v6795_v9 = vadd.f32 %v12211_v49, %v6757_v17  ;;  %v6796_v29 = vadd.f32 %v12211_v49, %v6758_v11  ;;  %v6797_v36 = vadd.f32 %v12211_v49, %v6759_v30 }
 0x551   : > { %v6822_v57 = vmax.f32 %v6790_v21, 0.0  ;;  %v6823_v8 = vmax.f32 %v6791_v5, 0.0  ;;  %v6824_v58 = vmax.f32 %v6792_v0, 0.0  ;;  %v6825_v61 = vmax.f32 %v6793_v45, 0.0 }
 0x552   : > { %v6826_v63 = vmax.f32 %v6794_v56, 0.0  ;;  %v6827_v28 = vmax.f32 %v6795_v9, 0.0  ;;  %v6828_v7 = vmax.f32 %v6796_v29, 0.0  ;;  %v6829_v35 = vmax.f32 %v6797_v36, 0.0 }
 0x553   : > { %v6854_v4 = vpack.c.bf16 %v6823_v8, %v6822_v57  ;;  %v6855_v48 = vpack.c.bf16 %v6825_v61, %v6824_v58  ;;  %v6798_v38 = vadd.f32 %v12211_v49, %v6760_v43  ;;  %v6799_v54 = vadd.f32 %v12211_v49, %v6761_v6 }
 0x554   : > { %v12237_v25 = vpack.c.bf16 %v6827_v28, %v6826_v63  ;;  %v12239_v39 = vpack.c.bf16 %v6829_v35, %v6828_v7  ;;  %v6800_v53 = vadd.f32 %v12211_v49, %v6762_v10  ;;  %v6801_v2 = vadd.f32 %v12211_v49, %v6763_v46 }
 0x555   : > { %6999 = vmatmul.mubr.bf16.vlgmr.msra.gmra.mrb[96].mxu0 %v6854_v4  ;;  %v6830_v22 = vmax.f32 %v6798_v38, 0.0  ;;  %v6831_v42 = vmax.f32 %v6799_v54, 0.0  ;;  %v6802_v32 = vadd.f32 %v12211_v49, %v6764_v13  ;;  %v6803_v3 = vadd.f32 %v12211_v49, %v6765_v18 }
 0x556   : > { %7008 = vmatprep.mubr.bf16.mxu0 %v9714_v55  ;;  %v6832_v20 = vmax.f32 %v6800_v53, 0.0  ;;  %v6833_v44 = vmax.f32 %v6801_v2, 0.0  ;;  %v6804_v59 = vadd.f32 %v12211_v49, %v6766_v1  ;;  %v6805_v41 = vadd.f32 %v12211_v49, %v6767_v15 }
 0x557   : > { %v6858_v24 = vpack.c.bf16 %v6831_v42, %v6830_v22  ;;  %v6834_v40 = vmax.f32 %v6802_v32, 0.0  ;;  %v6835_v52 = vmax.f32 %v6803_v3, 0.0  ;;  %v6806_v17 = vadd.f32 %v12211_v49, %v6768_v26 }
 0x558   : > { %v6859_v11 = vpack.c.bf16 %v6833_v44, %v6832_v20  ;;  %v6836_v30 = vmax.f32 %v6804_v59, 0.0  ;;  %v6837_v43 = vmax.f32 %v6805_v41, 0.0  ;;  %v6807_v6 = vadd.f32 %v12211_v49, %v6769_v34 }
 0x559   : > { %v6860_v10 = vpack.c.bf16 %v6835_v52, %v6834_v40  ;;  %v6838_v46 = vmax.f32 %v6806_v17, 0.0  ;;  %v6808_v13 = vadd.f32 %v12211_v49, %v6770_v31  ;;  %v6809_v18 = vadd.f32 %v12211_v49, %v6771_v23 }
 0x55a   : > { %v6861_v21 = vpack.c.bf16 %v6837_v43, %v6836_v30  ;;  %v6839_v1 = vmax.f32 %v6807_v6, 0.0  ;;  %v6810_v15 = vadd.f32 %v12211_v49, %v6772_v37  ;;  %v6811_v5 = vadd.f32 %v12211_v49, %v6773_v62 }
 0x55b   : > { %v6840_v0 = vmax.f32 %v6808_v13, 0.0  ;;  %v6841_v45 = vmax.f32 %v6809_v18, 0.0  ;;  %v6812_v26 = vadd.f32 %v12211_v49, %v6774_v60  ;;  %v6813_v56 = vadd.f32 %v12211_v49, %v6775_v33 }
 0x55c   : > { %v6862_v9 = vpack.c.bf16 %v6839_v1, %v6838_v46  ;;  %v6842_v34 = vmax.f32 %v6810_v15, 0.0  ;;  %v6843_v29 = vmax.f32 %v6811_v5, 0.0  ;;  %v6814_v31 = vadd.f32 %v12211_v49, %v12213_v27 }
 0x55d   : > { %7009 = vmatmul.mubr.bf16.gmra.mrb[100].mxu0 %v6855_v48  ;;  %v6863_v23 = vpack.c.bf16 %v6841_v45, %v6840_v0  ;;  %v6844_v36 = vmax.f32 %v6812_v26, 0.0  ;;  %v6845_v57 = vmax.f32 %v6813_v56, 0.0  ;;  %v6815_v37 = vadd.f32 %v12211_v49, %v12215_v12 }
 0x55e   : > { %7018 = vmatprep.mubr.bf16.mxu0 %v9714_v55  ;;  %v6864_v62 = vpack.c.bf16 %v6843_v29, %v6842_v34  ;;  %v6846_v8 = vmax.f32 %v6814_v31, 0.0  ;;  %v6816_v60 = vadd.f32 %v12211_v49, %v12217_v19  ;;  %v6817_v33 = vadd.f32 %v12211_v49, %v12219_v50 }
 0x55f   : > { %v6865_v58 = vpack.c.bf16 %v6845_v57, %v6844_v36  ;;  %v6847_v61 = vmax.f32 %v6815_v37, 0.0  ;;  %v6818_v27 = vadd.f32 %v12211_v49, %v12221_v14  ;;  %v6819_v63 = vadd.f32 %v12211_v49, %v12204_v47 }
 0x560   : > { %v6848_v28 = vmax.f32 %v6816_v60, 0.0  ;;  %v6849_v12 = vmax.f32 %v6817_v33, 0.0  ;;  %v6820_v7 = vadd.f32 %v12211_v49, %v12223_v51  ;;  %v6821_v35 = vadd.f32 %v12211_v49, %v12225_v16 }
 0x561   : > { %v6866_v19 = vpack.c.bf16 %v6847_v61, %v6846_v8  ;;  %v6850_v4 = vmax.f32 %v6818_v27, 0.0  ;;  %v6851_v48 = vmax.f32 %v6819_v63, 0.0 }
 0x562   : > { %v6867_v50 = vpack.c.bf16 %v6849_v12, %v6848_v28  ;;  %v6852_v38 = vmax.f32 %v6820_v7, 0.0  ;;  %v6853_v54 = vmax.f32 %v6821_v35, 0.0 }
 0x563   : > { %v6868_v53 = vpack.c.bf16 %v6851_v48, %v6850_v4 }
 0x564   : > { %v6869_v2 = vpack.c.bf16 %v6853_v54, %v6852_v38 }
 0x565   : > { %7019 = vmatmul.mubr.bf16.gmra.mrb[104].mxu0 %v12237_v25 }
 0x566   : > { %7028 = vmatprep.mubr.bf16.mxu0 %v9714_v55 }
 0x56d   : > { %7029 = vmatmul.mubr.bf16.gmra.mrb[108].mxu0 %v12239_v39 }
 0x56e   : > { %7038 = vmatprep.mubr.bf16.mxu0 %v9714_v55 }
 0x575   : > { %7039 = vmatmul.mubr.bf16.gmra.mrb[112].mxu0 %v6858_v24 }
 0x576   : > { %7048 = vmatprep.mubr.bf16.mxu0 %v9714_v55 }
 0x57d   : > { %7049 = vmatmul.mubr.bf16.gmra.mrb[116].mxu0 %v6859_v11 }
 0x57e   : > { %7058 = vmatprep.mubr.bf16.mxu0 %v9714_v55 }
 0x585   : > { %7059 = vmatmul.mubr.bf16.gmra.mrb[120].mxu0 %v6860_v10 }
 0x586   : > { %7068 = vmatprep.mubr.bf16.mxu0 %v9714_v55 }
 0x58d   : > { %7069 = vmatmul.mubr.bf16.gmra.mrb[124].mxu0 %v6861_v21 }
 0x58e   : > { %7078 = vmatprep.mubr.bf16.mxu0 %v9714_v55 }
 0x595   : > { %7079 = vmatmul.mubr.bf16.gmra.mrb[128].mxu0 %v6862_v9 }
 0x596   : > { %7088 = vmatprep.mubr.bf16.mxu0 %v9714_v55 }
 0x59d   : > { %7089 = vmatmul.mubr.bf16.gmra.mrb[132].mxu0 %v6863_v23 }
 0x59e   : > { %7098 = vmatprep.mubr.bf16.mxu0 %v9714_v55 }
 0x5a5   : > { %7099 = vmatmul.mubr.bf16.gmra.mrb[136].mxu0 %v6864_v62 }
 0x5a6   : > { %7108 = vmatprep.mubr.bf16.mxu0 %v9714_v55 }
 0x5ad   : > { %7109 = vmatmul.mubr.bf16.gmra.mrb[140].mxu0 %v6865_v58 }
 0x5ae   : > { %7118 = vmatprep.mubr.bf16.mxu0 %v9714_v55 }
 0x5b5   : > { %7119 = vmatmul.mubr.bf16.gmra.mrb[144].mxu0 %v6866_v19 }
 0x5b6   : > { %7128 = vmatprep.mubr.bf16.mxu0 %v9714_v55 }
 0x5bd   : > { %7129 = vmatmul.mubr.bf16.gmra.mrb[148].mxu0 %v6867_v50 }
 0x5be   : > { %7138 = vmatprep.mubr.bf16.mxu0 %v9714_v55 }
 0x5c5   : > { %7139 = vmatmul.mubr.bf16.gmra.mrb[152].mxu0 %v6868_v53 }
 0x5c6   : > { %7148 = vmatprep.mubr.bf16.mxu0 %v9714_v55 }
 0x5cd   : > { %7149 = vmatmul.mubr.bf16.gmra.mrb[156].mxu0 %v6869_v2 }
 0x628   : > { %v12288_v47 = vpop.f32.mrb[96].mxu0 }
 0x629   : > { %v12290_v49 = vpop.f32.mrb[97].mxu0  ;;  %7162 = vst [vmem:[#allocation11] sm:$0xff] (!%p12773_p4), %v12288_v47 }
 0x62a   : > { %v12292_v14 = vpop.f32.mrb[98].mxu0  ;;  %7163 = vst [vmem:[#allocation11 + $0x8] sm:$0xff] (!%p12773_p4), %v12290_v49 }
 0x62b   : > { %v12294_v51 = vpop.f32.mrb[99].mxu0  ;;  %7164 = vst [vmem:[#allocation11 + $0x10] sm:$0xff] (!%p12773_p4), %v12292_v14 }
 0x62c   : > { %7165 = vst [vmem:[#allocation11 + $0x18] sm:$0xff] (!%p12773_p4), %v12294_v51 }
 0x630   : > { %v12296_v16 = vpop.f32.mrb[100].mxu0 }
 0x631   : > { %v12298_v25 = vpop.f32.mrb[101].mxu0  ;;  %7166 = vst [vmem:[#allocation11 + $0x20] sm:$0xff] (!%p12773_p4), %v12296_v16 }
 0x632   : > { %v12300_v39 = vpop.f32.mrb[102].mxu0  ;;  %7167 = vst [vmem:[#allocation11 + $0x28] sm:$0xff] (!%p12773_p4), %v12298_v25 }
 0x633   : > { %v12302_v22 = vpop.f32.mrb[103].mxu0  ;;  %7168 = vst [vmem:[#allocation11 + $0x30] sm:$0xff] (!%p12773_p4), %v12300_v39 }
 0x634   : > { %7169 = vst [vmem:[#allocation11 + $0x38] sm:$0xff] (!%p12773_p4), %v12302_v22 }
 0x638   : > { %v12304_v42 = vpop.f32.mrb[104].mxu0 }
 0x639   : > { %v12306_v55 = vpop.f32.mrb[105].mxu0  ;;  %7170 = vst [vmem:[#allocation11 + $0x40] sm:$0xff] (!%p12773_p4), %v12304_v42 }
 0x63a   : > { %v12308_v32 = vpop.f32.mrb[106].mxu0  ;;  %7171 = vst [vmem:[#allocation11 + $0x48] sm:$0xff] (!%p12773_p4), %v12306_v55 }
 0x63b   : > { %v12310_v3 = vpop.f32.mrb[107].mxu0  ;;  %7172 = vst [vmem:[#allocation11 + $0x50] sm:$0xff] (!%p12773_p4), %v12308_v32 }
 0x63c   : > { %7173 = vst [vmem:[#allocation11 + $0x58] sm:$0xff] (!%p12773_p4), %v12310_v3 }
 0x640   : > { %v12312_v20 = vpop.f32.mrb[108].mxu0 }
 0x641   : > { %v12314_v44 = vpop.f32.mrb[109].mxu0  ;;  %7174 = vst [vmem:[#allocation11 + $0x60] sm:$0xff] (!%p12773_p4), %v12312_v20 }
 0x642   : > { %v12316_v59 = vpop.f32.mrb[110].mxu0  ;;  %7175 = vst [vmem:[#allocation11 + $0x68] sm:$0xff] (!%p12773_p4), %v12314_v44 }
 0x643   : > { %v12318_v41 = vpop.f32.mrb[111].mxu0  ;;  %7176 = vst [vmem:[#allocation11 + $0x70] sm:$0xff] (!%p12773_p4), %v12316_v59 }
 0x644   : > { %7177 = vst [vmem:[#allocation11 + $0x78] sm:$0xff] (!%p12773_p4), %v12318_v41 }
 0x648   : > { %v12320_v24 = vpop.f32.mrb[112].mxu0 }
 0x649   : > { %v12322_v40 = vpop.f32.mrb[113].mxu0  ;;  %7178 = vst [vmem:[#allocation11 + $0x80] sm:$0xff] (!%p12773_p4), %v12320_v24 }
 0x64a   : > { %v12324_v52 = vpop.f32.mrb[114].mxu0  ;;  %7179 = vst [vmem:[#allocation11 + $0x88] sm:$0xff] (!%p12773_p4), %v12322_v40 }
 0x64b   : > { %v12326_v17 = vpop.f32.mrb[115].mxu0  ;;  %7180 = vst [vmem:[#allocation11 + $0x90] sm:$0xff] (!%p12773_p4), %v12324_v52 }
 0x64c   : > { %7181 = vst [vmem:[#allocation11 + $0x98] sm:$0xff] (!%p12773_p4), %v12326_v17 }
 0x650   : > { %v12328_v11 = vpop.f32.mrb[116].mxu0 }
 0x651   : > { %v12330_v30 = vpop.f32.mrb[117].mxu0  ;;  %7182 = vst [vmem:[#allocation11 + $0xa0] sm:$0xff] (!%p12773_p4), %v12328_v11 }
 0x652   : > { %v12332_v43 = vpop.f32.mrb[118].mxu0  ;;  %7183 = vst [vmem:[#allocation11 + $0xa8] sm:$0xff] (!%p12773_p4), %v12330_v30 }
 0x653   : > { %v12334_v6 = vpop.f32.mrb[119].mxu0  ;;  %7184 = vst [vmem:[#allocation11 + $0xb0] sm:$0xff] (!%p12773_p4), %v12332_v43 }
 0x654   : > { %7185 = vst [vmem:[#allocation11 + $0xb8] sm:$0xff] (!%p12773_p4), %v12334_v6 }
 0x658   : > { %v12336_v10 = vpop.f32.mrb[120].mxu0 }
 0x659   : > { %v12338_v46 = vpop.f32.mrb[121].mxu0  ;;  %7186 = vst [vmem:[#allocation11 + $0xc0] sm:$0xff] (!%p12773_p4), %v12336_v10 }
 0x65a   : > { %v12340_v13 = vpop.f32.mrb[122].mxu0  ;;  %7187 = vst [vmem:[#allocation11 + $0xc8] sm:$0xff] (!%p12773_p4), %v12338_v46 }
 0x65b   : > { %v12342_v18 = vpop.f32.mrb[123].mxu0  ;;  %7188 = vst [vmem:[#allocation11 + $0xd0] sm:$0xff] (!%p12773_p4), %v12340_v13 }
 0x65c   : > { %7189 = vst [vmem:[#allocation11 + $0xd8] sm:$0xff] (!%p12773_p4), %v12342_v18 }
 0x660   : > { %v12344_v21 = vpop.f32.mrb[124].mxu0 }
 0x661   : > { %v12346_v1 = vpop.f32.mrb[125].mxu0  ;;  %7190 = vst [vmem:[#allocation11 + $0xe0] sm:$0xff] (!%p12773_p4), %v12344_v21 }
 0x662   : > { %v12348_v15 = vpop.f32.mrb[126].mxu0  ;;  %7191 = vst [vmem:[#allocation11 + $0xe8] sm:$0xff] (!%p12773_p4), %v12346_v1 }
 0x663   : > { %v12350_v5 = vpop.f32.mrb[127].mxu0  ;;  %7192 = vst [vmem:[#allocation11 + $0xf0] sm:$0xff] (!%p12773_p4), %v12348_v15 }
 0x664   : > { %7193 = vst [vmem:[#allocation11 + $0xf8] sm:$0xff] (!%p12773_p4), %v12350_v5 }
 0x668   : > { %v12352_v0 = vpop.f32.mrb[128].mxu0 }
 0x669   : > { %v12354_v45 = vpop.f32.mrb[129].mxu0  ;;  %7194 = vst [vmem:[#allocation11 + $0x100] sm:$0xff] (!%p12773_p4), %v12352_v0 }
 0x66a   : > { %v12356_v26 = vpop.f32.mrb[130].mxu0  ;;  %7195 = vst [vmem:[#allocation11 + $0x108] sm:$0xff] (!%p12773_p4), %v12354_v45 }
 0x66b   : > { %v12358_v56 = vpop.f32.mrb[131].mxu0  ;;  %7196 = vst [vmem:[#allocation11 + $0x110] sm:$0xff] (!%p12773_p4), %v12356_v26 }
 0x66c   : > { %7197 = vst [vmem:[#allocation11 + $0x118] sm:$0xff] (!%p12773_p4), %v12358_v56 }
 0x670   : > { %v12360_v9 = vpop.f32.mrb[132].mxu0 }
 0x671   : > { %v12362_v34 = vpop.f32.mrb[133].mxu0  ;;  %7198 = vst [vmem:[#allocation11 + $0x120] sm:$0xff] (!%p12773_p4), %v12360_v9 }
 0x672   : > { %v12364_v29 = vpop.f32.mrb[134].mxu0  ;;  %7199 = vst [vmem:[#allocation11 + $0x128] sm:$0xff] (!%p12773_p4), %v12362_v34 }
 0x673   : > { %v12366_v31 = vpop.f32.mrb[135].mxu0  ;;  %7200 = vst [vmem:[#allocation11 + $0x130] sm:$0xff] (!%p12773_p4), %v12364_v29 }
 0x674   : > { %7201 = vst [vmem:[#allocation11 + $0x138] sm:$0xff] (!%p12773_p4), %v12366_v31 }
 0x678   : > { %v12368_v23 = vpop.f32.mrb[136].mxu0 }
 0x679   : > { %v12370_v36 = vpop.f32.mrb[137].mxu0  ;;  %7202 = vst [vmem:[#allocation11 + $0x140] sm:$0xff] (!%p12773_p4), %v12368_v23 }
 0x67a   : > { %v12372_v57 = vpop.f32.mrb[138].mxu0  ;;  %7203 = vst [vmem:[#allocation11 + $0x148] sm:$0xff] (!%p12773_p4), %v12370_v36 }
 0x67b   : > { %v12374_v37 = vpop.f32.mrb[139].mxu0  ;;  %7204 = vst [vmem:[#allocation11 + $0x150] sm:$0xff] (!%p12773_p4), %v12372_v57 }
 0x67c   : > { %7205 = vst [vmem:[#allocation11 + $0x158] sm:$0xff] (!%p12773_p4), %v12374_v37 }
 0x680   : > { %v12376_v62 = vpop.f32.mrb[140].mxu0 }
 0x681   : > { %v12378_v8 = vpop.f32.mrb[141].mxu0  ;;  %7206 = vst [vmem:[#allocation11 + $0x160] sm:$0xff] (!%p12773_p4), %v12376_v62 }
 0x682   : > { %v12380_v60 = vpop.f32.mrb[142].mxu0  ;;  %7207 = vst [vmem:[#allocation11 + $0x168] sm:$0xff] (!%p12773_p4), %v12378_v8 }
 0x683   : > { %v12382_v33 = vpop.f32.mrb[143].mxu0  ;;  %7208 = vst [vmem:[#allocation11 + $0x170] sm:$0xff] (!%p12773_p4), %v12380_v60 }
 0x684   : > { %7209 = vst [vmem:[#allocation11 + $0x178] sm:$0xff] (!%p12773_p4), %v12382_v33 }
 0x688   : > { %v12384_v58 = vpop.f32.mrb[144].mxu0 }
 0x689   : > { %v12386_v61 = vpop.f32.mrb[145].mxu0  ;;  %7210 = vst [vmem:[#allocation11 + $0x180] sm:$0xff] (!%p12773_p4), %v12384_v58 }
 0x68a   : > { %12758 = vst [vmem:[#allocation20_spill] sm:$0xff] %v12386_v61  ;;  %v12388_v27 = vpop.f32.mrb[146].mxu0  ;;  %7211 = vst [vmem:[#allocation11 + $0x188] sm:$0xff] (!%p12773_p4), %v12386_v61 }
 0x68b   : > { %12759 = vst [vmem:[#allocation21_spill] sm:$0xff] %v12388_v27  ;;  %v12390_v63 = vpop.f32.mrb[147].mxu0  ;;  %7212 = vst [vmem:[#allocation11 + $0x190] sm:$0xff] (!%p12773_p4), %v12388_v27 }
 0x68c   : > { %12760 = vst [vmem:[#allocation23_spill] sm:$0xff] %v12390_v63  ;;  %7213 = vst [vmem:[#allocation11 + $0x198] sm:$0xff] (!%p12773_p4), %v12390_v63 }
 0x690   : > { %v12392_v28 = vpop.f32.mrb[148].mxu0 }
 0x691   : > { %12761 = vst [vmem:[#allocation22_spill] sm:$0xff] %v12392_v28  ;;  %v12394_v12 = vpop.f32.mrb[149].mxu0  ;;  %7214 = vst [vmem:[#allocation11 + $0x1a0] sm:$0xff] (!%p12773_p4), %v12392_v28 }
 0x692   : > { %12762 = vst [vmem:[#allocation24_spill] sm:$0xff] %v12394_v12  ;;  %v12396_v7 = vpop.f32.mrb[150].mxu0  ;;  %7215 = vst [vmem:[#allocation11 + $0x1a8] sm:$0xff] (!%p12773_p4), %v12394_v12 }
 0x693   : > { %12763 = vst [vmem:[#allocation25_spill] sm:$0xff] %v12396_v7  ;;  %v12398_v35 = vpop.f32.mrb[151].mxu0  ;;  %7216 = vst [vmem:[#allocation11 + $0x1b0] sm:$0xff] (!%p12773_p4), %v12396_v7 }
 0x694   : > { %12764 = vst [vmem:[#allocation27_spill] sm:$0xff] %v12398_v35  ;;  %7217 = vst [vmem:[#allocation11 + $0x1b8] sm:$0xff] (!%p12773_p4), %v12398_v35 }
 0x698   : > { %v12400_v19 = vpop.f32.mrb[152].mxu0 }
 0x699   : > { %12765 = vst [vmem:[#allocation26_spill] sm:$0xff] %v12400_v19  ;;  %v12402_v4 = vpop.f32.mrb[153].mxu0  ;;  %7218 = vst [vmem:[#allocation11 + $0x1c0] sm:$0xff] (!%p12773_p4), %v12400_v19 }
 0x69a   : > { %12766 = vst [vmem:[#allocation28_spill] sm:$0xff] %v12402_v4  ;;  %v12404_v48 = vpop.f32.mrb[154].mxu0  ;;  %7219 = vst [vmem:[#allocation11 + $0x1c8] sm:$0xff] (!%p12773_p4), %v12402_v4 }
 0x69b   : > { %12767 = vst [vmem:[#allocation29_spill] sm:$0xff] %v12404_v48  ;;  %v12406_v50 = vpop.f32.mrb[155].mxu0  ;;  %7220 = vst [vmem:[#allocation11 + $0x1d0] sm:$0xff] (!%p12773_p4), %v12404_v48 }
 0x69c   : > { %12768 = vst [vmem:[#allocation31_spill] sm:$0xff] %v12406_v50  ;;  %7221 = vst [vmem:[#allocation11 + $0x1d8] sm:$0xff] (!%p12773_p4), %v12406_v50 }
 0x69e   : > { %7161 = sbr.rel (%p12773_p4) target bundleno = 1701 (0x6a5), region = 76 }
 0x6a0   : > { %v12408_v38 = vpop.f32.mrb[156].mxu0 }
 0x6a1   : > { %12769 = vst [vmem:[#allocation30_spill] sm:$0xff] %v12408_v38  ;;  %v12410_v54 = vpop.f32.mrb[157].mxu0  ;;  %7222 = vst [vmem:[#allocation11 + $0x1e0] sm:$0xff] (!%p12773_p4), %v12408_v38 }
 0x6a2   : > { %12770 = vst [vmem:[#allocation32_spill] sm:$0xff] %v12410_v54  ;;  %v12412_v53 = vpop.f32.mrb[158].mxu0  ;;  %7223 = vst [vmem:[#allocation11 + $0x1e8] sm:$0xff] (!%p12773_p4), %v12410_v54 }
 0x6a3   : > { %12771 = vst [vmem:[#allocation33_spill] sm:$0xff] %v12412_v53  ;;  %v12414_v2 = vpop.f32.mrb[159].mxu0  ;;  %7224 = vst [vmem:[#allocation11 + $0x1f0] sm:$0xff] (!%p12773_p4), %v12412_v53 }
 0x6a4   : > { %12772 = vst [vmem:[#allocation35_spill] sm:$0xff] %v12414_v2  ;;  %7225 = vst [vmem:[#allocation11 + $0x1f8] sm:$0xff] (!%p12773_p4), %v12414_v2 }
 0x6a5 PF: > { %p8079_p5 = scmp.le.s32.totalorder %s9849_s16, 0 }
 0x6a6   : > { %v7230_v35 = vld [vmem:[#allocation11] sm:$0xff] (!%p8079_p5)  ;;  %v7231_v19 = vld [vmem:[#allocation11 + $0x8] sm:$0xff] (!%p8079_p5)  ;;  %v7232_v7 = vld [vmem:[#allocation11 + $0x10] sm:$0xff] (!%p8079_p5) }
 0x6a7   : > { %7229 = sbr.rel (%p8079_p5) target bundleno = 1741 (0x6cd), region = 80  ;;  %v7294_v4 = vadd.f32 (!%p8079_p5), %v7230_v35, %v12288_v47  ;;  %v7295_v48 = vadd.f32 (!%p8079_p5), %v7231_v19, %v12290_v49  ;;  %v7296_v50 = vadd.f32 (!%p8079_p5), %v7232_v7, %v12292_v14  ;;  %v7233_v38 = vld [vmem:[#allocation11 + $0x18] sm:$0xff] (!%p8079_p5)  ;;  %v7234_v12 = vld [vmem:[#allocation11 + $0x20] sm:$0xff] (!%p8079_p5)  ;;  %v7235_v54 = vld [vmem:[#allocation11 + $0x28] sm:$0xff] (!%p8079_p5) }
 0x6a8   : > { %v7297_v53 = vadd.f32 (!%p8079_p5), %v7233_v38, %v12294_v51  ;;  %v7298_v2 = vadd.f32 (!%p8079_p5), %v7234_v12, %v12296_v16  ;;  %v7299_v28 = vadd.f32 (!%p8079_p5), %v7235_v54, %v12298_v25  ;;  %v7236_v63 = vld [vmem:[#allocation11 + $0x30] sm:$0xff] (!%p8079_p5)  ;;  %v7237_v27 = vld [vmem:[#allocation11 + $0x38] sm:$0xff] (!%p8079_p5)  ;;  %v7238_v61 = vld [vmem:[#allocation11 + $0x40] sm:$0xff] (!%p8079_p5) }
 0x6a9   : > { %7358 = vst [vmem:[#allocation11] sm:$0xff] (!%p8079_p5), %v7294_v4  ;;  %7359 = vst [vmem:[#allocation11 + $0x8] sm:$0xff] (!%p8079_p5), %v7295_v48  ;;  %v7300_v47 = vadd.f32 (!%p8079_p5), %v7236_v63, %v12300_v39  ;;  %v7301_v49 = vadd.f32 (!%p8079_p5), %v7237_v27, %v12302_v22  ;;  %v7302_v14 = vadd.f32 (!%p8079_p5), %v7238_v61, %v12304_v42  ;;  %v7239_v7 = vld [vmem:[#allocation11 + $0x48] sm:$0xff] (!%p8079_p5)  ;;  %v7240_v35 = vld [vmem:[#allocation11 + $0x50] sm:$0xff] (!%p8079_p5) }
 0x6aa   : > { %7360 = vst [vmem:[#allocation11 + $0x10] sm:$0xff] (!%p8079_p5), %v7296_v50  ;;  %v7241_v19 = vld [vmem:[#allocation11 + $0x58] sm:$0xff] (!%p8079_p5)  ;;  %7361 = vst [vmem:[#allocation11 + $0x18] sm:$0xff] (!%p8079_p5), %v7297_v53  ;;  %v7303_v51 = vadd.f32 (!%p8079_p5), %v7239_v7, %v12306_v55  ;;  %v7304_v16 = vadd.f32 (!%p8079_p5), %v7240_v35, %v12308_v32  ;;  %v7242_v12 = vld [vmem:[#allocation11 + $0x60] sm:$0xff] (!%p8079_p5) }
 0x6ab   : > { %7362 = vst [vmem:[#allocation11 + $0x20] sm:$0xff] (!%p8079_p5), %v7298_v2  ;;  %7363 = vst [vmem:[#allocation11 + $0x28] sm:$0xff] (!%p8079_p5), %v7299_v28  ;;  %v7305_v25 = vadd.f32 (!%p8079_p5), %v7241_v19, %v12310_v3  ;;  %v7243_v4 = vld [vmem:[#allocation11 + $0x68] sm:$0xff] (!%p8079_p5)  ;;  %v7244_v48 = vld [vmem:[#allocation11 + $0x70] sm:$0xff] (!%p8079_p5)  ;;  %v7306_v39 = vadd.f32 (!%p8079_p5), %v7242_v12, %v12312_v20 }
 0x6ac   : > { %7364 = vst [vmem:[#allocation11 + $0x30] sm:$0xff] (!%p8079_p5), %v7300_v47  ;;  %7365 = vst [vmem:[#allocation11 + $0x38] sm:$0xff] (!%p8079_p5), %v7301_v49  ;;  %v7307_v22 = vadd.f32 (!%p8079_p5), %v7243_v4, %v12314_v44  ;;  %v7308_v42 = vadd.f32 (!%p8079_p5), %v7244_v48, %v12316_v59  ;;  %v7245_v61 = vld [vmem:[#allocation11 + $0x78] sm:$0xff] (!%p8079_p5)  ;;  %v7246_v27 = vld [vmem:[#allocation11 + $0x80] sm:$0xff] (!%p8079_p5) }
 0x6ad   : > { %7366 = vst [vmem:[#allocation11 + $0x40] sm:$0xff] (!%p8079_p5), %v7302_v14  ;;  %v7247_v63 = vld [vmem:[#allocation11 + $0x88] sm:$0xff] (!%p8079_p5)  ;;  %7367 = vst [vmem:[#allocation11 + $0x48] sm:$0xff] (!%p8079_p5), %v7303_v51  ;;  %v7309_v55 = vadd.f32 (!%p8079_p5), %v7245_v61, %v12318_v41  ;;  %v7310_v32 = vadd.f32 (!%p8079_p5), %v7246_v27, %v12320_v24  ;;  %v7248_v28 = vld [vmem:[#allocation11 + $0x90] sm:$0xff] (!%p8079_p5) }
 0x6ae   : > { %7368 = vst [vmem:[#allocation11 + $0x50] sm:$0xff] %v7304_v16  ;;  %7369 = vst [vmem:[#allocation11 + $0x58] sm:$0xff] %v7305_v25  ;;  %v7311_v3 = vadd.f32 %v7247_v63, %v12322_v40  ;;  %v7249_v50 = vld [vmem:[#allocation11 + $0x98] sm:$0xff]  ;;  %v7250_v38 = vld [vmem:[#allocation11 + $0xa0] sm:$0xff]  ;;  %v7312_v20 = vadd.f32 %v7248_v28, %v12324_v52 }
 0x6af   : > { %7370 = vst [vmem:[#allocation11 + $0x60] sm:$0xff] %v7306_v39  ;;  %7371 = vst [vmem:[#allocation11 + $0x68] sm:$0xff] %v7307_v22  ;;  %v7313_v44 = vadd.f32 %v7249_v50, %v12326_v17  ;;  %v7314_v59 = vadd.f32 %v7250_v38, %v12328_v11  ;;  %v7251_v54 = vld [vmem:[#allocation11 + $0xa8] sm:$0xff]  ;;  %v7252_v53 = vld [vmem:[#allocation11 + $0xb0] sm:$0xff] }
 0x6b0   : > { %7372 = vst [vmem:[#allocation11 + $0x70] sm:$0xff] %v7308_v42  ;;  %v7253_v2 = vld [vmem:[#allocation11 + $0xb8] sm:$0xff]  ;;  %7373 = vst [vmem:[#allocation11 + $0x78] sm:$0xff] %v7309_v55  ;;  %v7315_v41 = vadd.f32 %v7251_v54, %v12330_v30  ;;  %v7316_v24 = vadd.f32 %v7252_v53, %v12332_v43  ;;  %v7254_v47 = vld [vmem:[#allocation11 + $0xc0] sm:$0xff] }
 0x6b1   : > { %7374 = vst [vmem:[#allocation11 + $0x80] sm:$0xff] %v7310_v32  ;;  %7375 = vst [vmem:[#allocation11 + $0x88] sm:$0xff] %v7311_v3  ;;  %v7317_v40 = vadd.f32 %v7253_v2, %v12334_v6  ;;  %v7255_v49 = vld [vmem:[#allocation11 + $0xc8] sm:$0xff]  ;;  %v7256_v14 = vld [vmem:[#allocation11 + $0xd0] sm:$0xff]  ;;  %v7318_v52 = vadd.f32 %v7254_v47, %v12336_v10 }
 0x6b2   : > { %7376 = vst [vmem:[#allocation11 + $0x90] sm:$0xff] %v7312_v20  ;;  %7377 = vst [vmem:[#allocation11 + $0x98] sm:$0xff] %v7313_v44  ;;  %v7319_v17 = vadd.f32 %v7255_v49, %v12338_v46  ;;  %v7320_v11 = vadd.f32 %v7256_v14, %v12340_v13  ;;  %v7257_v7 = vld [vmem:[#allocation11 + $0xd8] sm:$0xff]  ;;  %v7258_v35 = vld [vmem:[#allocation11 + $0xe0] sm:$0xff] }
 0x6b3   : > { %7378 = vst [vmem:[#allocation11 + $0xa0] sm:$0xff] %v7314_v59  ;;  %v7259_v19 = vld [vmem:[#allocation11 + $0xe8] sm:$0xff]  ;;  %7379 = vst [vmem:[#allocation11 + $0xa8] sm:$0xff] %v7315_v41  ;;  %v7321_v30 = vadd.f32 %v7257_v7, %v12342_v18  ;;  %v7322_v43 = vadd.f32 %v7258_v35, %v12344_v21  ;;  %v7260_v51 = vld [vmem:[#allocation11 + $0xf0] sm:$0xff] }
 0x6b4   : > { %7380 = vst [vmem:[#allocation11 + $0xb0] sm:$0xff] %v7316_v24  ;;  %7381 = vst [vmem:[#allocation11 + $0xb8] sm:$0xff] %v7317_v40  ;;  %v7323_v6 = vadd.f32 %v7259_v19, %v12346_v1  ;;  %v7261_v16 = vld [vmem:[#allocation11 + $0xf8] sm:$0xff]  ;;  %v7262_v25 = vld [vmem:[#allocation11 + $0x100] sm:$0xff]  ;;  %v7324_v10 = vadd.f32 %v7260_v51, %v12348_v15 }
 0x6b5   : > { %7382 = vst [vmem:[#allocation11 + $0xc0] sm:$0xff] %v7318_v52  ;;  %7383 = vst [vmem:[#allocation11 + $0xc8] sm:$0xff] %v7319_v17  ;;  %v7325_v46 = vadd.f32 %v7261_v16, %v12350_v5  ;;  %v7326_v13 = vadd.f32 %v7262_v25, %v12352_v0  ;;  %v7263_v12 = vld [vmem:[#allocation11 + $0x108] sm:$0xff]  ;;  %v7264_v4 = vld [vmem:[#allocation11 + $0x110] sm:$0xff] }
 0x6b6   : > { %7384 = vst [vmem:[#allocation11 + $0xd0] sm:$0xff] %v7320_v11  ;;  %v7265_v48 = vld [vmem:[#allocation11 + $0x118] sm:$0xff]  ;;  %7385 = vst [vmem:[#allocation11 + $0xd8] sm:$0xff] %v7321_v30  ;;  %v7327_v18 = vadd.f32 %v7263_v12, %v12354_v45  ;;  %v7328_v21 = vadd.f32 %v7264_v4, %v12356_v26  ;;  %v7266_v39 = vld [vmem:[#allocation11 + $0x120] sm:$0xff] }
 0x6b7   : > { %7386 = vst [vmem:[#allocation11 + $0xe0] sm:$0xff] %v7322_v43  ;;  %7387 = vst [vmem:[#allocation11 + $0xe8] sm:$0xff] %v7323_v6  ;;  %v7329_v1 = vadd.f32 %v7265_v48, %v12358_v56  ;;  %v7267_v22 = vld [vmem:[#allocation11 + $0x128] sm:$0xff]  ;;  %v7268_v42 = vld [vmem:[#allocation11 + $0x130] sm:$0xff]  ;;  %v7330_v15 = vadd.f32 %v7266_v39, %v12360_v9 }
 0x6b8   : > { %7388 = vst [vmem:[#allocation11 + $0xf0] sm:$0xff] %v7324_v10  ;;  %7389 = vst [vmem:[#allocation11 + $0xf8] sm:$0xff] %v7325_v46  ;;  %v7331_v5 = vadd.f32 %v7267_v22, %v12362_v34  ;;  %v7332_v0 = vadd.f32 %v7268_v42, %v12364_v29  ;;  %v7269_v61 = vld [vmem:[#allocation11 + $0x138] sm:$0xff]  ;;  %v7270_v27 = vld [vmem:[#allocation11 + $0x140] sm:$0xff] }
 0x6b9   : > { %7390 = vst [vmem:[#allocation11 + $0x100] sm:$0xff] %v7326_v13  ;;  %v7271_v63 = vld [vmem:[#allocation11 + $0x148] sm:$0xff]  ;;  %7391 = vst [vmem:[#allocation11 + $0x108] sm:$0xff] %v7327_v18  ;;  %v7333_v45 = vadd.f32 %v7269_v61, %v12366_v31  ;;  %v7334_v26 = vadd.f32 %v7270_v27, %v12368_v23  ;;  %v7272_v55 = vld [vmem:[#allocation11 + $0x150] sm:$0xff] }
 0x6ba   : > { %7392 = vst [vmem:[#allocation11 + $0x110] sm:$0xff] %v7328_v21  ;;  %7393 = vst [vmem:[#allocation11 + $0x118] sm:$0xff] %v7329_v1  ;;  %v7335_v56 = vadd.f32 %v7271_v63, %v12370_v36  ;;  %v7273_v32 = vld [vmem:[#allocation11 + $0x158] sm:$0xff]  ;;  %v7274_v3 = vld [vmem:[#allocation11 + $0x160] sm:$0xff]  ;;  %v7336_v9 = vadd.f32 %v7272_v55, %v12372_v57 }
 0x6bb   : > { %7394 = vst [vmem:[#allocation11 + $0x120] sm:$0xff] %v7330_v15  ;;  %7395 = vst [vmem:[#allocation11 + $0x128] sm:$0xff] %v7331_v5  ;;  %v7337_v34 = vadd.f32 %v7273_v32, %v12374_v37  ;;  %v7338_v29 = vadd.f32 %v7274_v3, %v12376_v62  ;;  %v7275_v28 = vld [vmem:[#allocation11 + $0x168] sm:$0xff]  ;;  %v7276_v50 = vld [vmem:[#allocation11 + $0x170] sm:$0xff] }
 0x6bc   : > { %7396 = vst [vmem:[#allocation11 + $0x130] sm:$0xff] %v7332_v0  ;;  %v7277_v38 = vld [vmem:[#allocation11 + $0x178] sm:$0xff]  ;;  %7397 = vst [vmem:[#allocation11 + $0x138] sm:$0xff] %v7333_v45  ;;  %v7339_v31 = vadd.f32 %v7275_v28, %v12378_v8  ;;  %v7340_v23 = vadd.f32 %v7276_v50, %v12380_v60  ;;  %v7278_v20 = vld [vmem:[#allocation11 + $0x180] sm:$0xff] }
 0x6bd   : > { %7398 = vst [vmem:[#allocation11 + $0x140] sm:$0xff] %v7334_v26  ;;  %7399 = vst [vmem:[#allocation11 + $0x148] sm:$0xff] %v7335_v56  ;;  %v7341_v36 = vadd.f32 %v7277_v38, %v12382_v33  ;;  %v7279_v44 = vld [vmem:[#allocation11 + $0x188] sm:$0xff]  ;;  %v7280_v59 = vld [vmem:[#allocation11 + $0x190] sm:$0xff]  ;;  %v7342_v57 = vadd.f32 %v7278_v20, %v12384_v58 }
 0x6be   : > { %7400 = vst [vmem:[#allocation11 + $0x150] sm:$0xff] %v7336_v9  ;;  %7401 = vst [vmem:[#allocation11 + $0x158] sm:$0xff] %v7337_v34  ;;  %v12774_v37 = vld [vmem:[#allocation20_spill] sm:$0xff]  ;;  %v12775_v54 = vld [vmem:[#allocation21_spill] sm:$0xff] }
 0x6bf   : > { %7402 = vst [vmem:[#allocation11 + $0x160] sm:$0xff] %v7338_v29  ;;  %v7343_v62 = vadd.f32 %v7279_v44, %v12774_v37  ;;  %v7344_v53 = vadd.f32 %v7280_v59, %v12775_v54  ;;  %v7281_v2 = vld [vmem:[#allocation11 + $0x198] sm:$0xff]  ;;  %v7282_v41 = vld [vmem:[#allocation11 + $0x1a0] sm:$0xff]  ;;  %v7283_v24 = vld [vmem:[#allocation11 + $0x1a8] sm:$0xff] }
 0x6c0   : > { %7403 = vst [vmem:[#allocation11 + $0x168] sm:$0xff] %v7339_v31  ;;  %7404 = vst [vmem:[#allocation11 + $0x170] sm:$0xff] %v7340_v23  ;;  %v12776_v8 = vld [vmem:[#allocation23_spill] sm:$0xff]  ;;  %v12777_v33 = vld [vmem:[#allocation22_spill] sm:$0xff] }
 0x6c1   : > { %7405 = vst [vmem:[#allocation11 + $0x178] sm:$0xff] %v7341_v36  ;;  %v7345_v60 = vadd.f32 %v7281_v2, %v12776_v8  ;;  %v7346_v40 = vadd.f32 %v7282_v41, %v12777_v33  ;;  %v12778_v47 = vld [vmem:[#allocation24_spill] sm:$0xff]  ;;  %v7284_v14 = vld [vmem:[#allocation11 + $0x1b0] sm:$0xff]  ;;  %v7285_v52 = vld [vmem:[#allocation11 + $0x1b8] sm:$0xff] }
 0x6c2   : > { %v7347_v49 = vadd.f32 %v7283_v24, %v12778_v47  ;;  %v7286_v17 = vld [vmem:[#allocation11 + $0x1c0] sm:$0xff]  ;;  %7406 = vst [vmem:[#allocation11 + $0x180] sm:$0xff] %v7342_v57  ;;  %7407 = vst [vmem:[#allocation11 + $0x188] sm:$0xff] %v7343_v62  ;;  %v12779_v58 = vld [vmem:[#allocation25_spill] sm:$0xff] }
 0x6c3   : > { %7408 = vst [vmem:[#allocation11 + $0x190] sm:$0xff] %v7344_v53  ;;  %v7348_v11 = vadd.f32 %v7284_v14, %v12779_v58  ;;  %v12780_v7 = vld [vmem:[#allocation27_spill] sm:$0xff]  ;;  %v12781_v19 = vld [vmem:[#allocation26_spill] sm:$0xff]  ;;  %v7287_v43 = vld [vmem:[#allocation11 + $0x1c8] sm:$0xff] }
 0x6c4   : > { %v7349_v35 = vadd.f32 %v7285_v52, %v12780_v7  ;;  %v7350_v30 = vadd.f32 %v7286_v17, %v12781_v19  ;;  %v7288_v6 = vld [vmem:[#allocation11 + $0x1d0] sm:$0xff]  ;;  %v7289_v51 = vld [vmem:[#allocation11 + $0x1d8] sm:$0xff]  ;;  %7409 = vst [vmem:[#allocation11 + $0x198] sm:$0xff] %v7345_v60  ;;  %7410 = vst [vmem:[#allocation11 + $0x1a0] sm:$0xff] %v7346_v40 }
 0x6c5   : > { %7411 = vst [vmem:[#allocation11 + $0x1a8] sm:$0xff] %v7347_v49  ;;  %v12782_v16 = vld [vmem:[#allocation28_spill] sm:$0xff]  ;;  %v12783_v10 = vld [vmem:[#allocation29_spill] sm:$0xff]  ;;  %v12784_v13 = vld [vmem:[#allocation31_spill] sm:$0xff] }
 0x6c6   : > { %v7351_v25 = vadd.f32 %v7287_v43, %v12782_v16  ;;  %v7352_v46 = vadd.f32 %v7288_v6, %v12783_v10  ;;  %v7353_v12 = vadd.f32 %v7289_v51, %v12784_v13  ;;  %v7290_v4 = vld [vmem:[#allocation11 + $0x1e0] sm:$0xff]  ;;  %v7291_v48 = vld [vmem:[#allocation11 + $0x1e8] sm:$0xff]  ;;  %v7292_v18 = vld [vmem:[#allocation11 + $0x1f0] sm:$0xff]  ;;  %7412 = vst [vmem:[#allocation11 + $0x1b0] sm:$0xff] %v7348_v11 }
 0x6c7   : > { %7413 = vst [vmem:[#allocation11 + $0x1b8] sm:$0xff] %v7349_v35  ;;  %7414 = vst [vmem:[#allocation11 + $0x1c0] sm:$0xff] %v7350_v30  ;;  %v12785_v21 = vld [vmem:[#allocation30_spill] sm:$0xff]  ;;  %v12786_v39 = vld [vmem:[#allocation32_spill] sm:$0xff] }
 0x6c8   : > { %v7354_v1 = vadd.f32 %v7290_v4, %v12785_v21  ;;  %v7355_v22 = vadd.f32 %v7291_v48, %v12786_v39  ;;  %v12787_v42 = vld [vmem:[#allocation33_spill] sm:$0xff]  ;;  %v7293_v5 = vld [vmem:[#allocation11 + $0x1f8] sm:$0xff]  ;;  %7415 = vst [vmem:[#allocation11 + $0x1c8] sm:$0xff] %v7351_v25  ;;  %7416 = vst [vmem:[#allocation11 + $0x1d0] sm:$0xff] %v7352_v46 }
 0x6c9   : > { %v7356_v15 = vadd.f32 %v7292_v18, %v12787_v42  ;;  %7417 = vst [vmem:[#allocation11 + $0x1d8] sm:$0xff] %v7353_v12  ;;  %v12788_v0 = vld [vmem:[#allocation35_spill] sm:$0xff] }
 0x6ca   : > { %v7357_v61 = vadd.f32 %v7293_v5, %v12788_v0  ;;  %7418 = vst [vmem:[#allocation11 + $0x1e0] sm:$0xff] %v7354_v1  ;;  %7419 = vst [vmem:[#allocation11 + $0x1e8] sm:$0xff] %v7355_v22 }
 0x6cb   : > { %7420 = vst [vmem:[#allocation11 + $0x1f0] sm:$0xff] %v7356_v15 }
 0x6cc   : > { %7421 = vst [vmem:[#allocation11 + $0x1f8] sm:$0xff] %v7357_v61 }
 0x6cd PF: > { %p9184_p12 = scmp.eq.s32.totalorder %s9849_s16, 1  ;;  %s9715_s14 = smov [#allocation11]  }
 0x6ce   : > { %s7428_s13 = sshll.u32 %s9715_s14, 4  ;;  %s7429_s13 = int_to_ptr.vmem [resolvable:$true] %s7428_s13 }
 0x6cf   : > { %s9631_s12 = scalar_lea.vmem %s7429_s13, 8192  ;;  %p9638_p10 = scmp.lt.s32.totalorder %s7429_s13, %s7429_s13 }
 0x6d0   : > { %p9632_p2 = scmp.ne.s32.totalorder %s7429_s13, %s9631_s12  ;;  %p9639_p11 = scmp.lt.s32.totalorder %s9631_s12, %s9631_s12 }
 0x6d2   : > { %p9633_p3 = pnand %p9632_p2, %p9184_p12  ;;  %p9640_p7 = por %p9639_p11, %p9638_p10 }
 0x6d4   : > { %p9634_p6 = pneg %p9633_p3 }
 0x6d6   : > { %p9641_p8 = pnand %p9640_p7, %p9634_p6 }
 0x6d8   : > { %9644 = shalt.err (!%p9641_p8)
}
 0x6d9   : > { %s12789_s17 = sld [smem:[#allocation43_spill]] }
 0x6df   : > { %s9645_s29 = scalar_lea.hbm %s12789_s17, 8192 }
 0x6e0   : > { %p9646_p9 = scmp.ne.s32.totalorder %s12789_s17, %s9645_s29  ;;  %p9651_p0 = scmp.lt.u32.totalorder %s9645_s29, %s12789_s17 }
 0x6e2   : > { %p9647_p13 = pnand %p9646_p9, %p9184_p12 }
 0x6e4   : > { %p9648_p1 = pneg %p9647_p13 }
 0x6e6   : > { %p9653_p4 = pnand %p9651_p0, %p9648_p1 }
 0x6e8   : > { %9656 = shalt.err (!%p9653_p4)
}
 0x6e9   : > { %s9716_s20 = smov 256   ;;  %s9717_s26 = smov 16  }
 0x6ea   : > { %9164 = dma.vmem_to_hbm [thread:$0]  (%p9184_p12), %s7429_s13, 8192, %s12789_s17, [#allocation5], %s9716_s20, %s9716_s20, %s9717_s26  }
 0x6eb   : > { %9686 = dma.done.wait (%p9184_p12), [#allocation5], 8192  }
 0x6ec   : > { %9688 = vsyncadd (%p9184_p12), [#allocation5], 4294959104 }
 0x6ed PF: > { %s12790_s30 = sld [smem:[#allocation17_spill]]  ;;  %s12791_s11 = sld [smem:[#allocation16_spill]] }
 0x6ee   : > { %s12792_s29 = sld [smem:[#allocation18_spill]]  ;;  %s12793_s27 = smov %s9695_s28 }
 0x6f3   : > { %p23_p5 = scmp.ge.s32.totalorder %s12790_s30, 4   ;;  %s12794_s28 = smov %s12791_s11 }
 0x6f5   :  { %25 = sbr.rel (!%p23_p5) target bundleno = 10 (0xa), region = 152 }
 0x6fc   :  { %7444 = vsyncpa [#allocation4], 1 }
 0x6fd   :  { %7446 = vsyncpa [#allocation4 + $0x1], 1 }
 0x6fe   :  { %7447 = vsyncpa [#allocation7], 1 }
 0x6ff   :  { %7449 = vsyncpa [#allocation7 + $0x1], 1 }
 0x700   :  { %7450 = vsyncpa [#allocation10], 1 }
 0x701   :  { %7452 = vsyncpa [#allocation10 + $0x1], 1 }
 0x702   :  { %7453 = vsyncpa [#allocation5], 1 }
 0x703   :  { %7455 = vsyncpa [#allocation5 + $0x1], 1 }

</bundles_post_ra>
